<compile_context>
chip_gen: v7x
topology: tpu7x:2x2x1
jax: 0.10.0
libtpu: 0.0.40
codegen_flags: <defaults>
</compile_context>

<pallas_src>
import functools

import jax
import jax.numpy as jnp
from jax.experimental import pallas as pl
from jax.experimental.pallas import tpu as pltpu


def _round_up(x, m):
    return ((x + m - 1) // m) * m


# ----------------------- conv (+ pool + relu) kernel -------------------------

def _conv_pool_relu_kernel(a_ref, w_ref, b_ref, o_ref):
    """a_ref: (4, bm, K) -- the 4 conv positions of each 2x2 pool window.
    out = relu(max_p(a[p] @ w) + b)."""
    w = w_ref[...]
    m = jnp.maximum(
        jnp.maximum(jnp.dot(a_ref[0], w, preferred_element_type=jnp.float32),
                    jnp.dot(a_ref[1], w, preferred_element_type=jnp.float32)),
        jnp.maximum(jnp.dot(a_ref[2], w, preferred_element_type=jnp.float32),
                    jnp.dot(a_ref[3], w, preferred_element_type=jnp.float32)))
    o_ref[...] = jnp.maximum(m + b_ref[...], 0.0)


def conv_pool_relu(a4, w, b, block_m=1024):
    """a4: (4, M, K), w: (K, Cout), b: (1, Cout) -> (M, Cout) pooled+ReLU'd."""
    _, M, K = a4.shape
    Cout = w.shape[1]
    bm = min(block_m, _round_up(M, 8))
    Mp = _round_up(M, bm)
    if Mp != M:
        a4 = jnp.pad(a4, ((0, 0), (0, Mp - M), (0, 0)))
    out = pl.pallas_call(
        _conv_pool_relu_kernel,
        out_shape=jax.ShapeDtypeStruct((Mp, Cout), jnp.float32),
        grid=(Mp // bm,),
        in_specs=[
            pl.BlockSpec((4, bm, K), lambda i: (0, i, 0)),
            pl.BlockSpec((K, Cout), lambda i: (0, 0)),
            pl.BlockSpec((1, Cout), lambda i: (0, 0)),
        ],
        out_specs=pl.BlockSpec((bm, Cout), lambda i: (i, 0)),
        compiler_params=pltpu.CompilerParams(dimension_semantics=("parallel",)),
    )(a4, w, b)
    return out[:M]


# ----------------- fused MLP (fc1/fc2/fc3+softmax) + sum_2 kernel ------------

def _mlp_sum2_kernel(f1_ref, f2_ref, w1_ref, b1_ref, w2_ref, b2_ref,
                     w3_ref, b3_ref, r1_ref, r2_ref, s_ref, o_ref):
    def digit_probs(f):
        h = jnp.dot(f, w1_ref[...], preferred_element_type=jnp.float32)
        h = jnp.maximum(h + b1_ref[...], 0.0)
        h = jnp.dot(h, w2_ref[...], preferred_element_type=jnp.float32)
        h = jnp.maximum(h + b2_ref[...], 0.0)
        z = jnp.dot(h, w3_ref[...], preferred_element_type=jnp.float32)
        z = z + b3_ref[...]
        z = z - jnp.max(z, axis=-1, keepdims=True)
        e = jnp.exp(z)
        return e / jnp.sum(e, axis=-1, keepdims=True)

    d1 = digit_probs(f1_ref[...])          # (bb, 10)
    d2 = digit_probs(f2_ref[...])          # (bb, 10)
    # outer product as two constant "expand" matmuls (no in-kernel reshape),
    # then one constant scatter matmul onto sums 0..18 -- single wide store.
    outer = (jnp.dot(d1, r1_ref[...], preferred_element_type=jnp.float32) *
             jnp.dot(d2, r2_ref[...], preferred_element_type=jnp.float32))   # (bb, 100)
    o_ref[...] = jnp.dot(outer, s_ref[...], preferred_element_type=jnp.float32)


def mlp_sum2(f1, f2, w1, b1, w2, b2, w3, b3, block_b=256):
    B = f1.shape[0]
    bb = min(block_b, _round_up(B, 8))
    Bp = _round_up(B, bb)
    if Bp != B:
        f1 = jnp.pad(f1, ((0, Bp - B), (0, 0)))
        f2 = jnp.pad(f2, ((0, Bp - B), (0, 0)))

    k = jnp.arange(100)
    i_idx = k // 10
    j_idx = k % 10
    r1 = (i_idx[None, :] == jnp.arange(10)[:, None]).astype(jnp.float32)   # (10, 100)
    r2 = (j_idx[None, :] == jnp.arange(10)[:, None]).astype(jnp.float32)   # (10, 100)
    s = ((i_idx + j_idx)[:, None] == jnp.arange(19)[None, :]).astype(jnp.float32)  # (100, 19)

    out = pl.pallas_call(
        _mlp_sum2_kernel,
        out_shape=jax.ShapeDtypeStruct((Bp, 19), jnp.float32),
        grid=(Bp // bb,),
        in_specs=[
            pl.BlockSpec((bb, 256), lambda i: (i, 0)),
            pl.BlockSpec((bb, 256), lambda i: (i, 0)),
            pl.BlockSpec((256, 120), lambda i: (0, 0)),
            pl.BlockSpec((1, 120), lambda i: (0, 0)),
            pl.BlockSpec((120, 84), lambda i: (0, 0)),
            pl.BlockSpec((1, 84), lambda i: (0, 0)),
            pl.BlockSpec((84, 10), lambda i: (0, 0)),
            pl.BlockSpec((1, 10), lambda i: (0, 0)),
            pl.BlockSpec((10, 100), lambda i: (0, 0)),
            pl.BlockSpec((10, 100), lambda i: (0, 0)),
            pl.BlockSpec((100, 19), lambda i: (0, 0)),
        ],
        out_specs=pl.BlockSpec((bb, 19), lambda i: (i, 0)),
        compiler_params=pltpu.CompilerParams(dimension_semantics=("parallel",)),
    )(f1, f2, w1, b1, w2, b2, w3, b3, r1, r2, s)
    return out[:B]


# ------------------------------- JAX glue ------------------------------------

def pooled_patches(x, ksize):
    """x: (N, H, W, C) NHWC.  Returns (4, N*oh*ow, ksize*ksize*C) where the
    leading axis enumerates the 4 conv-output positions of each 2x2 pooling
    window.  K order = (kh, kw, c), matching the (2,3,1,0) weight transpose."""
    N, H, W, C = x.shape
    oh_c, ow_c = H - ksize + 1, W - ksize + 1
    oh, ow = oh_c // 2, ow_c // 2
    cols = []
    for ki in range(ksize):
        for kj in range(ksize):
            cols.append(x[:, ki:ki + oh_c, kj:kj + ow_c, :])
    p = jnp.stack(cols, axis=3)                       # (N, oh_c, ow_c, k*k, C)
    p = p.reshape(N, oh_c, ow_c, ksize * ksize * C)
    a4 = jnp.stack([p[:, 0::2, 0::2, :], p[:, 0::2, 1::2, :],
                    p[:, 1::2, 0::2, :], p[:, 1::2, 1::2, :]], axis=0)
    return a4.reshape(4, N * oh * ow, ksize * ksize * C), (N, oh, ow)


def init_params(key):
    ks = jax.random.split(key, 10)
    rnd = lambda k, shape, s: jax.random.normal(k, shape, dtype=jnp.float32) * s
    # Shapes follow torch conventions: conv (out, in, kh, kw), linear (out, in).
    return dict(
        w1=rnd(ks[0], (6, 1, 5, 5), 0.2),    b1=rnd(ks[1], (6,), 0.1),
        w2=rnd(ks[2], (16, 6, 5, 5), 0.1),   b2=rnd(ks[3], (16,), 0.1),
        fc1_w=rnd(ks[4], (120, 256), 0.05),  fc1_b=rnd(ks[5], (120,), 0.05),
        fc2_w=rnd(ks[6], (84, 120), 0.05),   fc2_b=rnd(ks[7], (84,), 0.05),
        fc3_w=rnd(ks[8], (10, 84), 0.05),    fc3_b=rnd(ks[9], (10,), 0.05),
    )


# permutation mapping NHWC (h,w,c) flatten order -> PyTorch NCHW (c,h,w) order
_FC1_PERM = jnp.array([c * 16 + h * 4 + w
                       for h in range(4) for w in range(4) for c in range(16)],
                      dtype=jnp.int32)


def mnist_sum2_forward(x, params):
    """x: (2*B, 1, 28, 28) float32 (NCHW).  Returns (B, 19) sum distribution."""
    x = x.reshape(-1, 1, 28, 28)
    N = x.shape[0]
    B = N // 2
    xh = jnp.transpose(x, (0, 2, 3, 1))                        # NHWC (N,28,28,1)

    # conv1 (1->6, k=5) + MaxPool(2,2) + ReLU, fused in one kernel
    a4, _ = pooled_patches(xh, 5)                              # (4, N*144, 25)
    w1m = jnp.transpose(params["w1"], (2, 3, 1, 0)).reshape(25, 6)
    h1 = conv_pool_relu(a4, w1m, params["b1"].reshape(1, 6))   # (N*144, 6)
    h1 = h1.reshape(N, 12, 12, 6)

    # conv2 (6->16, k=5) + MaxPool(2,2) + ReLU, fused in one kernel
    a4b, _ = pooled_patches(h1, 5)                             # (4, N*16, 150)
    w2m = jnp.transpose(params["w2"], (2, 3, 1, 0)).reshape(150, 16)
    h2 = conv_pool_relu(a4b, w2m, params["b2"].reshape(1, 16)) # (N*16, 16)

    # flatten in NHWC order (no transpose); fc1 weight columns are permuted
    # once to match, preserving PyTorch NCHW .view() semantics exactly.
    feat = h2.reshape(N, 256)
    fc1_w = params["fc1_w"][:, _FC1_PERM].T                    # (256, 120)

    # fused fc1+ReLU -> fc2+ReLU -> fc3+softmax -> probabilistic sum_2
    return mlp_sum2(
        feat[:B], feat[B:],
        fc1_w, params["fc1_b"].reshape(1, -1),
        params["fc2_w"].T, params["fc2_b"].reshape(1, -1),
        params["fc3_w"].T, params["fc3_b"].reshape(1, -1))     # (B, 19)


if __name__ == "__main__":
    key = jax.random.PRNGKey(0)
    kx, kp = jax.random.split(key)
    B = 2                                   # number of (digit_1, digit_2) pairs
    x = jax.random.normal(kx, (2 * B, 1, 28, 28), dtype=jnp.float32)
    params = init_params(kp)

    fwd = jax.jit(mnist_sum2_forward)
    out = fwd(x, params)
    out = jax.block_until_ready(out)

    assert out.shape == (B, 19), out.shape
    # each row is a probability distribution over sums 0..18
    assert jnp.allclose(jnp.sum(out, axis=-1), 1.0, atol=1e-4)
    print("KERNEL_OK")
</pallas_src>

<mosaic_0001>
module attributes {stable_mosaic.version = 11 : i64} {
  func.func @_conv_pool_relu_kernel(%arg0: i32, %arg1: memref<4x576x25xf32, #tpu.memory_space<vmem>>, %arg2: memref<25x6xf32, #tpu.memory_space<vmem>>, %arg3: memref<1x6xf32, #tpu.memory_space<vmem>>, %arg4: memref<576x6xf32, #tpu.memory_space<vmem>>) attributes {dimension_semantics = [#tpu.dimension_semantics<parallel>], iteration_bounds = array<i64: 1>, scalar_prefetch = 0 : i64, scratch_operands = 0 : i64, tpu.core_type = #tpu.core_type<tc>, window_params = [{transform_indices = @transform_0, window_bounds = array<i64: 4, 576, 25>}, {pipeline_mode = #tpu.pipeline_mode<synchronous>, transform_indices = @transform_1, window_bounds = array<i64: 25, 6>}, {pipeline_mode = #tpu.pipeline_mode<synchronous>, transform_indices = @transform_2, window_bounds = array<i64: 1, 6>}, {transform_indices = @transform_3, window_bounds = array<i64: 576, 6>}]} {
    %c0 = arith.constant 0 : index
    %c0_0 = arith.constant 0 : index
    %0 = vector.load %arg2[%c0, %c0_0] : memref<25x6xf32, #tpu.memory_space<vmem>>, vector<25x6xf32>
    %c0_1 = arith.constant 0 : index
    %c0_2 = arith.constant 0 : index
    %c0_3 = arith.constant 0 : index
    %1 = vector.load %arg1[%c0_1, %c0_2, %c0_3] : memref<4x576x25xf32, #tpu.memory_space<vmem>>, vector<1x576x25xf32>
    %2 = vector.shape_cast %1 : vector<1x576x25xf32> to vector<576x25xf32>
    %cst = arith.constant dense<0.000000e+00> : vector<576x6xf32>
    %3 = tpu.matmul %2, %0, %cst {dimension_numbers = #tpu.dot_dimension_numbers<[1], [0], [0], [1], [0, 0, 1, 1], [], []>} : vector<576x25xf32>, vector<25x6xf32>, vector<576x6xf32> -> vector<576x6xf32>
    %c1 = arith.constant 1 : index
    %c0_4 = arith.constant 0 : index
    %c0_5 = arith.constant 0 : index
    %4 = vector.load %arg1[%c1, %c0_4, %c0_5] : memref<4x576x25xf32, #tpu.memory_space<vmem>>, vector<1x576x25xf32>
    %5 = vector.shape_cast %4 : vector<1x576x25xf32> to vector<576x25xf32>
    %cst_6 = arith.constant dense<0.000000e+00> : vector<576x6xf32>
    %6 = tpu.matmul %5, %0, %cst_6 {dimension_numbers = #tpu.dot_dimension_numbers<[1], [0], [0], [1], [0, 0, 1, 1], [], []>} : vector<576x25xf32>, vector<25x6xf32>, vector<576x6xf32> -> vector<576x6xf32>
    %7 = arith.maximumf %3, %6 : vector<576x6xf32>
    %c2 = arith.constant 2 : index
    %c0_7 = arith.constant 0 : index
    %c0_8 = arith.constant 0 : index
    %8 = vector.load %arg1[%c2, %c0_7, %c0_8] : memref<4x576x25xf32, #tpu.memory_space<vmem>>, vector<1x576x25xf32>
    %9 = vector.shape_cast %8 : vector<1x576x25xf32> to vector<576x25xf32>
    %cst_9 = arith.constant dense<0.000000e+00> : vector<576x6xf32>
    %10 = tpu.matmul %9, %0, %cst_9 {dimension_numbers = #tpu.dot_dimension_numbers<[1], [0], [0], [1], [0, 0, 1, 1], [], []>} : vector<576x25xf32>, vector<25x6xf32>, vector<576x6xf32> -> vector<576x6xf32>
    %c3 = arith.constant 3 : index
    %c0_10 = arith.constant 0 : index
    %c0_11 = arith.constant 0 : index
    %11 = vector.load %arg1[%c3, %c0_10, %c0_11] : memref<4x576x25xf32, #tpu.memory_space<vmem>>, vector<1x576x25xf32>
    %12 = vector.shape_cast %11 : vector<1x576x25xf32> to vector<576x25xf32>
    %cst_12 = arith.constant dense<0.000000e+00> : vector<576x6xf32>
    %13 = tpu.matmul %12, %0, %cst_12 {dimension_numbers = #tpu.dot_dimension_numbers<[1], [0], [0], [1], [0, 0, 1, 1], [], []>} : vector<576x25xf32>, vector<25x6xf32>, vector<576x6xf32> -> vector<576x6xf32>
    %14 = arith.maximumf %10, %13 : vector<576x6xf32>
    %15 = arith.maximumf %7, %14 : vector<576x6xf32>
    %c0_13 = arith.constant 0 : index
    %c0_14 = arith.constant 0 : index
    %16 = vector.load %arg3[%c0_13, %c0_14] : memref<1x6xf32, #tpu.memory_space<vmem>>, vector<1x6xf32>
    %17 = vector.broadcast %16 : vector<1x6xf32> to vector<576x6xf32>
    %18 = arith.addf %15, %17 : vector<576x6xf32>
    %cst_15 = arith.constant 0.000000e+00 : f32
    %19 = vector.broadcast %cst_15 : f32 to vector<576x6xf32>
    %20 = arith.maximumf %18, %19 : vector<576x6xf32>
    %c0_16 = arith.constant 0 : index
    %c0_17 = arith.constant 0 : index
    %21 = vector.load %arg4[%c0_16, %c0_17] : memref<576x6xf32, #tpu.memory_space<vmem>>, vector<576x6xf32>
    tpu.vector_store %arg4[%c0_16, %c0_17], %20 {strides = array<i32>} : memref<576x6xf32, #tpu.memory_space<vmem>>, vector<576x6xf32>,
    return
  }
  func.func @transform_0(%arg0: i32) -> (i32, i32, i32) {
    %c0_i32 = arith.constant 0 : i32
    %c0_i32_0 = arith.constant 0 : i32
    %c0_i32_1 = arith.constant 0 : i32
    return %c0_i32, %arg0, %c0_i32_0 : i32, i32, i32
  }
  func.func @transform_1(%arg0: i32) -> (i32, i32) {
    %c0_i32 = arith.constant 0 : i32
    %c0_i32_0 = arith.constant 0 : i32
    %c0_i32_1 = arith.constant 0 : i32
    return %c0_i32, %c0_i32_0 : i32, i32
  }
  func.func @transform_2(%arg0: i32) -> (i32, i32) {
    %c0_i32 = arith.constant 0 : i32
    %c0_i32_0 = arith.constant 0 : i32
    %c0_i32_1 = arith.constant 0 : i32
    return %c0_i32, %c0_i32_0 : i32, i32
  }
  func.func @transform_3(%arg0: i32) -> (i32, i32) {
    %c0_i32 = arith.constant 0 : i32
    %c0_i32_0 = arith.constant 0 : i32
    return %arg0, %c0_i32 : i32, i32
  }
}

module attributes {stable_mosaic.version = 11 : i64} {
  func.func @_conv_pool_relu_kernel(%arg0: i32, %arg1: memref<4x64x150xf32, #tpu.memory_space<vmem>>, %arg2: memref<150x16xf32, #tpu.memory_space<vmem>>, %arg3: memref<1x16xf32, #tpu.memory_space<vmem>>, %arg4: memref<64x16xf32, #tpu.memory_space<vmem>>) attributes {dimension_semantics = [#tpu.dimension_semantics<parallel>], iteration_bounds = array<i64: 1>, scalar_prefetch = 0 : i64, scratch_operands = 0 : i64, tpu.core_type = #tpu.core_type<tc>, window_params = [{transform_indices = @transform_0, window_bounds = array<i64: 4, 64, 150>}, {pipeline_mode = #tpu.pipeline_mode<synchronous>, transform_indices = @transform_1, window_bounds = array<i64: 150, 16>}, {pipeline_mode = #tpu.pipeline_mode<synchronous>, transform_indices = @transform_2, window_bounds = array<i64: 1, 16>}, {transform_indices = @transform_3, window_bounds = array<i64: 64, 16>}]} {
    %c0 = arith.constant 0 : index
    %c0_0 = arith.constant 0 : index
    %0 = vector.load %arg2[%c0, %c0_0] : memref<150x16xf32, #tpu.memory_space<vmem>>, vector<150x16xf32>
    %c0_1 = arith.constant 0 : index
    %c0_2 = arith.constant 0 : index
    %c0_3 = arith.constant 0 : index
    %1 = vector.load %arg1[%c0_1, %c0_2, %c0_3] : memref<4x64x150xf32, #tpu.memory_space<vmem>>, vector<1x64x150xf32>
    %2 = vector.shape_cast %1 : vector<1x64x150xf32> to vector<64x150xf32>
    %cst = arith.constant dense<0.000000e+00> : vector<64x16xf32>
    %3 = tpu.matmul %2, %0, %cst {dimension_numbers = #tpu.dot_dimension_numbers<[1], [0], [0], [1], [0, 0, 1, 1], [], []>} : vector<64x150xf32>, vector<150x16xf32>, vector<64x16xf32> -> vector<64x16xf32>
    %c1 = arith.constant 1 : index
    %c0_4 = arith.constant 0 : index
    %c0_5 = arith.constant 0 : index
    %4 = vector.load %arg1[%c1, %c0_4, %c0_5] : memref<4x64x150xf32, #tpu.memory_space<vmem>>, vector<1x64x150xf32>
    %5 = vector.shape_cast %4 : vector<1x64x150xf32> to vector<64x150xf32>
    %cst_6 = arith.constant dense<0.000000e+00> : vector<64x16xf32>
    %6 = tpu.matmul %5, %0, %cst_6 {dimension_numbers = #tpu.dot_dimension_numbers<[1], [0], [0], [1], [0, 0, 1, 1], [], []>} : vector<64x150xf32>, vector<150x16xf32>, vector<64x16xf32> -> vector<64x16xf32>
    %7 = arith.maximumf %3, %6 : vector<64x16xf32>
    %c2 = arith.constant 2 : index
    %c0_7 = arith.constant 0 : index
    %c0_8 = arith.constant 0 : index
    %8 = vector.load %arg1[%c2, %c0_7, %c0_8] : memref<4x64x150xf32, #tpu.memory_space<vmem>>, vector<1x64x150xf32>
    %9 = vector.shape_cast %8 : vector<1x64x150xf32> to vector<64x150xf32>
    %cst_9 = arith.constant dense<0.000000e+00> : vector<64x16xf32>
    %10 = tpu.matmul %9, %0, %cst_9 {dimension_numbers = #tpu.dot_dimension_numbers<[1], [0], [0], [1], [0, 0, 1, 1], [], []>} : vector<64x150xf32>, vector<150x16xf32>, vector<64x16xf32> -> vector<64x16xf32>
    %c3 = arith.constant 3 : index
    %c0_10 = arith.constant 0 : index
    %c0_11 = arith.constant 0 : index
    %11 = vector.load %arg1[%c3, %c0_10, %c0_11] : memref<4x64x150xf32, #tpu.memory_space<vmem>>, vector<1x64x150xf32>
    %12 = vector.shape_cast %11 : vector<1x64x150xf32> to vector<64x150xf32>
    %cst_12 = arith.constant dense<0.000000e+00> : vector<64x16xf32>
    %13 = tpu.matmul %12, %0, %cst_12 {dimension_numbers = #tpu.dot_dimension_numbers<[1], [0], [0], [1], [0, 0, 1, 1], [], []>} : vector<64x150xf32>, vector<150x16xf32>, vector<64x16xf32> -> vector<64x16xf32>
    %14 = arith.maximumf %10, %13 : vector<64x16xf32>
    %15 = arith.maximumf %7, %14 : vector<64x16xf32>
    %c0_13 = arith.constant 0 : index
    %c0_14 = arith.constant 0 : index
    %16 = vector.load %arg3[%c0_13, %c0_14] : memref<1x16xf32, #tpu.memory_space<vmem>>, vector<1x16xf32>
    %17 = vector.broadcast %16 : vector<1x16xf32> to vector<64x16xf32>
    %18 = arith.addf %15, %17 : vector<64x16xf32>
    %cst_15 = arith.constant 0.000000e+00 : f32
    %19 = vector.broadcast %cst_15 : f32 to vector<64x16xf32>
    %20 = arith.maximumf %18, %19 : vector<64x16xf32>
    %c0_16 = arith.constant 0 : index
    %c0_17 = arith.constant 0 : index
    %21 = vector.load %arg4[%c0_16, %c0_17] : memref<64x16xf32, #tpu.memory_space<vmem>>, vector<64x16xf32>
    tpu.vector_store %arg4[%c0_16, %c0_17], %20 {strides = array<i32>} : memref<64x16xf32, #tpu.memory_space<vmem>>, vector<64x16xf32>,
    return
  }
  func.func @transform_0(%arg0: i32) -> (i32, i32, i32) {
    %c0_i32 = arith.constant 0 : i32
    %c0_i32_0 = arith.constant 0 : i32
    %c0_i32_1 = arith.constant 0 : i32
    return %c0_i32, %arg0, %c0_i32_0 : i32, i32, i32
  }
  func.func @transform_1(%arg0: i32) -> (i32, i32) {
    %c0_i32 = arith.constant 0 : i32
    %c0_i32_0 = arith.constant 0 : i32
    %c0_i32_1 = arith.constant 0 : i32
    return %c0_i32, %c0_i32_0 : i32, i32
  }
  func.func @transform_2(%arg0: i32) -> (i32, i32) {
    %c0_i32 = arith.constant 0 : i32
    %c0_i32_0 = arith.constant 0 : i32
    %c0_i32_1 = arith.constant 0 : i32
    return %c0_i32, %c0_i32_0 : i32, i32
  }
  func.func @transform_3(%arg0: i32) -> (i32, i32) {
    %c0_i32 = arith.constant 0 : i32
    %c0_i32_0 = arith.constant 0 : i32
    return %arg0, %c0_i32 : i32, i32
  }
}

module attributes {stable_mosaic.version = 11 : i64} {
  func.func @_mlp_sum2_kernel(%arg0: i32, %arg1: memref<8x256xf32, #tpu.memory_space<vmem>>, %arg2: memref<8x256xf32, #tpu.memory_space<vmem>>, %arg3: memref<256x120xf32, #tpu.memory_space<vmem>>, %arg4: memref<1x120xf32, #tpu.memory_space<vmem>>, %arg5: memref<120x84xf32, #tpu.memory_space<vmem>>, %arg6: memref<1x84xf32, #tpu.memory_space<vmem>>, %arg7: memref<84x10xf32, #tpu.memory_space<vmem>>, %arg8: memref<1x10xf32, #tpu.memory_space<vmem>>, %arg9: memref<10x100xf32, #tpu.memory_space<vmem>>, %arg10: memref<10x100xf32, #tpu.memory_space<vmem>>, %arg11: memref<100x19xf32, #tpu.memory_space<vmem>>, %arg12: memref<8x19xf32, #tpu.memory_space<vmem>>) attributes {dimension_semantics = [#tpu.dimension_semantics<parallel>], iteration_bounds = array<i64: 1>, scalar_prefetch = 0 : i64, scratch_operands = 0 : i64, tpu.core_type = #tpu.core_type<tc>, window_params = [{transform_indices = @transform_0, window_bounds = array<i64: 8, 256>}, {transform_indices = @transform_1, window_bounds = array<i64: 8, 256>}, {pipeline_mode = #tpu.pipeline_mode<synchronous>, transform_indices = @transform_2, window_bounds = array<i64: 256, 120>}, {pipeline_mode = #tpu.pipeline_mode<synchronous>, transform_indices = @transform_3, window_bounds = array<i64: 1, 120>}, {pipeline_mode = #tpu.pipeline_mode<synchronous>, transform_indices = @transform_4, window_bounds = array<i64: 120, 84>}, {pipeline_mode = #tpu.pipeline_mode<synchronous>, transform_indices = @transform_5, window_bounds = array<i64: 1, 84>}, {pipeline_mode = #tpu.pipeline_mode<synchronous>, transform_indices = @transform_6, window_bounds = array<i64: 84, 10>}, {pipeline_mode = #tpu.pipeline_mode<synchronous>, transform_indices = @transform_7, window_bounds = array<i64: 1, 10>}, {pipeline_mode = #tpu.pipeline_mode<synchronous>, transform_indices = @transform_8, window_bounds = array<i64: 10, 100>}, {pipeline_mode = #tpu.pipeline_mode<synchronous>, transform_indices = @transform_9, window_bounds = array<i64: 10, 100>}, {pipeline_mode = #tpu.pipeline_mode<synchronous>, transform_indices = @transform_10, window_bounds = array<i64: 100, 19>}, {transform_indices = @transform_11, window_bounds = array<i64: 8, 19>}]} {
    %c0 = arith.constant 0 : index
    %c0_0 = arith.constant 0 : index
    %0 = vector.load %arg1[%c0, %c0_0] : memref<8x256xf32, #tpu.memory_space<vmem>>, vector<8x256xf32>
    %c0_1 = arith.constant 0 : index
    %c0_2 = arith.constant 0 : index
    %1 = vector.load %arg3[%c0_1, %c0_2] : memref<256x120xf32, #tpu.memory_space<vmem>>, vector<256x120xf32>
    %cst = arith.constant dense<0.000000e+00> : vector<8x120xf32>
    %2 = tpu.matmul %0, %1, %cst {dimension_numbers = #tpu.dot_dimension_numbers<[1], [0], [0], [1], [0, 0, 1, 1], [], []>} : vector<8x256xf32>, vector<256x120xf32>, vector<8x120xf32> -> vector<8x120xf32>
    %c0_3 = arith.constant 0 : index
    %c0_4 = arith.constant 0 : index
    %3 = vector.load %arg4[%c0_3, %c0_4] : memref<1x120xf32, #tpu.memory_space<vmem>>, vector<1x120xf32>
    %4 = vector.broadcast %3 : vector<1x120xf32> to vector<8x120xf32>
    %5 = arith.addf %2, %4 : vector<8x120xf32>
    %cst_5 = arith.constant 0.000000e+00 : f32
    %6 = vector.broadcast %cst_5 : f32 to vector<8x120xf32>
    %7 = arith.maximumf %5, %6 : vector<8x120xf32>
    %c0_6 = arith.constant 0 : index
    %c0_7 = arith.constant 0 : index
    %8 = vector.load %arg5[%c0_6, %c0_7] : memref<120x84xf32, #tpu.memory_space<vmem>>, vector<120x84xf32>
    %cst_8 = arith.constant dense<0.000000e+00> : vector<8x84xf32>
    %9 = tpu.matmul %7, %8, %cst_8 {dimension_numbers = #tpu.dot_dimension_numbers<[1], [0], [0], [1], [0, 0, 1, 1], [], []>} : vector<8x120xf32>, vector<120x84xf32>, vector<8x84xf32> -> vector<8x84xf32>
    %c0_9 = arith.constant 0 : index
    %c0_10 = arith.constant 0 : index
    %10 = vector.load %arg6[%c0_9, %c0_10] : memref<1x84xf32, #tpu.memory_space<vmem>>, vector<1x84xf32>
    %11 = vector.broadcast %10 : vector<1x84xf32> to vector<8x84xf32>
    %12 = arith.addf %9, %11 : vector<8x84xf32>
    %cst_11 = arith.constant 0.000000e+00 : f32
    %13 = vector.broadcast %cst_11 : f32 to vector<8x84xf32>
    %14 = arith.maximumf %12, %13 : vector<8x84xf32>
    %c0_12 = arith.constant 0 : index
    %c0_13 = arith.constant 0 : index
    %15 = vector.load %arg7[%c0_12, %c0_13] : memref<84x10xf32, #tpu.memory_space<vmem>>, vector<84x10xf32>
    %cst_14 = arith.constant dense<0.000000e+00> : vector<8x10xf32>
    %16 = tpu.matmul %14, %15, %cst_14 {dimension_numbers = #tpu.dot_dimension_numbers<[1], [0], [0], [1], [0, 0, 1, 1], [], []>} : vector<8x84xf32>, vector<84x10xf32>, vector<8x10xf32> -> vector<8x10xf32>
    %c0_15 = arith.constant 0 : index
    %c0_16 = arith.constant 0 : index
    %17 = vector.load %arg8[%c0_15, %c0_16] : memref<1x10xf32, #tpu.memory_space<vmem>>, vector<1x10xf32>
    %18 = vector.broadcast %17 : vector<1x10xf32> to vector<8x10xf32>
    %19 = arith.addf %16, %18 : vector<8x10xf32>
    %cst_17 = arith.constant dense<0xFF800000> : vector<8xf32>
    %20 = vector.multi_reduction <maximumf>, %19, %cst_17 [1] : vector<8x10xf32> to vector<8xf32>
    %21 = vector.shape_cast %20 : vector<8xf32> to vector<8x1xf32>
    %22 = vector.broadcast %21 : vector<8x1xf32> to vector<8x10xf32>
    %23 = arith.subf %19, %22 : vector<8x10xf32>
    %24 = math.exp %23 : vector<8x10xf32>
    %cst_18 = arith.constant dense<0.000000e+00> : vector<8xf32>
    %25 = vector.multi_reduction <add>, %24, %cst_18 [1] : vector<8x10xf32> to vector<8xf32>
    %26 = vector.shape_cast %25 : vector<8xf32> to vector<8x1xf32>
    %27 = vector.broadcast %26 : vector<8x1xf32> to vector<8x10xf32>
    %28 = arith.divf %24, %27 : vector<8x10xf32>
    %c0_19 = arith.constant 0 : index
    %c0_20 = arith.constant 0 : index
    %29 = vector.load %arg2[%c0_19, %c0_20] : memref<8x256xf32, #tpu.memory_space<vmem>>, vector<8x256xf32>
    %c0_21 = arith.constant 0 : index
    %c0_22 = arith.constant 0 : index
    %30 = vector.load %arg3[%c0_21, %c0_22] : memref<256x120xf32, #tpu.memory_space<vmem>>, vector<256x120xf32>
    %cst_23 = arith.constant dense<0.000000e+00> : vector<8x120xf32>
    %31 = tpu.matmul %29, %30, %cst_23 {dimension_numbers = #tpu.dot_dimension_numbers<[1], [0], [0], [1], [0, 0, 1, 1], [], []>} : vector<8x256xf32>, vector<256x120xf32>, vector<8x120xf32> -> vector<8x120xf32>
    %c0_24 = arith.constant 0 : index
    %c0_25 = arith.constant 0 : index
    %32 = vector.load %arg4[%c0_24, %c0_25] : memref<1x120xf32, #tpu.memory_space<vmem>>, vector<1x120xf32>
    %33 = vector.broadcast %32 : vector<1x120xf32> to vector<8x120xf32>
    %34 = arith.addf %31, %33 : vector<8x120xf32>
    %cst_26 = arith.constant 0.000000e+00 : f32
    %35 = vector.broadcast %cst_26 : f32 to vector<8x120xf32>
    %36 = arith.maximumf %34, %35 : vector<8x120xf32>
    %c0_27 = arith.constant 0 : index
    %c0_28 = arith.constant 0 : index
    %37 = vector.load %arg5[%c0_27, %c0_28] : memref<120x84xf32, #tpu.memory_space<vmem>>, vector<120x84xf32>
    %cst_29 = arith.constant dense<0.000000e+00> : vector<8x84xf32>
    %38 = tpu.matmul %36, %37, %cst_29 {dimension_numbers = #tpu.dot_dimension_numbers<[1], [0], [0], [1], [0, 0, 1, 1], [], []>} : vector<8x120xf32>, vector<120x84xf32>, vector<8x84xf32> -> vector<8x84xf32>
    %c0_30 = arith.constant 0 : index
    %c0_31 = arith.constant 0 : index
    %39 = vector.load %arg6[%c0_30, %c0_31] : memref<1x84xf32, #tpu.memory_space<vmem>>, vector<1x84xf32>
    %40 = vector.broadcast %39 : vector<1x84xf32> to vector<8x84xf32>
    %41 = arith.addf %38, %40 : vector<8x84xf32>
    %cst_32 = arith.constant 0.000000e+00 : f32
    %42 = vector.broadcast %cst_32 : f32 to vector<8x84xf32>
    %43 = arith.maximumf %41, %42 : vector<8x84xf32>
    %c0_33 = arith.constant 0 : index
    %c0_34 = arith.constant 0 : index
    %44 = vector.load %arg7[%c0_33, %c0_34] : memref<84x10xf32, #tpu.memory_space<vmem>>, vector<84x10xf32>
    %cst_35 = arith.constant dense<0.000000e+00> : vector<8x10xf32>
    %45 = tpu.matmul %43, %44, %cst_35 {dimension_numbers = #tpu.dot_dimension_numbers<[1], [0], [0], [1], [0, 0, 1, 1], [], []>} : vector<8x84xf32>, vector<84x10xf32>, vector<8x10xf32> -> vector<8x10xf32>
    %c0_36 = arith.constant 0 : index
    %c0_37 = arith.constant 0 : index
    %46 = vector.load %arg8[%c0_36, %c0_37] : memref<1x10xf32, #tpu.memory_space<vmem>>, vector<1x10xf32>
    %47 = vector.broadcast %46 : vector<1x10xf32> to vector<8x10xf32>
    %48 = arith.addf %45, %47 : vector<8x10xf32>
    %cst_38 = arith.constant dense<0xFF800000> : vector<8xf32>
    %49 = vector.multi_reduction <maximumf>, %48, %cst_38 [1] : vector<8x10xf32> to vector<8xf32>
    %50 = vector.shape_cast %49 : vector<8xf32> to vector<8x1xf32>
    %51 = vector.broadcast %50 : vector<8x1xf32> to vector<8x10xf32>
    %52 = arith.subf %48, %51 : vector<8x10xf32>
    %53 = math.exp %52 : vector<8x10xf32>
    %cst_39 = arith.constant dense<0.000000e+00> : vector<8xf32>
    %54 = vector.multi_reduction <add>, %53, %cst_39 [1] : vector<8x10xf32> to vector<8xf32>
    %55 = vector.shape_cast %54 : vector<8xf32> to vector<8x1xf32>
    %56 = vector.broadcast %55 : vector<8x1xf32> to vector<8x10xf32>
    %57 = arith.divf %53, %56 : vector<8x10xf32>
    %c0_40 = arith.constant 0 : index
    %c0_41 = arith.constant 0 : index
    %58 = vector.load %arg9[%c0_40, %c0_41] : memref<10x100xf32, #tpu.memory_space<vmem>>, vector<10x100xf32>
    %cst_42 = arith.constant dense<0.000000e+00> : vector<8x100xf32>
    %59 = tpu.matmul %28, %58, %cst_42 {dimension_numbers = #tpu.dot_dimension_numbers<[1], [0], [0], [1], [0, 0, 1, 1], [], []>} : vector<8x10xf32>, vector<10x100xf32>, vector<8x100xf32> -> vector<8x100xf32>
    %c0_43 = arith.constant 0 : index
    %c0_44 = arith.constant 0 : index
    %60 = vector.load %arg10[%c0_43, %c0_44] : memref<10x100xf32, #tpu.memory_space<vmem>>, vector<10x100xf32>
    %cst_45 = arith.constant dense<0.000000e+00> : vector<8x100xf32>
    %61 = tpu.matmul %57, %60, %cst_45 {dimension_numbers = #tpu.dot_dimension_numbers<[1], [0], [0], [1], [0, 0, 1, 1], [], []>} : vector<8x10xf32>, vector<10x100xf32>, vector<8x100xf32> -> vector<8x100xf32>
    %62 = arith.mulf %59, %61 : vector<8x100xf32>
    %c0_46 = arith.constant 0 : index
    %c0_47 = arith.constant 0 : index
    %63 = vector.load %arg11[%c0_46, %c0_47] : memref<100x19xf32, #tpu.memory_space<vmem>>, vector<100x19xf32>
    %cst_48 = arith.constant dense<0.000000e+00> : vector<8x19xf32>
    %64 = tpu.matmul %62, %63, %cst_48 {dimension_numbers = #tpu.dot_dimension_numbers<[1], [0], [0], [1], [0, 0, 1, 1], [], []>} : vector<8x100xf32>, vector<100x19xf32>, vector<8x19xf32> -> vector<8x19xf32>
    %c0_49 = arith.constant 0 : index
    %c0_50 = arith.constant 0 : index
    %65 = vector.load %arg12[%c0_49, %c0_50] : memref<8x19xf32, #tpu.memory_space<vmem>>, vector<8x19xf32>
    tpu.vector_store %arg12[%c0_49, %c0_50], %64 {strides = array<i32>} : memref<8x19xf32, #tpu.memory_space<vmem>>, vector<8x19xf32>,
    return
  }
  func.func @transform_0(%arg0: i32) -> (i32, i32) {
    %c0_i32 = arith.constant 0 : i32
    %c0_i32_0 = arith.constant 0 : i32
    return %arg0, %c0_i32 : i32, i32
  }
  func.func @transform_1(%arg0: i32) -> (i32, i32) {
    %c0_i32 = arith.constant 0 : i32
    %c0_i32_0 = arith.constant 0 : i32
    return %arg0, %c0_i32 : i32, i32
  }
  func.func @transform_2(%arg0: i32) -> (i32, i32) {
    %c0_i32 = arith.constant 0 : i32
    %c0_i32_0 = arith.constant 0 : i32
    %c0_i32_1 = arith.constant 0 : i32
    return %c0_i32, %c0_i32_0 : i32, i32
  }
  func.func @transform_3(%arg0: i32) -> (i32, i32) {
    %c0_i32 = arith.constant 0 : i32
    %c0_i32_0 = arith.constant 0 : i32
    %c0_i32_1 = arith.constant 0 : i32
    return %c0_i32, %c0_i32_0 : i32, i32
  }
  func.func @transform_4(%arg0: i32) -> (i32, i32) {
    %c0_i32 = arith.constant 0 : i32
    %c0_i32_0 = arith.constant 0 : i32
    %c0_i32_1 = arith.constant 0 : i32
    return %c0_i32, %c0_i32_0 : i32, i32
  }
  func.func @transform_5(%arg0: i32) -> (i32, i32) {
    %c0_i32 = arith.constant 0 : i32
    %c0_i32_0 = arith.constant 0 : i32
    %c0_i32_1 = arith.constant 0 : i32
    return %c0_i32, %c0_i32_0 : i32, i32
  }
  func.func @transform_6(%arg0: i32) -> (i32, i32) {
    %c0_i32 = arith.constant 0 : i32
    %c0_i32_0 = arith.constant 0 : i32
    %c0_i32_1 = arith.constant 0 : i32
    return %c0_i32, %c0_i32_0 : i32, i32
  }
  func.func @transform_7(%arg0: i32) -> (i32, i32) {
    %c0_i32 = arith.constant 0 : i32
    %c0_i32_0 = arith.constant 0 : i32
    %c0_i32_1 = arith.constant 0 : i32
    return %c0_i32, %c0_i32_0 : i32, i32
  }
  func.func @transform_8(%arg0: i32) -> (i32, i32) {
    %c0_i32 = arith.constant 0 : i32
    %c0_i32_0 = arith.constant 0 : i32
    %c0_i32_1 = arith.constant 0 : i32
    return %c0_i32, %c0_i32_0 : i32, i32
  }
  func.func @transform_9(%arg0: i32) -> (i32, i32) {
    %c0_i32 = arith.constant 0 : i32
    %c0_i32_0 = arith.constant 0 : i32
    %c0_i32_1 = arith.constant 0 : i32
    return %c0_i32, %c0_i32_0 : i32, i32
  }
  func.func @transform_10(%arg0: i32) -> (i32, i32) {
    %c0_i32 = arith.constant 0 : i32
    %c0_i32_0 = arith.constant 0 : i32
    %c0_i32_1 = arith.constant 0 : i32
    return %c0_i32, %c0_i32_0 : i32, i32
  }
  func.func @transform_11(%arg0: i32) -> (i32, i32) {
    %c0_i32 = arith.constant 0 : i32
    %c0_i32_0 = arith.constant 0 : i32
    return %arg0, %c0_i32 : i32, i32
  }
}

</mosaic_0001>

<bundles_post_ra>
// kernel: mnist_sum2_forward.3
= control target key start
LH: loop header
LB: loop body
LE: loop exit
PB: predicated region body
PF: predicated region fallthrough
CT: control target
= control target key end

     0   :  { %vm307_vm0 = vcmask 1040384   ;;  %vm90_vm1 = vcmask 203776   ;;  %vm4640_vm2 = vmmov 1   ;;  %vm3245_vm4 = vcmask 48128   ;;  %s6858_s1 = inlined_call_operand.vmem [shape: f32[25,6], index: 1, kind: input, shape index: {}]   ;;  %s6859_s0 = inlined_call_operand.vmem [shape: f32[4,576,25], index: 0, kind: input, shape index: {}]   ;;  %s6860_s2 = inlined_call_operand.vmem [shape: f32[1,6], index: 2, kind: input, shape index: {}]   ;;  %s6861_s3 = inlined_call_operand.vmem [shape: f32[576,6], index: 3, kind: output, shape index: {}]  }
   0x1   :  { %v14_v0 = vld [vmem:[%s6858_s1] sm:$0xff]  ;;  %v15_v1 = vld [vmem:[%s6858_s1 + $0x8] sm:$0xff]  ;;  %v16_v2 = vld [vmem:[%s6858_s1 + $0x10] sm:$0xff] }
   0x2   :  { %v4599_v3 = vpack.c.bf16 %v15_v1, %v14_v0  ;;  %v17_v4 = vld [vmem:[%s6858_s1 + $0x18] sm:$0x1]  ;;  %v18_v5 = vld [vmem:[%s6859_s0] sm:$0xff]  ;;  %vm4676_vm3 = vmpackc.low %vm307_vm0, %vm4640_vm2 }
   0x3   :  { %v4603_v6 = vpack.c.bf16 %v17_v4, %v16_v2  ;;  %4143 = vmatprep.mubr.msk.f32.mxu0 %vm90_vm1, %v18_v5  ;;  %v3395_v8 = vld [vmem:[%s6859_s0 + $0x240] sm:$0xff]  ;;  %v19_v9 = vld [vmem:[%s6859_s0 + $0x8] sm:$0xff]  ;;  %v20_v11 = vld [vmem:[%s6859_s0 + $0x10] sm:$0xff] }
   0x4   :  { %4600 = vmatprep.subr.bf16.mxu0 %v4599_v3  ;;  %4610 = vmatprep.subr.bf16.mxu1 %v4599_v3  ;;  %v3396_v10 = vld [vmem:[%s6859_s0 + $0x248] sm:$0xff]  ;;  %v3397_v12 = vld [vmem:[%s6859_s0 + $0x250] sm:$0xff]  ;;  %v21_v13 = vld [vmem:[%s6859_s0 + $0x18] sm:$0xff] }
   0x5   :  { %4602 = vmatpush3.bf16.msra.mxu0 %v4599_v3  ;;  %4612 = vmatpush3.bf16.msra.mxu1 %v4599_v3  ;;  %v3398_v14 = vld [vmem:[%s6859_s0 + $0x258] sm:$0xff]  ;;  %v22_v15 = vld [vmem:[%s6859_s0 + $0x20] sm:$0xff]  ;;  %v23_v17 = vld [vmem:[%s6859_s0 + $0x28] sm:$0xff] }
   0x6   :  { %4605 = vmatprep.subr.msk.bf16.mxu0 %vm4676_vm3, %v4603_v6  ;;  %4615 = vmatprep.subr.msk.bf16.mxu1 %vm4676_vm3, %v4603_v6  ;;  %v3399_v16 = vld [vmem:[%s6859_s0 + $0x260] sm:$0xff]  ;;  %v3400_v18 = vld [vmem:[%s6859_s0 + $0x268] sm:$0xff]  ;;  %v24_v19 = vld [vmem:[%s6859_s0 + $0x30] sm:$0xff] }
   0x7   :  { %4259 = vmatprep.mubr.msk.f32.mxu1 %vm90_vm1, %v3395_v8  ;;  %v3401_v20 = vld [vmem:[%s6859_s0 + $0x270] sm:$0xff]  ;;  %v25_v21 = vld [vmem:[%s6859_s0 + $0x38] sm:$0xff]  ;;  %v26_v23 = vld [vmem:[%s6859_s0 + $0x40] sm:$0xff] }
   0x8   :  { %v3402_v22 = vld [vmem:[%s6859_s0 + $0x278] sm:$0xff]  ;;  %v3403_v24 = vld [vmem:[%s6859_s0 + $0x280] sm:$0xff]  ;;  %v27_v25 = vld [vmem:[%s6859_s0 + $0x48] sm:$0xff] }
   0x9   :  { %4608 = vmatpush3.bf16.msk.msra.mxu0 %vm4676_vm3, %v4603_v6  ;;  %4618 = vmatpush3.bf16.msk.msra.mxu1 %vm4676_vm3, %v4603_v6  ;;  %v3404_v26 = vld [vmem:[%s6859_s0 + $0x288] sm:$0xff]  ;;  %v28_v27 = vld [vmem:[%s6859_s0 + $0x50] sm:$0xff]  ;;  %v29_v29 = vld [vmem:[%s6859_s0 + $0x58] sm:$0xff] }
   0xa   :  { %4620 = vmatprep.subr.bf16.mxu0 %v4599_v3  ;;  %4630 = vmatprep.subr.bf16.mxu1 %v4599_v3  ;;  %v3405_v28 = vld [vmem:[%s6859_s0 + $0x290] sm:$0xff]  ;;  %v3406_v30 = vld [vmem:[%s6859_s0 + $0x298] sm:$0xff]  ;;  %v30_v31 = vld [vmem:[%s6859_s0 + $0x60] sm:$0xff] }
   0xb   :  { %v3407_v32 = vld [vmem:[%s6859_s0 + $0x2a0] sm:$0xff]  ;;  %v31_v33 = vld [vmem:[%s6859_s0 + $0x68] sm:$0xff]  ;;  %v32_v35 = vld [vmem:[%s6859_s0 + $0x70] sm:$0xff] }
   0xc   :  { %4144 = vmatmul.mubr.msk.f32.vlgmr.msra.gmra.mrb[0].mxu0 %vm90_vm1, %v19_v9  ;;  %4260 = vmatmul.mubr.msk.f32.vlgmr.msra.gmra.mrb[0].mxu1 %vm90_vm1, %v3396_v10  ;;  %v3408_v34 = vld [vmem:[%s6859_s0 + $0x2a8] sm:$0xff]  ;;  %v3409_v36 = vld [vmem:[%s6859_s0 + $0x2b0] sm:$0xff]  ;;  %v33_v37 = vld [vmem:[%s6859_s0 + $0x78] sm:$0xff] }
   0xd   :  { %4622 = vmatpush3.bf16.msra.mxu0 %v4599_v3  ;;  %4632 = vmatpush3.bf16.msra.mxu1 %v4599_v3  ;;  %v3410_v38 = vld [vmem:[%s6859_s0 + $0x2b8] sm:$0xff]  ;;  %v34_v39 = vld [vmem:[%s6859_s0 + $0x80] sm:$0xff]  ;;  %v35_v41 = vld [vmem:[%s6859_s0 + $0x88] sm:$0xff] }
   0xe   :  { %4146 = vmatprep.mubr.msk.f32.mxu0 %vm90_vm1, %v20_v11  ;;  %4262 = vmatprep.mubr.msk.f32.mxu1 %vm90_vm1, %v3397_v12  ;;  %v3411_v40 = vld [vmem:[%s6859_s0 + $0x2c0] sm:$0xff]  ;;  %v3412_v42 = vld [vmem:[%s6859_s0 + $0x2c8] sm:$0xff]  ;;  %v36_v43 = vld [vmem:[%s6859_s0 + $0x90] sm:$0xff] }
   0xf   :  { %4625 = vmatprep.subr.msk.bf16.mxu0 %vm4676_vm3, %v4603_v6  ;;  %4635 = vmatprep.subr.msk.bf16.mxu1 %vm4676_vm3, %v4603_v6  ;;  %v3413_v44 = vld [vmem:[%s6859_s0 + $0x2d0] sm:$0xff]  ;;  %v37_v45 = vld [vmem:[%s6859_s0 + $0x98] sm:$0xff]  ;;  %v38_v47 = vld [vmem:[%s6859_s0 + $0xa0] sm:$0xff] }
  0x10   :  { %4147 = vmatmul.mubr.msk.f32.gmra.mrb[2].mxu0 %vm90_vm1, %v21_v13  ;;  %4263 = vmatmul.mubr.msk.f32.gmra.mrb[2].mxu1 %vm90_vm1, %v3398_v14  ;;  %v3414_v46 = vld [vmem:[%s6859_s0 + $0x2d8] sm:$0xff]  ;;  %v3415_v48 = vld [vmem:[%s6859_s0 + $0x2e0] sm:$0xff]  ;;  %v39_v49 = vld [vmem:[%s6859_s0 + $0xa8] sm:$0xff] }
  0x11   :  { %4149 = vmatprep.mubr.msk.f32.mxu0 %vm90_vm1, %v22_v15  ;;  %4265 = vmatprep.mubr.msk.f32.mxu1 %vm90_vm1, %v3399_v16  ;;  %v3416_v50 = vld [vmem:[%s6859_s0 + $0x2e8] sm:$0xff]  ;;  %v40_v51 = vld [vmem:[%s6859_s0 + $0xb0] sm:$0xff]  ;;  %v41_v53 = vld [vmem:[%s6859_s0 + $0xb8] sm:$0xff] }
  0x12   :  { %4628 = vmatpush3.bf16.msk.msra.mxu0 %vm4676_vm3, %v4603_v6  ;;  %4638 = vmatpush3.bf16.msk.msra.mxu1 %vm4676_vm3, %v4603_v6  ;;  %v3417_v52 = vld [vmem:[%s6859_s0 + $0x2f0] sm:$0xff]  ;;  %v3418_v54 = vld [vmem:[%s6859_s0 + $0x2f8] sm:$0xff]  ;;  %v42_v55 = vld [vmem:[%s6859_s0 + $0xc0] sm:$0xff] }
  0x13   :  { %v3419_v56 = vld [vmem:[%s6859_s0 + $0x300] sm:$0xff]  ;;  %v43_v57 = vld [vmem:[%s6859_s0 + $0xc8] sm:$0xff]  ;;  %v44_v59 = vld [vmem:[%s6859_s0 + $0xd0] sm:$0xff] }
  0x14   :  { %4150 = vmatmul.mubr.msk.f32.gmra.mrb[4].mxu0 %vm90_vm1, %v23_v17  ;;  %4266 = vmatmul.mubr.msk.f32.gmra.mrb[4].mxu1 %vm90_vm1, %v3400_v18  ;;  %v3420_v58 = vld [vmem:[%s6859_s0 + $0x308] sm:$0xff]  ;;  %v3421_v60 = vld [vmem:[%s6859_s0 + $0x310] sm:$0xff]  ;;  %v45_v61 = vld [vmem:[%s6859_s0 + $0xd8] sm:$0xff] }
  0x15   :  { %4152 = vmatprep.mubr.msk.f32.mxu0 %vm90_vm1, %v24_v19  ;;  %4268 = vmatprep.mubr.msk.f32.mxu1 %vm90_vm1, %v3401_v20  ;;  %v3422_v62 = vld [vmem:[%s6859_s0 + $0x318] sm:$0xff]  ;;  %v46_v63 = vld [vmem:[%s6859_s0 + $0xe0] sm:$0xff]  ;;  %v47_v1 = vld [vmem:[%s6859_s0 + $0xe8] sm:$0xff] }
  0x16   :  { %v3423_v0 = vld [vmem:[%s6859_s0 + $0x320] sm:$0xff]  ;;  %v3424_v2 = vld [vmem:[%s6859_s0 + $0x328] sm:$0xff]  ;;  %v48_v3 = vld [vmem:[%s6859_s0 + $0xf0] sm:$0xff] }
  0x17   :  { %v3425_v4 = vld [vmem:[%s6859_s0 + $0x330] sm:$0xff]  ;;  %v49_v5 = vld [vmem:[%s6859_s0 + $0xf8] sm:$0xff]  ;;  %v50_v7 = vld [vmem:[%s6859_s0 + $0x100] sm:$0xff] }
  0x18   :  { %4153 = vmatmul.mubr.msk.f32.gmra.mrb[6].mxu0 %vm90_vm1, %v25_v21  ;;  %4269 = vmatmul.mubr.msk.f32.gmra.mrb[6].mxu1 %vm90_vm1, %v3402_v22  ;;  %v3426_v6 = vld [vmem:[%s6859_s0 + $0x338] sm:$0xff]  ;;  %v3427_v8 = vld [vmem:[%s6859_s0 + $0x340] sm:$0xff]  ;;  %v51_v9 = vld [vmem:[%s6859_s0 + $0x108] sm:$0xff] }
  0x19   :  { %4155 = vmatprep.mubr.msk.f32.mxu0 %vm90_vm1, %v26_v23  ;;  %4271 = vmatprep.mubr.msk.f32.mxu1 %vm90_vm1, %v3403_v24  ;;  %v3428_v10 = vld [vmem:[%s6859_s0 + $0x348] sm:$0xff]  ;;  %v52_v11 = vld [vmem:[%s6859_s0 + $0x110] sm:$0xff]  ;;  %v53_v13 = vld [vmem:[%s6859_s0 + $0x118] sm:$0xff] }
  0x1a   :  { %v3429_v12 = vld [vmem:[%s6859_s0 + $0x350] sm:$0xff]  ;;  %v3430_v14 = vld [vmem:[%s6859_s0 + $0x358] sm:$0xff]  ;;  %v54_v15 = vld [vmem:[%s6859_s0 + $0x120] sm:$0xff] }
  0x1b   :  { %v3431_v16 = vld [vmem:[%s6859_s0 + $0x360] sm:$0xff]  ;;  %v55_v17 = vld [vmem:[%s6859_s0 + $0x128] sm:$0xff]  ;;  %v56_v19 = vld [vmem:[%s6859_s0 + $0x130] sm:$0xff] }
  0x1c   :  { %4156 = vmatmul.mubr.msk.f32.gmra.mrb[8].mxu0 %vm90_vm1, %v27_v25  ;;  %4272 = vmatmul.mubr.msk.f32.gmra.mrb[8].mxu1 %vm90_vm1, %v3404_v26  ;;  %v3432_v18 = vld [vmem:[%s6859_s0 + $0x368] sm:$0xff]  ;;  %v3433_v20 = vld [vmem:[%s6859_s0 + $0x370] sm:$0xff]  ;;  %v57_v21 = vld [vmem:[%s6859_s0 + $0x138] sm:$0xff] }
  0x1d   :  { %4158 = vmatprep.mubr.msk.f32.mxu0 %vm90_vm1, %v28_v27  ;;  %4274 = vmatprep.mubr.msk.f32.mxu1 %vm90_vm1, %v3405_v28  ;;  %v3434_v22 = vld [vmem:[%s6859_s0 + $0x378] sm:$0xff]  ;;  %v58_v23 = vld [vmem:[%s6859_s0 + $0x140] sm:$0xff]  ;;  %v59_v25 = vld [vmem:[%s6859_s0 + $0x148] sm:$0xff] }
  0x1e   :  { %v3435_v24 = vld [vmem:[%s6859_s0 + $0x380] sm:$0xff]  ;;  %v3436_v26 = vld [vmem:[%s6859_s0 + $0x388] sm:$0xff]  ;;  %v60_v27 = vld [vmem:[%s6859_s0 + $0x150] sm:$0xff] }
  0x1f   :  { %v3437_v28 = vld [vmem:[%s6859_s0 + $0x390] sm:$0xff] }
  0x20   :  { %4159 = vmatmul.mubr.msk.f32.gmra.mrb[10].mxu0 %vm90_vm1, %v29_v29  ;;  %4275 = vmatmul.mubr.msk.f32.gmra.mrb[10].mxu1 %vm90_vm1, %v3406_v30  ;;  %v61_v29 = vld [vmem:[%s6859_s0 + $0x158] sm:$0xff] }
  0x21   :  { %4161 = vmatprep.mubr.msk.f32.mxu0 %vm90_vm1, %v30_v31  ;;  %4277 = vmatprep.mubr.msk.f32.mxu1 %vm90_vm1, %v3407_v32  ;;  %v3438_v30 = vld [vmem:[%s6859_s0 + $0x398] sm:$0xff]  ;;  %v62_v31 = vld [vmem:[%s6859_s0 + $0x160] sm:$0xff] }
  0x22   :  { %v3439_v32 = vld [vmem:[%s6859_s0 + $0x3a0] sm:$0xff] }
  0x24   :  { %4162 = vmatmul.mubr.msk.f32.gmra.mrb[12].mxu0 %vm90_vm1, %v31_v33  ;;  %4278 = vmatmul.mubr.msk.f32.gmra.mrb[12].mxu1 %vm90_vm1, %v3408_v34  ;;  %v63_v33 = vld [vmem:[%s6859_s0 + $0x168] sm:$0xff] }
  0x25   :  { %4164 = vmatprep.mubr.msk.f32.mxu0 %vm90_vm1, %v32_v35  ;;  %4280 = vmatprep.mubr.msk.f32.mxu1 %vm90_vm1, %v3409_v36  ;;  %v3440_v34 = vld [vmem:[%s6859_s0 + $0x3a8] sm:$0xff]  ;;  %v64_v35 = vld [vmem:[%s6859_s0 + $0x170] sm:$0xff] }
  0x26   :  { %v3441_v36 = vld [vmem:[%s6859_s0 + $0x3b0] sm:$0xff] }
  0x28   :  { %4165 = vmatmul.mubr.msk.f32.gmra.mrb[14].mxu0 %vm90_vm1, %v33_v37  ;;  %4281 = vmatmul.mubr.msk.f32.gmra.mrb[14].mxu1 %vm90_vm1, %v3410_v38  ;;  %v65_v37 = vld [vmem:[%s6859_s0 + $0x178] sm:$0xff] }
  0x29   :  { %4167 = vmatprep.mubr.msk.f32.mxu0 %vm90_vm1, %v34_v39  ;;  %4283 = vmatprep.mubr.msk.f32.mxu1 %vm90_vm1, %v3411_v40  ;;  %v3442_v38 = vld [vmem:[%s6859_s0 + $0x3b8] sm:$0xff]  ;;  %v66_v39 = vld [vmem:[%s6859_s0 + $0x180] sm:$0xff] }
  0x2a   :  { %v3443_v40 = vld [vmem:[%s6859_s0 + $0x3c0] sm:$0xff] }
  0x2c   :  { %4168 = vmatmul.mubr.msk.f32.gmra.mrb[16].mxu0 %vm90_vm1, %v35_v41  ;;  %4284 = vmatmul.mubr.msk.f32.gmra.mrb[16].mxu1 %vm90_vm1, %v3412_v42  ;;  %v67_v41 = vld [vmem:[%s6859_s0 + $0x188] sm:$0xff] }
  0x2d   :  { %4170 = vmatprep.mubr.msk.f32.mxu0 %vm90_vm1, %v36_v43  ;;  %4286 = vmatprep.mubr.msk.f32.mxu1 %vm90_vm1, %v3413_v44  ;;  %v3444_v42 = vld [vmem:[%s6859_s0 + $0x3c8] sm:$0xff]  ;;  %v68_v43 = vld [vmem:[%s6859_s0 + $0x190] sm:$0xff] }
  0x2e   :  { %v3445_v44 = vld [vmem:[%s6859_s0 + $0x3d0] sm:$0xff] }
  0x30   :  { %4171 = vmatmul.mubr.msk.f32.gmra.mrb[18].mxu0 %vm90_vm1, %v37_v45  ;;  %4287 = vmatmul.mubr.msk.f32.gmra.mrb[18].mxu1 %vm90_vm1, %v3414_v46  ;;  %v69_v45 = vld [vmem:[%s6859_s0 + $0x198] sm:$0xff] }
  0x31   :  { %4173 = vmatprep.mubr.msk.f32.mxu0 %vm90_vm1, %v38_v47  ;;  %4289 = vmatprep.mubr.msk.f32.mxu1 %vm90_vm1, %v3415_v48  ;;  %v3446_v46 = vld [vmem:[%s6859_s0 + $0x3d8] sm:$0xff]  ;;  %v70_v47 = vld [vmem:[%s6859_s0 + $0x1a0] sm:$0xff] }
  0x32   :  { %v3447_v48 = vld [vmem:[%s6859_s0 + $0x3e0] sm:$0xff] }
  0x34   :  { %4174 = vmatmul.mubr.msk.f32.gmra.mrb[20].mxu0 %vm90_vm1, %v39_v49  ;;  %4290 = vmatmul.mubr.msk.f32.gmra.mrb[20].mxu1 %vm90_vm1, %v3416_v50  ;;  %v71_v49 = vld [vmem:[%s6859_s0 + $0x1a8] sm:$0xff] }
  0x35   :  { %4176 = vmatprep.mubr.msk.f32.mxu0 %vm90_vm1, %v40_v51  ;;  %4292 = vmatprep.mubr.msk.f32.mxu1 %vm90_vm1, %v3417_v52  ;;  %v3448_v50 = vld [vmem:[%s6859_s0 + $0x3e8] sm:$0xff]  ;;  %v72_v51 = vld [vmem:[%s6859_s0 + $0x1b0] sm:$0xff] }
  0x36   :  { %v3449_v52 = vld [vmem:[%s6859_s0 + $0x3f0] sm:$0xff] }
  0x38   :  { %4177 = vmatmul.mubr.msk.f32.gmra.mrb[22].mxu0 %vm90_vm1, %v41_v53  ;;  %4293 = vmatmul.mubr.msk.f32.gmra.mrb[22].mxu1 %vm90_vm1, %v3418_v54  ;;  %v73_v53 = vld [vmem:[%s6859_s0 + $0x1b8] sm:$0xff] }
  0x39   :  { %4179 = vmatprep.mubr.msk.f32.mxu0 %vm90_vm1, %v42_v55  ;;  %4295 = vmatprep.mubr.msk.f32.mxu1 %vm90_vm1, %v3419_v56  ;;  %v3450_v54 = vld [vmem:[%s6859_s0 + $0x3f8] sm:$0xff]  ;;  %v74_v55 = vld [vmem:[%s6859_s0 + $0x1c0] sm:$0xff] }
  0x3a   :  { %v3451_v56 = vld [vmem:[%s6859_s0 + $0x400] sm:$0xff] }
  0x3c   :  { %4180 = vmatmul.mubr.msk.f32.gmra.mrb[24].mxu0 %vm90_vm1, %v43_v57  ;;  %4296 = vmatmul.mubr.msk.f32.gmra.mrb[24].mxu1 %vm90_vm1, %v3420_v58  ;;  %v75_v57 = vld [vmem:[%s6859_s0 + $0x1c8] sm:$0xff] }
  0x3d   :  { %4182 = vmatprep.mubr.msk.f32.mxu0 %vm90_vm1, %v44_v59  ;;  %4298 = vmatprep.mubr.msk.f32.mxu1 %vm90_vm1, %v3421_v60  ;;  %v3452_v58 = vld [vmem:[%s6859_s0 + $0x408] sm:$0xff]  ;;  %v76_v59 = vld [vmem:[%s6859_s0 + $0x1d0] sm:$0xff] }
  0x3e   :  { %v3453_v60 = vld [vmem:[%s6859_s0 + $0x410] sm:$0xff] }
  0x40   :  { %4183 = vmatmul.mubr.msk.f32.gmra.mrb[26].mxu0 %vm90_vm1, %v45_v61  ;;  %4299 = vmatmul.mubr.msk.f32.gmra.mrb[26].mxu1 %vm90_vm1, %v3422_v62  ;;  %v77_v61 = vld [vmem:[%s6859_s0 + $0x1d8] sm:$0xff] }
  0x41   :  { %4185 = vmatprep.mubr.msk.f32.mxu0 %vm90_vm1, %v46_v63  ;;  %4301 = vmatprep.mubr.msk.f32.mxu1 %vm90_vm1, %v3423_v0  ;;  %v3454_v62 = vld [vmem:[%s6859_s0 + $0x418] sm:$0xff]  ;;  %v78_v63 = vld [vmem:[%s6859_s0 + $0x1e0] sm:$0xff] }
  0x42   :  { %v3455_v0 = vld [vmem:[%s6859_s0 + $0x420] sm:$0xff] }
  0x44   :  { %4186 = vmatmul.mubr.msk.f32.gmra.mrb[28].mxu0 %vm90_vm1, %v47_v1  ;;  %4302 = vmatmul.mubr.msk.f32.gmra.mrb[28].mxu1 %vm90_vm1, %v3424_v2  ;;  %v79_v1 = vld [vmem:[%s6859_s0 + $0x1e8] sm:$0xff] }
  0x45   :  { %4188 = vmatprep.mubr.msk.f32.mxu0 %vm90_vm1, %v48_v3  ;;  %4304 = vmatprep.mubr.msk.f32.mxu1 %vm90_vm1, %v3425_v4  ;;  %v3456_v2 = vld [vmem:[%s6859_s0 + $0x428] sm:$0xff]  ;;  %v80_v3 = vld [vmem:[%s6859_s0 + $0x1f0] sm:$0xff] }
  0x46   :  { %v3457_v4 = vld [vmem:[%s6859_s0 + $0x430] sm:$0xff] }
  0x48   :  { %4189 = vmatmul.mubr.msk.f32.gmra.mrb[30].mxu0 %vm90_vm1, %v49_v5  ;;  %4305 = vmatmul.mubr.msk.f32.gmra.mrb[30].mxu1 %vm90_vm1, %v3426_v6  ;;  %v81_v5 = vld [vmem:[%s6859_s0 + $0x1f8] sm:$0xff] }
  0x49   :  { %4191 = vmatprep.mubr.msk.f32.mxu0 %vm90_vm1, %v50_v7  ;;  %4307 = vmatprep.mubr.msk.f32.mxu1 %vm90_vm1, %v3427_v8  ;;  %v3458_v6 = vld [vmem:[%s6859_s0 + $0x438] sm:$0xff]  ;;  %v82_v7 = vld [vmem:[%s6859_s0 + $0x200] sm:$0xff] }
  0x4a   :  { %v3459_v8 = vld [vmem:[%s6859_s0 + $0x440] sm:$0xff] }
  0x4c   :  { %4192 = vmatmul.mubr.msk.f32.gmra.mrb[32].mxu0 %vm90_vm1, %v51_v9  ;;  %4308 = vmatmul.mubr.msk.f32.gmra.mrb[32].mxu1 %vm90_vm1, %v3428_v10  ;;  %v83_v9 = vld [vmem:[%s6859_s0 + $0x208] sm:$0xff] }
  0x4d   :  { %4194 = vmatprep.mubr.msk.f32.mxu0 %vm90_vm1, %v52_v11  ;;  %4310 = vmatprep.mubr.msk.f32.mxu1 %vm90_vm1, %v3429_v12  ;;  %v3460_v10 = vld [vmem:[%s6859_s0 + $0x448] sm:$0xff]  ;;  %v84_v11 = vld [vmem:[%s6859_s0 + $0x210] sm:$0xff] }
  0x4e   :  { %v3461_v12 = vld [vmem:[%s6859_s0 + $0x450] sm:$0xff] }
  0x50   :  { %4195 = vmatmul.mubr.msk.f32.gmra.mrb[34].mxu0 %vm90_vm1, %v53_v13  ;;  %4311 = vmatmul.mubr.msk.f32.gmra.mrb[34].mxu1 %vm90_vm1, %v3430_v14  ;;  %v85_v13 = vld [vmem:[%s6859_s0 + $0x218] sm:$0xff] }
  0x51   :  { %4197 = vmatprep.mubr.msk.f32.mxu0 %vm90_vm1, %v54_v15  ;;  %4313 = vmatprep.mubr.msk.f32.mxu1 %vm90_vm1, %v3431_v16  ;;  %v3462_v14 = vld [vmem:[%s6859_s0 + $0x458] sm:$0xff]  ;;  %v86_v15 = vld [vmem:[%s6859_s0 + $0x220] sm:$0xff] }
  0x52   :  { %v3463_v16 = vld [vmem:[%s6859_s0 + $0x460] sm:$0xff] }
  0x54   :  { %4198 = vmatmul.mubr.msk.f32.gmra.mrb[36].mxu0 %vm90_vm1, %v55_v17  ;;  %4314 = vmatmul.mubr.msk.f32.gmra.mrb[36].mxu1 %vm90_vm1, %v3432_v18  ;;  %v87_v17 = vld [vmem:[%s6859_s0 + $0x228] sm:$0xff] }
  0x55   :  { %4200 = vmatprep.mubr.msk.f32.mxu0 %vm90_vm1, %v56_v19  ;;  %4316 = vmatprep.mubr.msk.f32.mxu1 %vm90_vm1, %v3433_v20  ;;  %v3464_v18 = vld [vmem:[%s6859_s0 + $0x468] sm:$0xff]  ;;  %v88_v19 = vld [vmem:[%s6859_s0 + $0x230] sm:$0xff] }
  0x56   :  { %v3465_v20 = vld [vmem:[%s6859_s0 + $0x470] sm:$0xff] }
  0x58   :  { %4201 = vmatmul.mubr.msk.f32.gmra.mrb[38].mxu0 %vm90_vm1, %v57_v21  ;;  %4317 = vmatmul.mubr.msk.f32.gmra.mrb[38].mxu1 %vm90_vm1, %v3434_v22  ;;  %v89_v21 = vld [vmem:[%s6859_s0 + $0x238] sm:$0xff] }
  0x59   :  { %4203 = vmatprep.mubr.msk.f32.mxu0 %vm90_vm1, %v58_v23  ;;  %4319 = vmatprep.mubr.msk.f32.mxu1 %vm90_vm1, %v3435_v24  ;;  %v3466_v22 = vld [vmem:[%s6859_s0 + $0x478] sm:$0xff]  ;;  %v3540_v23 = vld [vmem:[%s6859_s0 + $0x480] sm:$0xff] }
  0x5a   :  { %v3685_v24 = vld [vmem:[%s6859_s0 + $0x6c0] sm:$0xff] }
  0x5c   :  { %4204 = vmatmul.mubr.msk.f32.gmra.mrb[40].mxu0 %vm90_vm1, %v59_v25  ;;  %4320 = vmatmul.mubr.msk.f32.gmra.mrb[40].mxu1 %vm90_vm1, %v3436_v26  ;;  %v3541_v25 = vld [vmem:[%s6859_s0 + $0x488] sm:$0xff] }
  0x5d   :  { %4206 = vmatprep.mubr.msk.f32.mxu0 %vm90_vm1, %v60_v27  ;;  %4322 = vmatprep.mubr.msk.f32.mxu1 %vm90_vm1, %v3437_v28  ;;  %v3686_v26 = vld [vmem:[%s6859_s0 + $0x6c8] sm:$0xff]  ;;  %v3542_v27 = vld [vmem:[%s6859_s0 + $0x490] sm:$0xff] }
  0x5e   :  { %v3687_v28 = vld [vmem:[%s6859_s0 + $0x6d0] sm:$0xff] }
  0x60   :  { %4207 = vmatmul.mubr.msk.f32.gmra.mrb[42].mxu0 %vm90_vm1, %v61_v29  ;;  %4323 = vmatmul.mubr.msk.f32.gmra.mrb[42].mxu1 %vm90_vm1, %v3438_v30  ;;  %v3543_v29 = vld [vmem:[%s6859_s0 + $0x498] sm:$0xff] }
  0x61   :  { %4209 = vmatprep.mubr.msk.f32.mxu0 %vm90_vm1, %v62_v31  ;;  %4325 = vmatprep.mubr.msk.f32.mxu1 %vm90_vm1, %v3439_v32  ;;  %v3688_v30 = vld [vmem:[%s6859_s0 + $0x6d8] sm:$0xff]  ;;  %v3544_v31 = vld [vmem:[%s6859_s0 + $0x4a0] sm:$0xff] }
  0x62   :  { %v3689_v32 = vld [vmem:[%s6859_s0 + $0x6e0] sm:$0xff] }
  0x64   :  { %4210 = vmatmul.mubr.msk.f32.gmra.mrb[44].mxu0 %vm90_vm1, %v63_v33  ;;  %4326 = vmatmul.mubr.msk.f32.gmra.mrb[44].mxu1 %vm90_vm1, %v3440_v34  ;;  %v3545_v33 = vld [vmem:[%s6859_s0 + $0x4a8] sm:$0xff] }
  0x65   :  { %4212 = vmatprep.mubr.msk.f32.mxu0 %vm90_vm1, %v64_v35  ;;  %4328 = vmatprep.mubr.msk.f32.mxu1 %vm90_vm1, %v3441_v36  ;;  %v3690_v34 = vld [vmem:[%s6859_s0 + $0x6e8] sm:$0xff]  ;;  %v3546_v35 = vld [vmem:[%s6859_s0 + $0x4b0] sm:$0xff] }
  0x66   :  { %v3691_v36 = vld [vmem:[%s6859_s0 + $0x6f0] sm:$0xff] }
  0x68   :  { %4213 = vmatmul.mubr.msk.f32.gmra.mrb[46].mxu0 %vm90_vm1, %v65_v37  ;;  %4329 = vmatmul.mubr.msk.f32.gmra.mrb[46].mxu1 %vm90_vm1, %v3442_v38  ;;  %v3547_v37 = vld [vmem:[%s6859_s0 + $0x4b8] sm:$0xff] }
  0x69   :  { %4215 = vmatprep.mubr.msk.f32.mxu0 %vm90_vm1, %v66_v39  ;;  %4331 = vmatprep.mubr.msk.f32.mxu1 %vm90_vm1, %v3443_v40  ;;  %v3692_v38 = vld [vmem:[%s6859_s0 + $0x6f8] sm:$0xff]  ;;  %v3548_v39 = vld [vmem:[%s6859_s0 + $0x4c0] sm:$0xff] }
  0x6a   :  { %v3693_v40 = vld [vmem:[%s6859_s0 + $0x700] sm:$0xff] }
  0x6c   :  { %4216 = vmatmul.mubr.msk.f32.gmra.mrb[48].mxu0 %vm90_vm1, %v67_v41  ;;  %4332 = vmatmul.mubr.msk.f32.gmra.mrb[48].mxu1 %vm90_vm1, %v3444_v42  ;;  %v3549_v41 = vld [vmem:[%s6859_s0 + $0x4c8] sm:$0xff] }
  0x6d   :  { %4218 = vmatprep.mubr.msk.f32.mxu0 %vm90_vm1, %v68_v43  ;;  %4334 = vmatprep.mubr.msk.f32.mxu1 %vm90_vm1, %v3445_v44  ;;  %v3694_v42 = vld [vmem:[%s6859_s0 + $0x708] sm:$0xff]  ;;  %v3550_v43 = vld [vmem:[%s6859_s0 + $0x4d0] sm:$0xff] }
  0x6e   :  { %v3695_v44 = vld [vmem:[%s6859_s0 + $0x710] sm:$0xff] }
  0x70   :  { %4219 = vmatmul.mubr.msk.f32.gmra.mrb[50].mxu0 %vm90_vm1, %v69_v45  ;;  %4335 = vmatmul.mubr.msk.f32.gmra.mrb[50].mxu1 %vm90_vm1, %v3446_v46  ;;  %v3551_v45 = vld [vmem:[%s6859_s0 + $0x4d8] sm:$0xff] }
  0x71   :  { %4221 = vmatprep.mubr.msk.f32.mxu0 %vm90_vm1, %v70_v47  ;;  %4337 = vmatprep.mubr.msk.f32.mxu1 %vm90_vm1, %v3447_v48  ;;  %v3696_v46 = vld [vmem:[%s6859_s0 + $0x718] sm:$0xff]  ;;  %v3552_v47 = vld [vmem:[%s6859_s0 + $0x4e0] sm:$0xff] }
  0x72   :  { %v3697_v48 = vld [vmem:[%s6859_s0 + $0x720] sm:$0xff] }
  0x74   :  { %4222 = vmatmul.mubr.msk.f32.gmra.mrb[52].mxu0 %vm90_vm1, %v71_v49  ;;  %4338 = vmatmul.mubr.msk.f32.gmra.mrb[52].mxu1 %vm90_vm1, %v3448_v50  ;;  %v3553_v49 = vld [vmem:[%s6859_s0 + $0x4e8] sm:$0xff] }
  0x75   :  { %4224 = vmatprep.mubr.msk.f32.mxu0 %vm90_vm1, %v72_v51  ;;  %4340 = vmatprep.mubr.msk.f32.mxu1 %vm90_vm1, %v3449_v52  ;;  %v3698_v50 = vld [vmem:[%s6859_s0 + $0x728] sm:$0xff]  ;;  %v3554_v51 = vld [vmem:[%s6859_s0 + $0x4f0] sm:$0xff] }
  0x76   :  { %v3699_v52 = vld [vmem:[%s6859_s0 + $0x730] sm:$0xff] }
  0x78   :  { %4225 = vmatmul.mubr.msk.f32.gmra.mrb[54].mxu0 %vm90_vm1, %v73_v53  ;;  %4341 = vmatmul.mubr.msk.f32.gmra.mrb[54].mxu1 %vm90_vm1, %v3450_v54  ;;  %v3555_v53 = vld [vmem:[%s6859_s0 + $0x4f8] sm:$0xff] }
  0x79   :  { %4227 = vmatprep.mubr.msk.f32.mxu0 %vm90_vm1, %v74_v55  ;;  %4343 = vmatprep.mubr.msk.f32.mxu1 %vm90_vm1, %v3451_v56  ;;  %v3700_v54 = vld [vmem:[%s6859_s0 + $0x738] sm:$0xff]  ;;  %v3556_v55 = vld [vmem:[%s6859_s0 + $0x500] sm:$0xff] }
  0x7a   :  { %v3701_v56 = vld [vmem:[%s6859_s0 + $0x740] sm:$0xff] }
  0x7c   :  { %4228 = vmatmul.mubr.msk.f32.gmra.mrb[56].mxu0 %vm90_vm1, %v75_v57  ;;  %4344 = vmatmul.mubr.msk.f32.gmra.mrb[56].mxu1 %vm90_vm1, %v3452_v58  ;;  %v3557_v57 = vld [vmem:[%s6859_s0 + $0x508] sm:$0xff] }
  0x7d   :  { %4230 = vmatprep.mubr.msk.f32.mxu0 %vm90_vm1, %v76_v59  ;;  %4346 = vmatprep.mubr.msk.f32.mxu1 %vm90_vm1, %v3453_v60  ;;  %v3702_v58 = vld [vmem:[%s6859_s0 + $0x748] sm:$0xff]  ;;  %v3558_v59 = vld [vmem:[%s6859_s0 + $0x510] sm:$0xff] }
  0x7e   :  { %v3703_v60 = vld [vmem:[%s6859_s0 + $0x750] sm:$0xff] }
  0x80   :  { %4231 = vmatmul.mubr.msk.f32.gmra.mrb[58].mxu0 %vm90_vm1, %v77_v61  ;;  %4347 = vmatmul.mubr.msk.f32.gmra.mrb[58].mxu1 %vm90_vm1, %v3454_v62  ;;  %v3559_v61 = vld [vmem:[%s6859_s0 + $0x518] sm:$0xff] }
  0x81   :  { %4233 = vmatprep.mubr.msk.f32.mxu0 %vm90_vm1, %v78_v63  ;;  %4349 = vmatprep.mubr.msk.f32.mxu1 %vm90_vm1, %v3455_v0  ;;  %v3704_v62 = vld [vmem:[%s6859_s0 + $0x758] sm:$0xff]  ;;  %v3560_v63 = vld [vmem:[%s6859_s0 + $0x520] sm:$0xff] }
  0x82   :  { %v3705_v0 = vld [vmem:[%s6859_s0 + $0x760] sm:$0xff] }
  0x84   :  { %4234 = vmatmul.mubr.msk.f32.gmra.mrb[60].mxu0 %vm90_vm1, %v79_v1  ;;  %4350 = vmatmul.mubr.msk.f32.gmra.mrb[60].mxu1 %vm90_vm1, %v3456_v2  ;;  %v3561_v1 = vld [vmem:[%s6859_s0 + $0x528] sm:$0xff] }
  0x85   :  { %4236 = vmatprep.mubr.msk.f32.mxu0 %vm90_vm1, %v80_v3  ;;  %4352 = vmatprep.mubr.msk.f32.mxu1 %vm90_vm1, %v3457_v4  ;;  %v3706_v2 = vld [vmem:[%s6859_s0 + $0x768] sm:$0xff]  ;;  %v3562_v3 = vld [vmem:[%s6859_s0 + $0x530] sm:$0xff] }
  0x86   :  { %v3707_v4 = vld [vmem:[%s6859_s0 + $0x770] sm:$0xff] }
  0x88   :  { %4237 = vmatmul.mubr.msk.f32.gmra.mrb[62].mxu0 %vm90_vm1, %v81_v5  ;;  %4353 = vmatmul.mubr.msk.f32.gmra.mrb[62].mxu1 %vm90_vm1, %v3458_v6  ;;  %v3563_v5 = vld [vmem:[%s6859_s0 + $0x538] sm:$0xff] }
  0x89   :  { %4239 = vmatprep.mubr.msk.f32.mxu0 %vm90_vm1, %v82_v7  ;;  %4355 = vmatprep.mubr.msk.f32.mxu1 %vm90_vm1, %v3459_v8  ;;  %v3708_v6 = vld [vmem:[%s6859_s0 + $0x778] sm:$0xff]  ;;  %v3564_v7 = vld [vmem:[%s6859_s0 + $0x540] sm:$0xff] }
  0x8a   :  { %v3709_v8 = vld [vmem:[%s6859_s0 + $0x780] sm:$0xff] }
  0x8c   :  { %4240 = vmatmul.mubr.msk.f32.gmra.mrb[64].mxu0 %vm90_vm1, %v83_v9  ;;  %4356 = vmatmul.mubr.msk.f32.gmra.mrb[64].mxu1 %vm90_vm1, %v3460_v10  ;;  %v3565_v9 = vld [vmem:[%s6859_s0 + $0x548] sm:$0xff] }
  0x8d   :  { %4242 = vmatprep.mubr.msk.f32.mxu0 %vm90_vm1, %v84_v11  ;;  %4358 = vmatprep.mubr.msk.f32.mxu1 %vm90_vm1, %v3461_v12  ;;  %v3710_v10 = vld [vmem:[%s6859_s0 + $0x788] sm:$0xff]  ;;  %v3566_v11 = vld [vmem:[%s6859_s0 + $0x550] sm:$0xff] }
  0x8e   :  { %v3711_v12 = vld [vmem:[%s6859_s0 + $0x790] sm:$0xff] }
  0x90   :  { %4243 = vmatmul.mubr.msk.f32.gmra.mrb[66].mxu0 %vm90_vm1, %v85_v13  ;;  %4359 = vmatmul.mubr.msk.f32.gmra.mrb[66].mxu1 %vm90_vm1, %v3462_v14  ;;  %v3567_v13 = vld [vmem:[%s6859_s0 + $0x558] sm:$0xff] }
  0x91   :  { %4245 = vmatprep.mubr.msk.f32.mxu0 %vm90_vm1, %v86_v15  ;;  %4361 = vmatprep.mubr.msk.f32.mxu1 %vm90_vm1, %v3463_v16  ;;  %v3712_v14 = vld [vmem:[%s6859_s0 + $0x798] sm:$0xff]  ;;  %v3568_v15 = vld [vmem:[%s6859_s0 + $0x560] sm:$0xff] }
  0x92   :  { %v3713_v16 = vld [vmem:[%s6859_s0 + $0x7a0] sm:$0xff] }
  0x94   :  { %4246 = vmatmul.mubr.msk.f32.gmra.mrb[68].mxu0 %vm90_vm1, %v87_v17  ;;  %4362 = vmatmul.mubr.msk.f32.gmra.mrb[68].mxu1 %vm90_vm1, %v3464_v18  ;;  %v3569_v17 = vld [vmem:[%s6859_s0 + $0x568] sm:$0xff] }
  0x95   :  { %4248 = vmatprep.mubr.msk.f32.mxu0 %vm90_vm1, %v88_v19  ;;  %4364 = vmatprep.mubr.msk.f32.mxu1 %vm90_vm1, %v3465_v20  ;;  %v3714_v18 = vld [vmem:[%s6859_s0 + $0x7a8] sm:$0xff]  ;;  %v3570_v19 = vld [vmem:[%s6859_s0 + $0x570] sm:$0xff] }
  0x96   :  { %v3715_v20 = vld [vmem:[%s6859_s0 + $0x7b0] sm:$0xff] }
  0x98   :  { %4249 = vmatmul.mubr.msk.f32.gmra.mrb[70].mxu0 %vm90_vm1, %v89_v21  ;;  %4365 = vmatmul.mubr.msk.f32.gmra.mrb[70].mxu1 %vm90_vm1, %v3466_v22  ;;  %v3571_v21 = vld [vmem:[%s6859_s0 + $0x578] sm:$0xff] }
  0x99   :  { %4375 = vmatprep.mubr.msk.f32.mxu0 %vm90_vm1, %v3540_v23  ;;  %4491 = vmatprep.mubr.msk.f32.mxu1 %vm90_vm1, %v3685_v24  ;;  %v3716_v22 = vld [vmem:[%s6859_s0 + $0x7b8] sm:$0xff]  ;;  %v3572_v23 = vld [vmem:[%s6859_s0 + $0x580] sm:$0xff] }
  0x9a   :  { %v3717_v24 = vld [vmem:[%s6859_s0 + $0x7c0] sm:$0xff] }
  0x9c   :  { %4376 = vmatmul.mubr.msk.f32.vlgmr.msra.gmra.mrb[72].mxu0 %vm90_vm1, %v3541_v25  ;;  %4492 = vmatmul.mubr.msk.f32.vlgmr.msra.gmra.mrb[72].mxu1 %vm90_vm1, %v3686_v26  ;;  %v3573_v25 = vld [vmem:[%s6859_s0 + $0x588] sm:$0xff] }
  0x9d   :  { %4378 = vmatprep.mubr.msk.f32.mxu0 %vm90_vm1, %v3542_v27  ;;  %4494 = vmatprep.mubr.msk.f32.mxu1 %vm90_vm1, %v3687_v28  ;;  %v3718_v26 = vld [vmem:[%s6859_s0 + $0x7c8] sm:$0xff]  ;;  %v3574_v27 = vld [vmem:[%s6859_s0 + $0x590] sm:$0xff] }
  0x9e   :  { %v3719_v28 = vld [vmem:[%s6859_s0 + $0x7d0] sm:$0xff] }
  0xa0   :  { %4379 = vmatmul.mubr.msk.f32.gmra.mrb[74].mxu0 %vm90_vm1, %v3543_v29  ;;  %4495 = vmatmul.mubr.msk.f32.gmra.mrb[74].mxu1 %vm90_vm1, %v3688_v30  ;;  %v3575_v29 = vld [vmem:[%s6859_s0 + $0x598] sm:$0xff] }
  0xa1   :  { %4381 = vmatprep.mubr.msk.f32.mxu0 %vm90_vm1, %v3544_v31  ;;  %4497 = vmatprep.mubr.msk.f32.mxu1 %vm90_vm1, %v3689_v32  ;;  %v3720_v30 = vld [vmem:[%s6859_s0 + $0x7d8] sm:$0xff]  ;;  %v3576_v31 = vld [vmem:[%s6859_s0 + $0x5a0] sm:$0xff] }
  0xa2   :  { %v3721_v32 = vld [vmem:[%s6859_s0 + $0x7e0] sm:$0xff] }
  0xa4   :  { %4382 = vmatmul.mubr.msk.f32.gmra.mrb[76].mxu0 %vm90_vm1, %v3545_v33  ;;  %4498 = vmatmul.mubr.msk.f32.gmra.mrb[76].mxu1 %vm90_vm1, %v3690_v34 }
  0xa5   :  { %4384 = vmatprep.mubr.msk.f32.mxu0 %vm90_vm1, %v3546_v35  ;;  %4500 = vmatprep.mubr.msk.f32.mxu1 %vm90_vm1, %v3691_v36 }
  0xa8   :  { %4385 = vmatmul.mubr.msk.f32.gmra.mrb[78].mxu0 %vm90_vm1, %v3547_v37  ;;  %4501 = vmatmul.mubr.msk.f32.gmra.mrb[78].mxu1 %vm90_vm1, %v3692_v38  ;;  %v3603_v38 = vld [vmem:[%s6859_s0 + $0x678] sm:$0xff] }
  0xa9   :  { %4387 = vmatprep.mubr.msk.f32.mxu0 %vm90_vm1, %v3548_v39  ;;  %4503 = vmatprep.mubr.msk.f32.mxu1 %vm90_vm1, %v3693_v40  ;;  %v3577_v39 = vld [vmem:[%s6859_s0 + $0x5a8] sm:$0xff] }
  0xaa   :  { %v3722_v40 = vld [vmem:[%s6859_s0 + $0x7e8] sm:$0xff] }
  0xac   :  { %4388 = vmatmul.mubr.msk.f32.gmra.mrb[80].mxu0 %vm90_vm1, %v3549_v41  ;;  %4504 = vmatmul.mubr.msk.f32.gmra.mrb[80].mxu1 %vm90_vm1, %v3694_v42  ;;  %v3578_v41 = vld [vmem:[%s6859_s0 + $0x5b0] sm:$0xff] }
  0xad   :  { %4390 = vmatprep.mubr.msk.f32.mxu0 %vm90_vm1, %v3550_v43  ;;  %4506 = vmatprep.mubr.msk.f32.mxu1 %vm90_vm1, %v3695_v44  ;;  %v3723_v42 = vld [vmem:[%s6859_s0 + $0x7f0] sm:$0xff] }
  0xb0   :  { %4391 = vmatmul.mubr.msk.f32.gmra.mrb[82].mxu0 %vm90_vm1, %v3551_v45  ;;  %4507 = vmatmul.mubr.msk.f32.gmra.mrb[82].mxu1 %vm90_vm1, %v3696_v46 }
  0xb1   :  { %4393 = vmatprep.mubr.msk.f32.mxu0 %vm90_vm1, %v3552_v47  ;;  %4509 = vmatprep.mubr.msk.f32.mxu1 %vm90_vm1, %v3697_v48 }
  0xb4   :  { %4394 = vmatmul.mubr.msk.f32.gmra.mrb[84].mxu0 %vm90_vm1, %v3553_v49  ;;  %4510 = vmatmul.mubr.msk.f32.gmra.mrb[84].mxu1 %vm90_vm1, %v3698_v50  ;;  %v3579_v49 = vld [vmem:[%s6859_s0 + $0x5b8] sm:$0xff] }
  0xb5   :  { %4396 = vmatprep.mubr.msk.f32.mxu0 %vm90_vm1, %v3554_v51  ;;  %4512 = vmatprep.mubr.msk.f32.mxu1 %vm90_vm1, %v3699_v52  ;;  %v3724_v50 = vld [vmem:[%s6859_s0 + $0x7f8] sm:$0xff]  ;;  %v3580_v51 = vld [vmem:[%s6859_s0 + $0x5c0] sm:$0xff] }
  0xb6   :  { %v3725_v52 = vld [vmem:[%s6859_s0 + $0x800] sm:$0xff] }
  0xb8   :  { %4397 = vmatmul.mubr.msk.f32.gmra.mrb[86].mxu0 %vm90_vm1, %v3555_v53  ;;  %4513 = vmatmul.mubr.msk.f32.gmra.mrb[86].mxu1 %vm90_vm1, %v3700_v54 }
  0xb9   :  { %4399 = vmatprep.mubr.msk.f32.mxu0 %vm90_vm1, %v3556_v55  ;;  %4515 = vmatprep.mubr.msk.f32.mxu1 %vm90_vm1, %v3701_v56 }
  0xbc   :  { %4400 = vmatmul.mubr.msk.f32.gmra.mrb[88].mxu0 %vm90_vm1, %v3557_v57  ;;  %4516 = vmatmul.mubr.msk.f32.gmra.mrb[88].mxu1 %vm90_vm1, %v3702_v58  ;;  %v3601_v58 = vld [vmem:[%s6859_s0 + $0x668] sm:$0xff] }
  0xbd   :  { %4402 = vmatprep.mubr.msk.f32.mxu0 %vm90_vm1, %v3558_v59  ;;  %4518 = vmatprep.mubr.msk.f32.mxu1 %vm90_vm1, %v3703_v60  ;;  %v3581_v59 = vld [vmem:[%s6859_s0 + $0x5c8] sm:$0xff] }
  0xbe   :  { %v3726_v60 = vld [vmem:[%s6859_s0 + $0x808] sm:$0xff] }
  0xc0   :  { %4403 = vmatmul.mubr.msk.f32.gmra.mrb[90].mxu0 %vm90_vm1, %v3559_v61  ;;  %4519 = vmatmul.mubr.msk.f32.gmra.mrb[90].mxu1 %vm90_vm1, %v3704_v62  ;;  %v3582_v61 = vld [vmem:[%s6859_s0 + $0x5d0] sm:$0xff] }
  0xc1   :  { %4405 = vmatprep.mubr.msk.f32.mxu0 %vm90_vm1, %v3560_v63  ;;  %4521 = vmatprep.mubr.msk.f32.mxu1 %vm90_vm1, %v3705_v0  ;;  %v3727_v62 = vld [vmem:[%s6859_s0 + $0x810] sm:$0xff] }
  0xc4   :  { %4406 = vmatmul.mubr.msk.f32.gmra.mrb[92].mxu0 %vm90_vm1, %v3561_v1  ;;  %4522 = vmatmul.mubr.msk.f32.gmra.mrb[92].mxu1 %vm90_vm1, %v3706_v2 }
  0xc5   :  { %4408 = vmatprep.mubr.msk.f32.mxu0 %vm90_vm1, %v3562_v3  ;;  %4524 = vmatprep.mubr.msk.f32.mxu1 %vm90_vm1, %v3707_v4 }
  0xc8   :  { %4409 = vmatmul.mubr.msk.f32.gmra.mrb[94].mxu0 %vm90_vm1, %v3563_v5  ;;  %4525 = vmatmul.mubr.msk.f32.gmra.mrb[94].mxu1 %vm90_vm1, %v3708_v6  ;;  %v3583_v5 = vld [vmem:[%s6859_s0 + $0x5d8] sm:$0xff] }
  0xc9   :  { %4411 = vmatprep.mubr.msk.f32.mxu0 %vm90_vm1, %v3564_v7  ;;  %4527 = vmatprep.mubr.msk.f32.mxu1 %vm90_vm1, %v3709_v8  ;;  %v3728_v6 = vld [vmem:[%s6859_s0 + $0x818] sm:$0xff]  ;;  %v3584_v7 = vld [vmem:[%s6859_s0 + $0x5e0] sm:$0xff] }
  0xca   :  { %v3729_v8 = vld [vmem:[%s6859_s0 + $0x820] sm:$0xff] }
  0xcc   :  { %4412 = vmatmul.mubr.msk.f32.gmra.mrb[96].mxu0 %vm90_vm1, %v3565_v9  ;;  %4528 = vmatmul.mubr.msk.f32.gmra.mrb[96].mxu1 %vm90_vm1, %v3710_v10 }
  0xcd   :  { %4414 = vmatprep.mubr.msk.f32.mxu0 %vm90_vm1, %v3566_v11  ;;  %4530 = vmatprep.mubr.msk.f32.mxu1 %vm90_vm1, %v3711_v12 }
  0xd0   :  { %4415 = vmatmul.mubr.msk.f32.gmra.mrb[98].mxu0 %vm90_vm1, %v3567_v13  ;;  %4531 = vmatmul.mubr.msk.f32.gmra.mrb[98].mxu1 %vm90_vm1, %v3712_v14  ;;  %v3599_v14 = vld [vmem:[%s6859_s0 + $0x658] sm:$0xff] }
  0xd1   :  { %4417 = vmatprep.mubr.msk.f32.mxu0 %vm90_vm1, %v3568_v15  ;;  %4533 = vmatprep.mubr.msk.f32.mxu1 %vm90_vm1, %v3713_v16  ;;  %v3585_v15 = vld [vmem:[%s6859_s0 + $0x5e8] sm:$0xff] }
  0xd2   :  { %v3730_v16 = vld [vmem:[%s6859_s0 + $0x828] sm:$0xff] }
  0xd4   :  { %4418 = vmatmul.mubr.msk.f32.gmra.mrb[100].mxu0 %vm90_vm1, %v3569_v17  ;;  %4534 = vmatmul.mubr.msk.f32.gmra.mrb[100].mxu1 %vm90_vm1, %v3714_v18  ;;  %v3586_v17 = vld [vmem:[%s6859_s0 + $0x5f0] sm:$0xff] }
  0xd5   :  { %4420 = vmatprep.mubr.msk.f32.mxu0 %vm90_vm1, %v3570_v19  ;;  %4536 = vmatprep.mubr.msk.f32.mxu1 %vm90_vm1, %v3715_v20  ;;  %v3731_v18 = vld [vmem:[%s6859_s0 + $0x830] sm:$0xff] }
  0xd8   :  { %4421 = vmatmul.mubr.msk.f32.gmra.mrb[102].mxu0 %vm90_vm1, %v3571_v21  ;;  %4537 = vmatmul.mubr.msk.f32.gmra.mrb[102].mxu1 %vm90_vm1, %v3716_v22 }
  0xd9   :  { %4423 = vmatprep.mubr.msk.f32.mxu0 %vm90_vm1, %v3572_v23  ;;  %4539 = vmatprep.mubr.msk.f32.mxu1 %vm90_vm1, %v3717_v24 }
  0xdc   :  { %4424 = vmatmul.mubr.msk.f32.gmra.mrb[104].mxu0 %vm90_vm1, %v3573_v25  ;;  %4540 = vmatmul.mubr.msk.f32.gmra.mrb[104].mxu1 %vm90_vm1, %v3718_v26  ;;  %v3587_v25 = vld [vmem:[%s6859_s0 + $0x5f8] sm:$0xff] }
  0xdd   :  { %4426 = vmatprep.mubr.msk.f32.mxu0 %vm90_vm1, %v3574_v27  ;;  %4542 = vmatprep.mubr.msk.f32.mxu1 %vm90_vm1, %v3719_v28  ;;  %v3732_v26 = vld [vmem:[%s6859_s0 + $0x838] sm:$0xff]  ;;  %v3588_v27 = vld [vmem:[%s6859_s0 + $0x600] sm:$0xff] }
  0xde   :  { %v3733_v28 = vld [vmem:[%s6859_s0 + $0x840] sm:$0xff] }
  0xdf   :  { %v5561_v33 = vpop.f32.mrb[0].mxu0  ;;  %v5563_v34 = vpop.f32.mrb[0].mxu1 }
  0xe0   :  { %v5567_v36 = vpop.f32.mrb[1].mxu0  ;;  %v5569_v37 = vpop.f32.mrb[1].mxu1  ;;  %4427 = vmatmul.mubr.msk.f32.gmra.mrb[106].mxu0 %vm90_vm1, %v3575_v29  ;;  %4543 = vmatmul.mubr.msk.f32.gmra.mrb[106].mxu1 %vm90_vm1, %v3720_v30 }
  0xe1   :  { %4429 = vmatprep.mubr.msk.f32.mxu0 %vm90_vm1, %v3576_v31  ;;  %4545 = vmatprep.mubr.msk.f32.mxu1 %vm90_vm1, %v3721_v32 }
  0xe3   :  { %v5589_v43 = vpop.f32.mrb[2].mxu0  ;;  %v5591_v44 = vpop.f32.mrb[2].mxu1 }
  0xe4   :  { %v5595_v46 = vpop.f32.mrb[3].mxu0  ;;  %v5597_v47 = vpop.f32.mrb[3].mxu1  ;;  %4430 = vmatmul.mubr.msk.f32.gmra.mrb[108].mxu0 %vm90_vm1, %v3577_v39  ;;  %4546 = vmatmul.mubr.msk.f32.gmra.mrb[108].mxu1 %vm90_vm1, %v3722_v40  ;;  %v3597_v40 = vld [vmem:[%s6859_s0 + $0x648] sm:$0xff] }
  0xe5   :  { %4432 = vmatprep.mubr.msk.f32.mxu0 %vm90_vm1, %v3578_v41  ;;  %4548 = vmatprep.mubr.msk.f32.mxu1 %vm90_vm1, %v3723_v42  ;;  %v3589_v41 = vld [vmem:[%s6859_s0 + $0x608] sm:$0xff] }
  0xe6   :  { %v3734_v42 = vld [vmem:[%s6859_s0 + $0x848] sm:$0xff] }
  0xe7   :  { %v5617_v53 = vpop.f32.mrb[4].mxu0  ;;  %v5619_v54 = vpop.f32.mrb[4].mxu1 }
  0xe8   :  { %v5623_v56 = vpop.f32.mrb[5].mxu0  ;;  %v5625_v57 = vpop.f32.mrb[5].mxu1  ;;  %4433 = vmatmul.mubr.msk.f32.gmra.mrb[110].mxu0 %vm90_vm1, %v3579_v49  ;;  %4549 = vmatmul.mubr.msk.f32.gmra.mrb[110].mxu1 %vm90_vm1, %v3724_v50  ;;  %v3590_v49 = vld [vmem:[%s6859_s0 + $0x610] sm:$0xff] }
  0xe9   :  { %4435 = vmatprep.mubr.msk.f32.mxu0 %vm90_vm1, %v3580_v51  ;;  %4551 = vmatprep.mubr.msk.f32.mxu1 %vm90_vm1, %v3725_v52  ;;  %v3735_v50 = vld [vmem:[%s6859_s0 + $0x850] sm:$0xff] }
  0xeb   :  { %v5645_v63 = vpop.f32.mrb[6].mxu0  ;;  %v5647_v0 = vpop.f32.mrb[6].mxu1 }
  0xec   :  { %v5651_v2 = vpop.f32.mrb[7].mxu0  ;;  %v5653_v3 = vpop.f32.mrb[7].mxu1  ;;  %4436 = vmatmul.mubr.msk.f32.gmra.mrb[112].mxu0 %vm90_vm1, %v3581_v59  ;;  %4552 = vmatmul.mubr.msk.f32.gmra.mrb[112].mxu1 %vm90_vm1, %v3726_v60 }
  0xed   :  { %4438 = vmatprep.mubr.msk.f32.mxu0 %vm90_vm1, %v3582_v61  ;;  %4554 = vmatprep.mubr.msk.f32.mxu1 %vm90_vm1, %v3727_v62 }
  0xef   :  { %v5673_v9 = vpop.f32.mrb[8].mxu0  ;;  %v5675_v10 = vpop.f32.mrb[8].mxu1 }
  0xf0   :  { %v5679_v12 = vpop.f32.mrb[9].mxu0  ;;  %v5681_v13 = vpop.f32.mrb[9].mxu1  ;;  %4439 = vmatmul.mubr.msk.f32.gmra.mrb[114].mxu0 %vm90_vm1, %v3583_v5  ;;  %4555 = vmatmul.mubr.msk.f32.gmra.mrb[114].mxu1 %vm90_vm1, %v3728_v6  ;;  %v3591_v5 = vld [vmem:[%s6859_s0 + $0x618] sm:$0xff] }
  0xf1   :  { %4441 = vmatprep.mubr.msk.f32.mxu0 %vm90_vm1, %v3584_v7  ;;  %4557 = vmatprep.mubr.msk.f32.mxu1 %vm90_vm1, %v3729_v8  ;;  %v3736_v6 = vld [vmem:[%s6859_s0 + $0x858] sm:$0xff]  ;;  %v3592_v7 = vld [vmem:[%s6859_s0 + $0x620] sm:$0xff] }
  0xf2   :  { %v3737_v8 = vld [vmem:[%s6859_s0 + $0x860] sm:$0xff] }
  0xf3   :  { %v5701_v19 = vpop.f32.mrb[10].mxu0  ;;  %v5703_v20 = vpop.f32.mrb[10].mxu1 }
  0xf4   :  { %v5707_v22 = vpop.f32.mrb[11].mxu0  ;;  %v5709_v23 = vpop.f32.mrb[11].mxu1  ;;  %4442 = vmatmul.mubr.msk.f32.gmra.mrb[116].mxu0 %vm90_vm1, %v3585_v15  ;;  %4558 = vmatmul.mubr.msk.f32.gmra.mrb[116].mxu1 %vm90_vm1, %v3730_v16 }
  0xf5   :  { %4444 = vmatprep.mubr.msk.f32.mxu0 %vm90_vm1, %v3586_v17  ;;  %4560 = vmatprep.mubr.msk.f32.mxu1 %vm90_vm1, %v3731_v18 }
  0xf7   :  { %v5729_v29 = vpop.f32.mrb[12].mxu0  ;;  %v5731_v30 = vpop.f32.mrb[12].mxu1 }
  0xf8   :  { %v5735_v32 = vpop.f32.mrb[13].mxu0  ;;  %v5737_v39 = vpop.f32.mrb[13].mxu1  ;;  %4445 = vmatmul.mubr.msk.f32.gmra.mrb[118].mxu0 %vm90_vm1, %v3587_v25  ;;  %4561 = vmatmul.mubr.msk.f32.gmra.mrb[118].mxu1 %vm90_vm1, %v3732_v26  ;;  %v3595_v26 = vld [vmem:[%s6859_s0 + $0x638] sm:$0xff] }
  0xf9   :  { %4447 = vmatprep.mubr.msk.f32.mxu0 %vm90_vm1, %v3588_v27  ;;  %4563 = vmatprep.mubr.msk.f32.mxu1 %vm90_vm1, %v3733_v28  ;;  %v3593_v27 = vld [vmem:[%s6859_s0 + $0x628] sm:$0xff] }
  0xfa   :  { %v3738_v28 = vld [vmem:[%s6859_s0 + $0x868] sm:$0xff] }
  0xfb   :  { %v5757_v51 = vpop.f32.mrb[14].mxu0  ;;  %v5759_v52 = vpop.f32.mrb[14].mxu1 }
  0xfc   :  { %v5763_v60 = vpop.f32.mrb[15].mxu0  ;;  %v5765_v61 = vpop.f32.mrb[15].mxu1  ;;  %4448 = vmatmul.mubr.msk.f32.gmra.mrb[120].mxu0 %vm90_vm1, %v3589_v41  ;;  %4564 = vmatmul.mubr.msk.f32.gmra.mrb[120].mxu1 %vm90_vm1, %v3734_v42  ;;  %v3594_v41 = vld [vmem:[%s6859_s0 + $0x630] sm:$0xff] }
  0xfd   :  { %4450 = vmatprep.mubr.msk.f32.mxu0 %vm90_vm1, %v3590_v49  ;;  %4566 = vmatprep.mubr.msk.f32.mxu1 %vm90_vm1, %v3735_v50  ;;  %v3739_v42 = vld [vmem:[%s6859_s0 + $0x870] sm:$0xff] }
  0xff   :  { %v5785_v15 = vpop.f32.mrb[16].mxu0  ;;  %v5787_v16 = vpop.f32.mrb[16].mxu1 }
 0x100   :  { %v5791_v18 = vpop.f32.mrb[17].mxu0  ;;  %v5793_v25 = vpop.f32.mrb[17].mxu1  ;;  %4451 = vmatmul.mubr.msk.f32.gmra.mrb[122].mxu0 %vm90_vm1, %v3591_v5  ;;  %4567 = vmatmul.mubr.msk.f32.gmra.mrb[122].mxu1 %vm90_vm1, %v3736_v6  ;;  %v3740_v5 = vld [vmem:[%s6859_s0 + $0x878] sm:$0xff] }
 0x101   :  { %4453 = vmatprep.mubr.msk.f32.mxu0 %vm90_vm1, %v3592_v7  ;;  %4569 = vmatprep.mubr.msk.f32.mxu1 %vm90_vm1, %v3737_v8 }
 0x103   :  { %v5813_v49 = vpop.f32.mrb[18].mxu0  ;;  %v5815_v50 = vpop.f32.mrb[18].mxu1 }
 0x104   :  { %v5819_v6 = vpop.f32.mrb[19].mxu0  ;;  %v5821_v7 = vpop.f32.mrb[19].mxu1  ;;  %4454 = vmatmul.mubr.msk.f32.gmra.mrb[124].mxu0 %vm90_vm1, %v3593_v27  ;;  %4570 = vmatmul.mubr.msk.f32.gmra.mrb[124].mxu1 %vm90_vm1, %v3738_v28  ;;  %v3596_v27 = vld [vmem:[%s6859_s0 + $0x640] sm:$0xff] }
 0x105   :  { %4456 = vmatprep.mubr.msk.f32.mxu0 %vm90_vm1, %v3594_v41  ;;  %4572 = vmatprep.mubr.msk.f32.mxu1 %vm90_vm1, %v3739_v42  ;;  %v3741_v28 = vld [vmem:[%s6859_s0 + $0x880] sm:$0xff]  ;;  %v3742_v42 = vld [vmem:[%s6859_s0 + $0x888] sm:$0xff] }
 0x107   :  { %v5841_v8 = vpop.f32.mrb[20].mxu0  ;;  %v5843_v41 = vpop.f32.mrb[20].mxu1 }
 0x108   :  { %v5847_v17 = vpop.f32.mrb[21].mxu0  ;;  %v5849_v62 = vpop.f32.mrb[21].mxu1  ;;  %4457 = vmatmul.mubr.msk.f32.gmra.mrb[126].mxu0 %vm90_vm1, %v3595_v26  ;;  %4573 = vmatmul.mubr.msk.f32.gmra.mrb[126].mxu1 %vm90_vm1, %v3740_v5  ;;  %v3598_v26 = vld [vmem:[%s6859_s0 + $0x650] sm:$0xff] }
 0x109   :  { %4459 = vmatprep.mubr.msk.f32.mxu0 %vm90_vm1, %v3596_v27  ;;  %4575 = vmatprep.mubr.msk.f32.mxu1 %vm90_vm1, %v3741_v28  ;;  %v3743_v5 = vld [vmem:[%s6859_s0 + $0x890] sm:$0xff]  ;;  %v3744_v28 = vld [vmem:[%s6859_s0 + $0x898] sm:$0xff] }
 0x10b   :  { %v5869_v59 = vpop.f32.mrb[22].mxu0  ;;  %v5871_v27 = vpop.f32.mrb[22].mxu1 }
 0x10c   :  { %v5875_v31 = vpop.f32.mrb[23].mxu0  ;;  %v5877_v24 = vpop.f32.mrb[23].mxu1  ;;  %4460 = vmatmul.mubr.msk.f32.gmra.mrb[128].mxu0 %vm90_vm1, %v3597_v40  ;;  %4576 = vmatmul.mubr.msk.f32.gmra.mrb[128].mxu1 %vm90_vm1, %v3742_v42  ;;  %v3600_v40 = vld [vmem:[%s6859_s0 + $0x660] sm:$0xff] }
 0x10d   :  { %6961 = vst [vmem:[#allocation2_spill] sm:$0xff] %v5877_v24  ;;  %4462 = vmatprep.mubr.msk.f32.mxu0 %vm90_vm1, %v3598_v26  ;;  %4578 = vmatprep.mubr.msk.f32.mxu1 %vm90_vm1, %v3743_v5  ;;  %v3745_v42 = vld [vmem:[%s6859_s0 + $0x8a0] sm:$0xff]  ;;  %v3746_v5 = vld [vmem:[%s6859_s0 + $0x8a8] sm:$0xff] }
 0x10f   :  { %v5897_v21 = vpop.f32.mrb[24].mxu0  ;;  %v5899_v26 = vpop.f32.mrb[24].mxu1 }
 0x110   :  { %6962 = vst [vmem:[#allocation3_spill] sm:$0xff] %v5897_v21  ;;  %6963 = vst [vmem:[#allocation4_spill] sm:$0xff] %v5899_v26  ;;  %v5903_v11 = vpop.f32.mrb[25].mxu0  ;;  %v5905_v4 = vpop.f32.mrb[25].mxu1  ;;  %4463 = vmatmul.mubr.msk.f32.gmra.mrb[130].mxu0 %vm90_vm1, %v3599_v14  ;;  %4579 = vmatmul.mubr.msk.f32.gmra.mrb[130].mxu1 %vm90_vm1, %v3744_v28  ;;  %v3602_v14 = vld [vmem:[%s6859_s0 + $0x670] sm:$0xff] }
 0x111   :  { %6964 = vst [vmem:[#allocation5_spill] sm:$0xff] %v5903_v11  ;;  %6965 = vst [vmem:[#allocation6_spill] sm:$0xff] %v5905_v4  ;;  %4465 = vmatprep.mubr.msk.f32.mxu0 %vm90_vm1, %v3600_v40  ;;  %4581 = vmatprep.mubr.msk.f32.mxu1 %vm90_vm1, %v3745_v42  ;;  %v3747_v28 = vld [vmem:[%s6859_s0 + $0x8b0] sm:$0xff]  ;;  %v3748_v42 = vld [vmem:[%s6859_s0 + $0x8b8] sm:$0xff] }
 0x113   :  { %v5925_v1 = vpop.f32.mrb[26].mxu0  ;;  %v5927_v40 = vpop.f32.mrb[26].mxu1 }
 0x114   :  { %6966 = vst [vmem:[#allocation7_spill] sm:$0xff] %v5925_v1  ;;  %6967 = vst [vmem:[#allocation8_spill] sm:$0xff] %v5927_v40  ;;  %v5931_v55 = vpop.f32.mrb[27].mxu0  ;;  %v5933_v48 = vpop.f32.mrb[27].mxu1  ;;  %4466 = vmatmul.mubr.msk.f32.gmra.mrb[132].mxu0 %vm90_vm1, %v3601_v58  ;;  %4582 = vmatmul.mubr.msk.f32.gmra.mrb[132].mxu1 %vm90_vm1, %v3746_v5  ;;  %v3604_v58 = vld [vmem:[%s6859_s0 + $0x680] sm:$0xff]  ;;  %v3605_v40 = vld [vmem:[%s6859_s0 + $0x688] sm:$0xff] }
 0x115   :  { %6968 = vst [vmem:[#allocation9_spill] sm:$0xff] %v5931_v55  ;;  %6969 = vst [vmem:[#allocation10_spill] sm:$0xff] %v5933_v48  ;;  %4468 = vmatprep.mubr.msk.f32.mxu0 %vm90_vm1, %v3602_v14  ;;  %4584 = vmatprep.mubr.msk.f32.mxu1 %vm90_vm1, %v3747_v28  ;;  %v3749_v5 = vld [vmem:[%s6859_s0 + $0x8c0] sm:$0xff]  ;;  %v3750_v28 = vld [vmem:[%s6859_s0 + $0x8c8] sm:$0xff] }
 0x117   :  { %v5953_v45 = vpop.f32.mrb[28].mxu0  ;;  %v5955_v14 = vpop.f32.mrb[28].mxu1 }
 0x118   :  { %6970 = vst [vmem:[#allocation11_spill] sm:$0xff] %v5953_v45  ;;  %6971 = vst [vmem:[#allocation12_spill] sm:$0xff] %v5955_v14  ;;  %v5959_v35 = vpop.f32.mrb[29].mxu0  ;;  %v5961_v48 = vpop.f32.mrb[29].mxu1  ;;  %4469 = vmatmul.mubr.msk.f32.gmra.mrb[134].mxu0 %vm90_vm1, %v3603_v38  ;;  %4585 = vmatmul.mubr.msk.f32.gmra.mrb[134].mxu1 %vm90_vm1, %v3748_v42  ;;  %v3606_v38 = vld [vmem:[%s6859_s0 + $0x690] sm:$0xff]  ;;  %v3607_v45 = vld [vmem:[%s6859_s0 + $0x698] sm:$0xff] }
 0x119   :  { %6972 = vst [vmem:[#allocation13_spill] sm:$0xff] %v5959_v35  ;;  %6973 = vst [vmem:[#allocation14_spill] sm:$0xff] %v5961_v48  ;;  %4471 = vmatprep.mubr.msk.f32.mxu0 %vm90_vm1, %v3604_v58  ;;  %4587 = vmatprep.mubr.msk.f32.mxu1 %vm90_vm1, %v3749_v5  ;;  %v3751_v42 = vld [vmem:[%s6859_s0 + $0x8d0] sm:$0xff]  ;;  %v3752_v5 = vld [vmem:[%s6859_s0 + $0x8d8] sm:$0xff] }
 0x11b   :  { %v5981_v55 = vpop.f32.mrb[30].mxu0  ;;  %v5983_v58 = vpop.f32.mrb[30].mxu1 }
 0x11c   :  { %6974 = vst [vmem:[#allocation15_spill] sm:$0xff] %v5981_v55  ;;  %6975 = vst [vmem:[#allocation16_spill] sm:$0xff] %v5983_v58  ;;  %v5987_v48 = vpop.f32.mrb[31].mxu0  ;;  %v5989_v35 = vpop.f32.mrb[31].mxu1  ;;  %4472 = vmatmul.mubr.msk.f32.gmra.mrb[136].mxu0 %vm90_vm1, %v3605_v40  ;;  %4588 = vmatmul.mubr.msk.f32.gmra.mrb[136].mxu1 %vm90_vm1, %v3750_v28  ;;  %v3608_v40 = vld [vmem:[%s6859_s0 + $0x6a0] sm:$0xff]  ;;  %v3609_v55 = vld [vmem:[%s6859_s0 + $0x6a8] sm:$0xff] }
 0x11d   :  { %6976 = vst [vmem:[#allocation17_spill] sm:$0xff] %v5987_v48  ;;  %6977 = vst [vmem:[#allocation18_spill] sm:$0xff] %v5989_v35  ;;  %4474 = vmatprep.mubr.msk.f32.mxu0 %vm90_vm1, %v3606_v38  ;;  %4590 = vmatprep.mubr.msk.f32.mxu1 %vm90_vm1, %v3751_v42  ;;  %v3753_v28 = vld [vmem:[%s6859_s0 + $0x8e0] sm:$0xff]  ;;  %v3754_v42 = vld [vmem:[%s6859_s0 + $0x8e8] sm:$0xff] }
 0x11f   :  { %v6009_v14 = vpop.f32.mrb[32].mxu0  ;;  %v6011_v38 = vpop.f32.mrb[32].mxu1 }
 0x120   :  { %6978 = vst [vmem:[#allocation19_spill] sm:$0xff] %v6009_v14  ;;  %6979 = vst [vmem:[#allocation20_spill] sm:$0xff] %v6011_v38  ;;  %v6015_v35 = vpop.f32.mrb[33].mxu0  ;;  %v6017_v48 = vpop.f32.mrb[33].mxu1  ;;  %4475 = vmatmul.mubr.msk.f32.gmra.mrb[138].mxu0 %vm90_vm1, %v3607_v45  ;;  %4591 = vmatmul.mubr.msk.f32.gmra.mrb[138].mxu1 %vm90_vm1, %v3752_v5  ;;  %v3610_v45 = vld [vmem:[%s6859_s0 + $0x6b0] sm:$0xff]  ;;  %v3611_v14 = vld [vmem:[%s6859_s0 + $0x6b8] sm:$0xff] }
 0x121   :  { %6980 = vst [vmem:[#allocation21_spill] sm:$0xff] %v6015_v35  ;;  %6981 = vst [vmem:[#allocation22_spill] sm:$0xff] %v6017_v48  ;;  %4477 = vmatprep.mubr.msk.f32.mxu0 %vm90_vm1, %v3608_v40  ;;  %4593 = vmatprep.mubr.msk.f32.mxu1 %vm90_vm1, %v3753_v28  ;;  %v3755_v5 = vld [vmem:[%s6859_s0 + $0x8f0] sm:$0xff]  ;;  %v3756_v28 = vld [vmem:[%s6859_s0 + $0x8f8] sm:$0xff] }
 0x123   :  { %v6037_v58 = vpop.f32.mrb[34].mxu0  ;;  %v6039_v40 = vpop.f32.mrb[34].mxu1 }
 0x124   :  { %6982 = vst [vmem:[#allocation23_spill] sm:$0xff] %v6037_v58  ;;  %6983 = vst [vmem:[#allocation24_spill] sm:$0xff] %v6039_v40  ;;  %v6043_v48 = vpop.f32.mrb[35].mxu0  ;;  %v6045_v35 = vpop.f32.mrb[35].mxu1  ;;  %4478 = vmatmul.mubr.msk.f32.gmra.mrb[140].mxu0 %vm90_vm1, %v3609_v55  ;;  %4594 = vmatmul.mubr.msk.f32.gmra.mrb[140].mxu1 %vm90_vm1, %v3754_v42 }
 0x125   :  { %6984 = vst [vmem:[#allocation25_spill] sm:$0xff] %v6043_v48  ;;  %6985 = vst [vmem:[#allocation26_spill] sm:$0xff] %v6045_v35  ;;  %4480 = vmatprep.mubr.msk.f32.mxu0 %vm90_vm1, %v3610_v45  ;;  %4596 = vmatprep.mubr.msk.f32.mxu1 %vm90_vm1, %v3755_v5  ;;  %v7058_v5 = vmax.f32 %v5561_v33, %v5563_v34  ;;  %v7060_v33 = vmax.f32 %v5589_v43, %v5591_v44 }
 0x127   :  { %v6059_v40 = vpop.f32.mrb[36].mxu0  ;;  %v6061_v55 = vpop.f32.mrb[36].mxu1 }
 0x128   :  { %6986 = vst [vmem:[#allocation27_spill] sm:$0xff] %v6059_v40  ;;  %6987 = vst [vmem:[#allocation28_spill] sm:$0xff] %v6061_v55  ;;  %v6065_v38 = vpop.f32.mrb[37].mxu0  ;;  %v6067_v45 = vpop.f32.mrb[37].mxu1  ;;  %4481 = vmatmul.mubr.msk.f32.gmra.mrb[142].mxu0 %vm90_vm1, %v3611_v14  ;;  %4597 = vmatmul.mubr.msk.f32.gmra.mrb[142].mxu1 %vm90_vm1, %v3756_v28  ;;  %v6280_v55 = vld [vmem:[%s6860_s2] ss:$0 sm:$0xff] }
 0x129   :  { %6988 = vst [vmem:[#allocation29_spill] sm:$0xff] %v6065_v38  ;;  %6989 = vst [vmem:[#allocation30_spill] sm:$0xff] %v6067_v45 }
 0x12b   :  { %v6073_v35 = vpop.f32.mrb[38].mxu0  ;;  %v6075_v48 = vpop.f32.mrb[38].mxu1 }
 0x12c   :  { %6990 = vst [vmem:[#allocation31_spill] sm:$0xff] %v6073_v35  ;;  %6991 = vst [vmem:[#allocation32_spill] sm:$0xff] %v6075_v48  ;;  %v6079_v1 = vpop.f32.mrb[39].mxu0  ;;  %v6081_v42 = vpop.f32.mrb[39].mxu1 }
 0x12d   :  { %6992 = vst [vmem:[#allocation33_spill] sm:$0xff] %v6079_v1  ;;  %6993 = vst [vmem:[#allocation34_spill] sm:$0xff] %v6081_v42 }
 0x12f   :  { %v6085_v14 = vpop.f32.mrb[40].mxu0  ;;  %v6087_v28 = vpop.f32.mrb[40].mxu1 }
 0x130   :  { %6994 = vst [vmem:[#allocation35_spill] sm:$0xff] %v6085_v14  ;;  %6995 = vst [vmem:[#allocation36_spill] sm:$0xff] %v6087_v28  ;;  %v6091_v45 = vpop.f32.mrb[41].mxu0  ;;  %v6093_v38 = vpop.f32.mrb[41].mxu1 }
 0x131   :  { %6996 = vst [vmem:[#allocation37_spill] sm:$0xff] %v6091_v45  ;;  %6997 = vst [vmem:[#allocation38_spill] sm:$0xff] %v6093_v38 }
 0x133   :  { %v6097_v48 = vpop.f32.mrb[42].mxu0  ;;  %v6099_v35 = vpop.f32.mrb[42].mxu1 }
 0x134   :  { %6998 = vst [vmem:[#allocation39_spill] sm:$0xff] %v6097_v48  ;;  %6999 = vst [vmem:[#allocation40_spill] sm:$0xff] %v6099_v35  ;;  %v6103_v42 = vpop.f32.mrb[43].mxu0  ;;  %v6105_v1 = vpop.f32.mrb[43].mxu1 }
 0x135   :  { %7000 = vst [vmem:[#allocation41_spill] sm:$0xff] %v6103_v42  ;;  %7001 = vst [vmem:[#allocation42_spill] sm:$0xff] %v6105_v1 }
 0x137   :  { %v6109_v28 = vpop.f32.mrb[44].mxu0  ;;  %v6111_v14 = vpop.f32.mrb[44].mxu1 }
 0x138   :  { %7002 = vst [vmem:[#allocation43_spill] sm:$0xff] %v6109_v28  ;;  %7003 = vst [vmem:[#allocation44_spill] sm:$0xff] %v6111_v14  ;;  %v6115_v38 = vpop.f32.mrb[45].mxu0  ;;  %v6117_v45 = vpop.f32.mrb[45].mxu1 }
 0x139   :  { %7004 = vst [vmem:[#allocation45_spill] sm:$0xff] %v6115_v38  ;;  %7005 = vst [vmem:[#allocation46_spill] sm:$0xff] %v6117_v45 }
 0x13b   :  { %v6121_v35 = vpop.f32.mrb[46].mxu0  ;;  %v6123_v48 = vpop.f32.mrb[46].mxu1 }
 0x13c   :  { %7006 = vst [vmem:[#allocation47_spill] sm:$0xff] %v6121_v35  ;;  %7007 = vst [vmem:[#allocation48_spill] sm:$0xff] %v6123_v48  ;;  %v6127_v1 = vpop.f32.mrb[47].mxu0  ;;  %v6129_v42 = vpop.f32.mrb[47].mxu1 }
 0x13d   :  { %7008 = vst [vmem:[#allocation49_spill] sm:$0xff] %v6127_v1  ;;  %7009 = vst [vmem:[#allocation50_spill] sm:$0xff] %v6129_v42 }
 0x13f   :  { %v6133_v14 = vpop.f32.mrb[48].mxu0  ;;  %v6135_v28 = vpop.f32.mrb[48].mxu1 }
 0x140   :  { %7010 = vst [vmem:[#allocation51_spill] sm:$0xff] %v6133_v14  ;;  %7011 = vst [vmem:[#allocation52_spill] sm:$0xff] %v6135_v28  ;;  %v6139_v45 = vpop.f32.mrb[49].mxu0  ;;  %v6141_v38 = vpop.f32.mrb[49].mxu1 }
 0x141   :  { %7012 = vst [vmem:[#allocation53_spill] sm:$0xff] %v6139_v45  ;;  %7013 = vst [vmem:[#allocation54_spill] sm:$0xff] %v6141_v38 }
 0x143   :  { %v6145_v48 = vpop.f32.mrb[50].mxu0  ;;  %v6147_v35 = vpop.f32.mrb[50].mxu1 }
 0x144   :  { %7014 = vst [vmem:[#allocation55_spill] sm:$0xff] %v6145_v48  ;;  %7015 = vst [vmem:[#allocation56_spill] sm:$0xff] %v6147_v35  ;;  %v6151_v42 = vpop.f32.mrb[51].mxu0  ;;  %v6153_v1 = vpop.f32.mrb[51].mxu1 }
 0x145   :  { %7016 = vst [vmem:[#allocation57_spill] sm:$0xff] %v6151_v42  ;;  %7017 = vst [vmem:[#allocation58_spill] sm:$0xff] %v6153_v1 }
 0x147   :  { %v6157_v28 = vpop.f32.mrb[52].mxu0  ;;  %v6159_v14 = vpop.f32.mrb[52].mxu1 }
 0x148   :  { %7018 = vst [vmem:[#allocation59_spill] sm:$0xff] %v6157_v28  ;;  %7019 = vst [vmem:[#allocation60_spill] sm:$0xff] %v6159_v14  ;;  %v6163_v38 = vpop.f32.mrb[53].mxu0  ;;  %v6165_v45 = vpop.f32.mrb[53].mxu1 }
 0x149   :  { %7020 = vst [vmem:[#allocation61_spill] sm:$0xff] %v6163_v38  ;;  %7021 = vst [vmem:[#allocation62_spill] sm:$0xff] %v6165_v45 }
 0x14b   :  { %v6169_v35 = vpop.f32.mrb[54].mxu0  ;;  %v6171_v48 = vpop.f32.mrb[54].mxu1 }
 0x14c   :  { %7022 = vst [vmem:[#allocation63_spill] sm:$0xff] %v6169_v35  ;;  %7023 = vst [vmem:[#allocation64_spill] sm:$0xff] %v6171_v48  ;;  %v6175_v1 = vpop.f32.mrb[55].mxu0  ;;  %v6177_v42 = vpop.f32.mrb[55].mxu1 }
 0x14d   :  { %7024 = vst [vmem:[#allocation65_spill] sm:$0xff] %v6175_v1  ;;  %7025 = vst [vmem:[#allocation66_spill] sm:$0xff] %v6177_v42 }
 0x14f   :  { %v6181_v14 = vpop.f32.mrb[56].mxu0  ;;  %v6183_v28 = vpop.f32.mrb[56].mxu1 }
 0x150   :  { %7026 = vst [vmem:[#allocation67_spill] sm:$0xff] %v6181_v14  ;;  %7027 = vst [vmem:[#allocation68_spill] sm:$0xff] %v6183_v28  ;;  %v6187_v45 = vpop.f32.mrb[57].mxu0  ;;  %v6189_v38 = vpop.f32.mrb[57].mxu1 }
 0x151   :  { %7028 = vst [vmem:[#allocation69_spill] sm:$0xff] %v6187_v45  ;;  %7029 = vst [vmem:[#allocation70_spill] sm:$0xff] %v6189_v38 }
 0x153   :  { %v6193_v48 = vpop.f32.mrb[58].mxu0  ;;  %v6195_v35 = vpop.f32.mrb[58].mxu1 }
 0x154   :  { %7030 = vst [vmem:[#allocation71_spill] sm:$0xff] %v6193_v48  ;;  %7031 = vst [vmem:[#allocation72_spill] sm:$0xff] %v6195_v35  ;;  %v6199_v42 = vpop.f32.mrb[59].mxu0  ;;  %v6201_v1 = vpop.f32.mrb[59].mxu1 }
 0x155   :  { %7032 = vst [vmem:[#allocation73_spill] sm:$0xff] %v6199_v42  ;;  %7033 = vst [vmem:[#allocation74_spill] sm:$0xff] %v6201_v1 }
 0x157   :  { %v6205_v28 = vpop.f32.mrb[60].mxu0  ;;  %v6207_v14 = vpop.f32.mrb[60].mxu1 }
 0x158   :  { %7034 = vst [vmem:[#allocation75_spill] sm:$0xff] %v6205_v28  ;;  %7035 = vst [vmem:[#allocation76_spill] sm:$0xff] %v6207_v14  ;;  %v6211_v38 = vpop.f32.mrb[61].mxu0  ;;  %v6213_v45 = vpop.f32.mrb[61].mxu1 }
 0x159   :  { %7036 = vst [vmem:[#allocation77_spill] sm:$0xff] %v6211_v38  ;;  %7037 = vst [vmem:[#allocation78_spill] sm:$0xff] %v6213_v45 }
 0x15b   :  { %v6217_v35 = vpop.f32.mrb[62].mxu0  ;;  %v6219_v48 = vpop.f32.mrb[62].mxu1 }
 0x15c   :  { %7038 = vst [vmem:[#allocation79_spill] sm:$0xff] %v6217_v35  ;;  %7039 = vst [vmem:[#allocation80_spill] sm:$0xff] %v6219_v48  ;;  %v6223_v1 = vpop.f32.mrb[63].mxu0  ;;  %v6225_v42 = vpop.f32.mrb[63].mxu1 }
 0x15d   :  { %7040 = vst [vmem:[#allocation81_spill] sm:$0xff] %v6223_v1  ;;  %7041 = vst [vmem:[#allocation82_spill] sm:$0xff] %v6225_v42 }
 0x15f   :  { %v6229_v14 = vpop.f32.mrb[64].mxu0  ;;  %v6231_v28 = vpop.f32.mrb[64].mxu1 }
 0x160   :  { %7042 = vst [vmem:[#allocation83_spill] sm:$0xff] %v6229_v14  ;;  %7043 = vst [vmem:[#allocation84_spill] sm:$0xff] %v6231_v28  ;;  %v6235_v45 = vpop.f32.mrb[65].mxu0  ;;  %v6237_v38 = vpop.f32.mrb[65].mxu1 }
 0x161   :  { %7044 = vst [vmem:[#allocation85_spill] sm:$0xff] %v6235_v45  ;;  %7045 = vst [vmem:[#allocation86_spill] sm:$0xff] %v6237_v38 }
 0x163   :  { %v6241_v48 = vpop.f32.mrb[66].mxu0  ;;  %v6243_v35 = vpop.f32.mrb[66].mxu1 }
 0x164   :  { %7046 = vst [vmem:[#allocation87_spill] sm:$0xff] %v6241_v48  ;;  %7047 = vst [vmem:[#allocation88_spill] sm:$0xff] %v6243_v35  ;;  %v6247_v42 = vpop.f32.mrb[67].mxu0  ;;  %v6249_v1 = vpop.f32.mrb[67].mxu1 }
 0x165   :  { %7048 = vst [vmem:[#allocation89_spill] sm:$0xff] %v6247_v42  ;;  %7049 = vst [vmem:[#allocation90_spill] sm:$0xff] %v6249_v1 }
 0x167   :  { %v6253_v28 = vpop.f32.mrb[68].mxu0  ;;  %v6255_v14 = vpop.f32.mrb[68].mxu1 }
 0x168   :  { %7050 = vst [vmem:[#allocation91_spill] sm:$0xff] %v6253_v28  ;;  %7051 = vst [vmem:[#allocation92_spill] sm:$0xff] %v6255_v14  ;;  %v6259_v38 = vpop.f32.mrb[69].mxu0  ;;  %v6261_v45 = vpop.f32.mrb[69].mxu1 }
 0x169   :  { %7052 = vst [vmem:[#allocation93_spill] sm:$0xff] %v6259_v38  ;;  %7053 = vst [vmem:[#allocation94_spill] sm:$0xff] %v6261_v45 }
 0x16b   :  { %v6265_v35 = vpop.f32.mrb[70].mxu0  ;;  %v6267_v48 = vpop.f32.mrb[70].mxu1 }
 0x16c   :  { %7054 = vst [vmem:[#allocation95_spill] sm:$0xff] %v6265_v35  ;;  %7055 = vst [vmem:[#allocation96_spill] sm:$0xff] %v6267_v48  ;;  %v6271_v1 = vpop.f32.mrb[71].mxu0  ;;  %v6273_v42 = vpop.f32.mrb[71].mxu1  ;;  %v7059_v35 = vmax.f32 %v5567_v36, %v5569_v37 }
 0x16d   :  { %7056 = vst [vmem:[#allocation97_spill] sm:$0xff] %v6271_v1  ;;  %7057 = vst [vmem:[#allocation98_spill] sm:$0xff] %v6273_v42 }
 0x16f   :  { %v4377_v14 = vpop.f32.mrb[72].mxu0  ;;  %v4493_v28 = vpop.f32.mrb[72].mxu1 }
 0x170   :  { %v2951_v40 = vmax.f32 %v4377_v14, %v4493_v28  ;;  %v1877_v4 = vpop.f32.mrb[73].mxu0  ;;  %v2591_v11 = vpop.f32.mrb[73].mxu1 }
 0x171   :  { %v2950_v45 = vmax.f32 %v1877_v4, %v2591_v11 }
 0x172   :  { %v3023_v48 = vmax.f32 %v7058_v5, %v2951_v40 }
 0x173   :  { %v3022_v38 = vmax.f32 %v7059_v35, %v2950_v45  ;;  %v4380_v58 = vpop.f32.mrb[74].mxu0  ;;  %v4496_v42 = vpop.f32.mrb[74].mxu1  ;;  %v7061_v35 = vmax.f32 %v5595_v46, %v5597_v47  ;;  %v7062_v47 = vmax.f32 %v5617_v53, %v5619_v54 }
 0x174   :  { %v3102_v14 = vadd.f32 %v6280_v55, %v3023_v48  ;;  %v2953_v28 = vmax.f32 %v4380_v58, %v4496_v42  ;;  %v1887_v1 = vpop.f32.mrb[75].mxu0  ;;  %v2601_v26 = vpop.f32.mrb[75].mxu1 }
 0x175   :  { %v3101_v21 = vadd.f32 %v6280_v55, %v3022_v38  ;;  %v2952_v24 = vmax.f32 %v1887_v1, %v2601_v26  ;;  %v7063_v38 = vmax.f32 %v5623_v56, %v5625_v57  ;;  %v7064_v57 = vmax.f32 %v5645_v63, %v5647_v0 }
 0x176   :  { %v3174_v4 = vmax.f32 %v3102_v14, 0.0  ;;  %v3025_v34 = vmax.f32 %v7060_v33, %v2953_v28 }
 0x177   :  { %v3173_v11 = vmax.f32 %v3101_v21, 0.0  ;;  %v3024_v36 = vmax.f32 %v7061_v35, %v2952_v24  ;;  %v4383_v37 = vpop.f32.mrb[76].mxu0  ;;  %v4499_v40 = vpop.f32.mrb[76].mxu1  ;;  %v7065_v35 = vmax.f32 %v5651_v2, %v5653_v3  ;;  %v7066_v3 = vmax.f32 %v5673_v9, %v5675_v10 }
 0x178   :  { %3247 = vst.msk [vmem:[%s6861_s3 + $0x8] sm:$0xff] %vm3245_vm4, %v3174_v4  ;;  %v3104_v48 = vadd.f32 %v6280_v55, %v3025_v34  ;;  %v2955_v1 = vmax.f32 %v4383_v37, %v4499_v40  ;;  %v1897_v26 = vpop.f32.mrb[77].mxu0  ;;  %v2611_v58 = vpop.f32.mrb[77].mxu1 }
 0x179   :  { %3246 = vst.msk [vmem:[%s6861_s3] sm:$0xff] %vm3245_vm4, %v3173_v11  ;;  %v3103_v43 = vadd.f32 %v6280_v55, %v3024_v36  ;;  %v2954_v44 = vmax.f32 %v1897_v26, %v2611_v58 }
 0x17a   :  { %v3176_v46 = vmax.f32 %v3104_v48, 0.0  ;;  %v3027_v21 = vmax.f32 %v7062_v47, %v2955_v1 }
 0x17b   :  { %v3175_v24 = vmax.f32 %v3103_v43, 0.0  ;;  %v3026_v42 = vmax.f32 %v7063_v38, %v2954_v44  ;;  %v4386_v45 = vpop.f32.mrb[78].mxu0  ;;  %v4502_v5 = vpop.f32.mrb[78].mxu1 }
 0x17c   :  { %3249 = vst.msk [vmem:[%s6861_s3 + $0x18] sm:$0xff] %vm3245_vm4, %v3176_v46  ;;  %v3106_v14 = vadd.f32 %v6280_v55, %v3027_v21  ;;  %v2957_v28 = vmax.f32 %v4386_v45, %v4502_v5  ;;  %v1907_v4 = vpop.f32.mrb[79].mxu0  ;;  %v2621_v33 = vpop.f32.mrb[79].mxu1  ;;  %v7067_v46 = vmax.f32 %v5679_v12, %v5681_v13  ;;  %v7068_v13 = vmax.f32 %v5701_v19, %v5703_v20 }
 0x17d   :  { %3248 = vst.msk [vmem:[%s6861_s3 + $0x10] sm:$0xff] %vm3245_vm4, %v3175_v24  ;;  %v3105_v53 = vadd.f32 %v6280_v55, %v3026_v42  ;;  %v2956_v54 = vmax.f32 %v1907_v4, %v2621_v33  ;;  %v7069_v4 = vmax.f32 %v5707_v22, %v5709_v23  ;;  %v7070_v23 = vmax.f32 %v5729_v29, %v5731_v30 }
 0x17e   :  { %v3178_v56 = vmax.f32 %v3106_v14, 0.0  ;;  %v3029_v34 = vmax.f32 %v7064_v57, %v2957_v28 }
 0x17f   :  { %v3177_v11 = vmax.f32 %v3105_v53, 0.0  ;;  %v3028_v36 = vmax.f32 %v7065_v35, %v2956_v54  ;;  %v4389_v37 = vpop.f32.mrb[80].mxu0  ;;  %v4505_v40 = vpop.f32.mrb[80].mxu1 }
 0x180   :  { %3251 = vst.msk [vmem:[%s6861_s3 + $0x28] sm:$0xff] %vm3245_vm4, %v3178_v56  ;;  %v3108_v48 = vadd.f32 %v6280_v55, %v3029_v34  ;;  %v2959_v1 = vmax.f32 %v4389_v37, %v4505_v40  ;;  %v1917_v26 = vpop.f32.mrb[81].mxu0  ;;  %v2631_v58 = vpop.f32.mrb[81].mxu1  ;;  %v7071_v37 = vmax.f32 %v5735_v32, %v5737_v39  ;;  %v7072_v39 = vmax.f32 %v5757_v51, %v5759_v52 }
 0x181   :  { %3250 = vst.msk [vmem:[%s6861_s3 + $0x20] sm:$0xff] %vm3245_vm4, %v3177_v11  ;;  %v3107_v63 = vadd.f32 %v6280_v55, %v3028_v36  ;;  %v2958_v0 = vmax.f32 %v1917_v26, %v2631_v58 }
 0x182   :  { %v3180_v2 = vmax.f32 %v3108_v48, 0.0  ;;  %v3031_v43 = vmax.f32 %v7066_v3, %v2959_v1 }
 0x183   :  { %v3179_v44 = vmax.f32 %v3107_v63, 0.0  ;;  %v3030_v47 = vmax.f32 %v7067_v46, %v2958_v0  ;;  %v4392_v21 = vpop.f32.mrb[82].mxu0  ;;  %v4508_v24 = vpop.f32.mrb[82].mxu1 }
 0x184   :  { %3253 = vst.msk [vmem:[%s6861_s3 + $0x38] sm:$0xff] %vm3245_vm4, %v3180_v2  ;;  %v3110_v38 = vadd.f32 %v6280_v55, %v3031_v43  ;;  %v2961_v42 = vmax.f32 %v4392_v21, %v4508_v24  ;;  %v1927_v45 = vpop.f32.mrb[83].mxu0  ;;  %v2641_v5 = vpop.f32.mrb[83].mxu1  ;;  %v7073_v43 = vmax.f32 %v5763_v60, %v5765_v61  ;;  %v7074_v61 = vmax.f32 %v5785_v15, %v5787_v16 }
 0x185   :  { %3252 = vst.msk [vmem:[%s6861_s3 + $0x30] sm:$0xff] %vm3245_vm4, %v3179_v44  ;;  %v3109_v9 = vadd.f32 %v6280_v55, %v3030_v47  ;;  %v2960_v10 = vmax.f32 %v1927_v45, %v2641_v5 }
 0x186   :  { %v3182_v12 = vmax.f32 %v3110_v38, 0.0  ;;  %v3033_v14 = vmax.f32 %v7068_v13, %v2961_v42 }
 0x187   :  { %v3181_v28 = vmax.f32 %v3109_v9, 0.0  ;;  %v3032_v33 = vmax.f32 %v7069_v4, %v2960_v10  ;;  %v4395_v53 = vpop.f32.mrb[84].mxu0  ;;  %v4511_v54 = vpop.f32.mrb[84].mxu1  ;;  %v7075_v9 = vmax.f32 %v5791_v18, %v5793_v25  ;;  %v7076_v25 = vmax.f32 %v5813_v49, %v5815_v50 }
 0x188   :  { %3255 = vst.msk [vmem:[%s6861_s3 + $0x48] sm:$0xff] %vm3245_vm4, %v3182_v12  ;;  %v3112_v56 = vadd.f32 %v6280_v55, %v3033_v14  ;;  %v2963_v57 = vmax.f32 %v4395_v53, %v4511_v54  ;;  %v1937_v34 = vpop.f32.mrb[85].mxu0  ;;  %v2651_v11 = vpop.f32.mrb[85].mxu1 }
 0x189   :  { %3254 = vst.msk [vmem:[%s6861_s3 + $0x40] sm:$0xff] %vm3245_vm4, %v3181_v28  ;;  %v3111_v19 = vadd.f32 %v6280_v55, %v3032_v33  ;;  %v2962_v20 = vmax.f32 %v1937_v34, %v2651_v11 }
 0x18a   :  { %v3184_v22 = vmax.f32 %v3112_v56, 0.0  ;;  %v3035_v35 = vmax.f32 %v7070_v23, %v2963_v57  ;;  %v7077_v56 = vmax.f32 %v5819_v6, %v5821_v7  ;;  %v7078_v7 = vmax.f32 %v5841_v8, %v5843_v41 }
 0x18b   :  { %v3183_v36 = vmax.f32 %v3111_v19, 0.0  ;;  %v3034_v40 = vmax.f32 %v7071_v37, %v2962_v20  ;;  %v4398_v48 = vpop.f32.mrb[86].mxu0  ;;  %v4514_v1 = vpop.f32.mrb[86].mxu1  ;;  %v7079_v37 = vmax.f32 %v5847_v17, %v5849_v62  ;;  %v7080_v41 = vmax.f32 %v5869_v59, %v5871_v27 }
 0x18c   :  { %3257 = vst.msk [vmem:[%s6861_s3 + $0x58] sm:$0xff] %vm3245_vm4, %v3184_v22  ;;  %v3114_v26 = vadd.f32 %v6280_v55, %v3035_v35  ;;  %v2965_v58 = vmax.f32 %v4398_v48, %v4514_v1  ;;  %v1947_v63 = vpop.f32.mrb[87].mxu0  ;;  %v2661_v0 = vpop.f32.mrb[87].mxu1 }
 0x18d   :  { %3256 = vst.msk [vmem:[%s6861_s3 + $0x50] sm:$0xff] %vm3245_vm4, %v3183_v36  ;;  %v3113_v29 = vadd.f32 %v6280_v55, %v3034_v40  ;;  %v2964_v30 = vmax.f32 %v1947_v63, %v2661_v0 }
 0x18e   :  { %v3186_v32 = vmax.f32 %v3114_v26, 0.0  ;;  %v3037_v2 = vmax.f32 %v7072_v39, %v2965_v58 }
 0x18f   :  { %v3185_v3 = vmax.f32 %v3113_v29, 0.0  ;;  %v3036_v44 = vmax.f32 %v7073_v43, %v2964_v30  ;;  %v4401_v46 = vpop.f32.mrb[88].mxu0  ;;  %v4517_v47 = vpop.f32.mrb[88].mxu1 }
 0x190   :  { %3259 = vst.msk [vmem:[%s6861_s3 + $0x68] sm:$0xff] %vm3245_vm4, %v3186_v32  ;;  %v3116_v21 = vadd.f32 %v6280_v55, %v3037_v2  ;;  %v2967_v24 = vmax.f32 %v4401_v46, %v4517_v47  ;;  %v1957_v38 = vpop.f32.mrb[89].mxu0  ;;  %v2671_v42 = vpop.f32.mrb[89].mxu1  ;;  %v7081_v32 = vld [vmem:[#allocation2_spill] sm:$0xff] }
 0x191   :  { %3258 = vst.msk [vmem:[%s6861_s3 + $0x60] sm:$0xff] %vm3245_vm4, %v3185_v3  ;;  %v3115_v51 = vadd.f32 %v6280_v55, %v3036_v44  ;;  %v2966_v52 = vmax.f32 %v1957_v38, %v2671_v42  ;;  %v7082_v39 = vmax.f32 %v5875_v31, %v7081_v32  ;;  %v7084_v38 = vld [vmem:[#allocation4_spill] sm:$0xff] }
 0x192   :  { %v3188_v60 = vmax.f32 %v3116_v21, 0.0  ;;  %v3039_v45 = vmax.f32 %v7074_v61, %v2967_v24  ;;  %v7083_v24 = vld [vmem:[#allocation3_spill] sm:$0xff]  ;;  %v7087_v61 = vld [vmem:[#allocation6_spill] sm:$0xff] }
 0x193   :  { %v3187_v5 = vmax.f32 %v3115_v51, 0.0  ;;  %v3038_v10 = vmax.f32 %v7075_v9, %v2966_v52  ;;  %v4404_v12 = vpop.f32.mrb[90].mxu0  ;;  %v4520_v13 = vpop.f32.mrb[90].mxu1  ;;  %v7085_v42 = vmax.f32 %v7083_v24, %v7084_v38 }
 0x194   :  { %3261 = vst.msk [vmem:[%s6861_s3 + $0x78] sm:$0xff] %vm3245_vm4, %v3188_v60  ;;  %v3118_v14 = vadd.f32 %v6280_v55, %v3039_v45  ;;  %v2969_v28 = vmax.f32 %v4404_v12, %v4520_v13  ;;  %v1967_v4 = vpop.f32.mrb[91].mxu0  ;;  %v2681_v33 = vpop.f32.mrb[91].mxu1  ;;  %v7086_v60 = vld [vmem:[#allocation5_spill] sm:$0xff] }
 0x195   :  { %3260 = vst.msk [vmem:[%s6861_s3 + $0x70] sm:$0xff] %vm3245_vm4, %v3187_v5  ;;  %v3117_v15 = vadd.f32 %v6280_v55, %v3038_v10  ;;  %v2968_v16 = vmax.f32 %v1967_v4, %v2681_v33  ;;  %v7088_v45 = vmax.f32 %v7086_v60, %v7087_v61 }
 0x196   :  { %v3190_v18 = vmax.f32 %v3118_v14, 0.0  ;;  %v3041_v53 = vmax.f32 %v7076_v25, %v2969_v28 }
 0x197   :  { %v3189_v54 = vmax.f32 %v3117_v15, 0.0  ;;  %v3040_v57 = vmax.f32 %v7077_v56, %v2968_v16  ;;  %v4407_v34 = vpop.f32.mrb[92].mxu0  ;;  %v4523_v11 = vpop.f32.mrb[92].mxu1  ;;  %v7089_v16 = vld [vmem:[#allocation7_spill] sm:$0xff]  ;;  %v7092_v56 = vld [vmem:[#allocation9_spill] sm:$0xff] }
 0x198   :  { %3263 = vst.msk [vmem:[%s6861_s3 + $0x88] sm:$0xff] %vm3245_vm4, %v3190_v18  ;;  %v3120_v19 = vadd.f32 %v6280_v55, %v3041_v53  ;;  %v2971_v20 = vmax.f32 %v4407_v34, %v4523_v11  ;;  %v1977_v22 = vpop.f32.mrb[93].mxu0  ;;  %v2691_v23 = vpop.f32.mrb[93].mxu1  ;;  %v7090_v18 = vld [vmem:[#allocation8_spill] sm:$0xff] }
 0x199   :  { %3262 = vst.msk [vmem:[%s6861_s3 + $0x80] sm:$0xff] %vm3245_vm4, %v3189_v54  ;;  %v3119_v49 = vadd.f32 %v6280_v55, %v3040_v57  ;;  %v2970_v50 = vmax.f32 %v1977_v22, %v2691_v23  ;;  %v7091_v25 = vmax.f32 %v7089_v16, %v7090_v18  ;;  %v7093_v57 = vld [vmem:[#allocation10_spill] sm:$0xff] }
 0x19a   :  { %v3192_v6 = vmax.f32 %v3120_v19, 0.0  ;;  %v3043_v35 = vmax.f32 %v7078_v7, %v2971_v20  ;;  %v7094_v34 = vmax.f32 %v7092_v56, %v7093_v57 }
 0x19b   :  { %v3191_v36 = vmax.f32 %v3119_v49, 0.0  ;;  %v3042_v40 = vmax.f32 %v7079_v37, %v2970_v50  ;;  %v4410_v48 = vpop.f32.mrb[94].mxu0  ;;  %v4526_v1 = vpop.f32.mrb[94].mxu1  ;;  %v7096_v37 = vld [vmem:[#allocation12_spill] sm:$0xff] }
 0x19c   :  { %3265 = vst.msk [vmem:[%s6861_s3 + $0x98] sm:$0xff] %vm3245_vm4, %v3192_v6  ;;  %v3122_v26 = vadd.f32 %v6280_v55, %v3043_v35  ;;  %v2973_v58 = vmax.f32 %v4410_v48, %v4526_v1  ;;  %v1987_v63 = vpop.f32.mrb[95].mxu0  ;;  %v2701_v0 = vpop.f32.mrb[95].mxu1 }
 0x19d   :  { %3264 = vst.msk [vmem:[%s6861_s3 + $0x90] sm:$0xff] %vm3245_vm4, %v3191_v36  ;;  %v3121_v62 = vadd.f32 %v6280_v55, %v3042_v40  ;;  %v2972_v17 = vmax.f32 %v1987_v63, %v2701_v0  ;;  %v7095_v36 = vld [vmem:[#allocation11_spill] sm:$0xff] }
 0x19e   :  { %v3194_v8 = vmax.f32 %v3122_v26, 0.0  ;;  %v3045_v29 = vmax.f32 %v7080_v41, %v2973_v58  ;;  %v7097_v40 = vmax.f32 %v7095_v36, %v7096_v37  ;;  %v7098_v26 = vld [vmem:[#allocation13_spill] sm:$0xff]  ;;  %v7099_v58 = vld [vmem:[#allocation14_spill] sm:$0xff] }
 0x19f   :  { %v3193_v30 = vmax.f32 %v3121_v62, 0.0  ;;  %v3044_v2 = vmax.f32 %v7082_v39, %v2972_v17  ;;  %v4413_v3 = vpop.f32.mrb[96].mxu0  ;;  %v4529_v43 = vpop.f32.mrb[96].mxu1  ;;  %v7100_v63 = vmax.f32 %v7098_v26, %v7099_v58 }
 0x1a0   :  { %3267 = vst.msk [vmem:[%s6861_s3 + $0xa8] sm:$0xff] %vm3245_vm4, %v3194_v8  ;;  %v3124_v44 = vadd.f32 %v6280_v55, %v3045_v29  ;;  %v2975_v46 = vmax.f32 %v4413_v3, %v4529_v43  ;;  %v1997_v47 = vpop.f32.mrb[97].mxu0  ;;  %v2711_v21 = vpop.f32.mrb[97].mxu1  ;;  %v7101_v3 = vld [vmem:[#allocation15_spill] sm:$0xff]  ;;  %v7102_v43 = vld [vmem:[#allocation16_spill] sm:$0xff] }
 0x1a1   :  { %3266 = vst.msk [vmem:[%s6861_s3 + $0xa0] sm:$0xff] %vm3245_vm4, %v3193_v30  ;;  %v3123_v31 = vadd.f32 %v6280_v55, %v3044_v2  ;;  %v2974_v59 = vmax.f32 %v1997_v47, %v2711_v21  ;;  %v7104_v21 = vld [vmem:[#allocation17_spill] sm:$0xff] }
 0x1a2   :  { %v3196_v27 = vmax.f32 %v3124_v44, 0.0  ;;  %v3047_v51 = vmax.f32 %v7085_v42, %v2975_v46  ;;  %v7103_v44 = vmax.f32 %v7101_v3, %v7102_v43 }
 0x1a3   :  { %v3195_v52 = vmax.f32 %v3123_v31, 0.0  ;;  %v3046_v5 = vmax.f32 %v7088_v45, %v2974_v59  ;;  %v4416_v9 = vpop.f32.mrb[98].mxu0  ;;  %v4532_v10 = vpop.f32.mrb[98].mxu1  ;;  %v7105_v31 = vld [vmem:[#allocation18_spill] sm:$0xff] }
 0x1a4   :  { %3269 = vst.msk [vmem:[%s6861_s3 + $0xb8] sm:$0xff] %vm3245_vm4, %v3196_v27  ;;  %v3126_v12 = vadd.f32 %v6280_v55, %v3047_v51  ;;  %v2977_v13 = vmax.f32 %v4416_v9, %v4532_v10  ;;  %v2007_v14 = vpop.f32.mrb[99].mxu0  ;;  %v2721_v28 = vpop.f32.mrb[99].mxu1  ;;  %v7106_v59 = vmax.f32 %v7104_v21, %v7105_v31  ;;  %v7107_v9 = vld [vmem:[#allocation19_spill] sm:$0xff]  ;;  %v7108_v10 = vld [vmem:[#allocation20_spill] sm:$0xff] }
 0x1a5   :  { %3268 = vst.msk [vmem:[%s6861_s3 + $0xb0] sm:$0xff] %vm3245_vm4, %v3195_v52  ;;  %v3125_v4 = vadd.f32 %v6280_v55, %v3046_v5  ;;  %v2976_v33 = vmax.f32 %v2007_v14, %v2721_v28  ;;  %v7110_v28 = vld [vmem:[#allocation21_spill] sm:$0xff] }
 0x1a6   :  { %v3198_v15 = vmax.f32 %v3126_v12, 0.0  ;;  %v3049_v53 = vmax.f32 %v7091_v25, %v2977_v13  ;;  %v7109_v12 = vmax.f32 %v7107_v9, %v7108_v10 }
 0x1a7   :  { %v3197_v54 = vmax.f32 %v3125_v4, 0.0  ;;  %v3048_v11 = vmax.f32 %v7094_v34, %v2976_v33  ;;  %v4419_v19 = vpop.f32.mrb[100].mxu0  ;;  %v4535_v20 = vpop.f32.mrb[100].mxu1  ;;  %v7111_v4 = vld [vmem:[#allocation22_spill] sm:$0xff] }
 0x1a8   :  { %3271 = vst.msk [vmem:[%s6861_s3 + $0xc8] sm:$0xff] %vm3245_vm4, %v3198_v15  ;;  %v3128_v22 = vadd.f32 %v6280_v55, %v3049_v53  ;;  %v2979_v23 = vmax.f32 %v4419_v19, %v4535_v20  ;;  %v2017_v49 = vpop.f32.mrb[101].mxu0  ;;  %v2731_v50 = vpop.f32.mrb[101].mxu1  ;;  %v7112_v33 = vmax.f32 %v7110_v28, %v7111_v4  ;;  %v7113_v19 = vld [vmem:[#allocation23_spill] sm:$0xff]  ;;  %v7114_v20 = vld [vmem:[#allocation24_spill] sm:$0xff] }
 0x1a9   :  { %3270 = vst.msk [vmem:[%s6861_s3 + $0xc0] sm:$0xff] %vm3245_vm4, %v3197_v54  ;;  %v3127_v6 = vadd.f32 %v6280_v55, %v3048_v11  ;;  %v2978_v7 = vmax.f32 %v2017_v49, %v2731_v50  ;;  %v7116_v50 = vld [vmem:[#allocation25_spill] sm:$0xff] }
 0x1aa   :  { %v3200_v35 = vmax.f32 %v3128_v22, 0.0  ;;  %v3051_v48 = vmax.f32 %v7097_v40, %v2979_v23  ;;  %v7115_v22 = vmax.f32 %v7113_v19, %v7114_v20 }
 0x1ab   :  { %v3199_v1 = vmax.f32 %v3127_v6, 0.0  ;;  %v3050_v0 = vmax.f32 %v7100_v63, %v2978_v7  ;;  %v4422_v62 = vpop.f32.mrb[102].mxu0  ;;  %v4538_v17 = vpop.f32.mrb[102].mxu1  ;;  %v7117_v6 = vld [vmem:[#allocation26_spill] sm:$0xff] }
 0x1ac   :  { %3273 = vst.msk [vmem:[%s6861_s3 + $0xd8] sm:$0xff] %vm3245_vm4, %v3200_v35  ;;  %v3130_v8 = vadd.f32 %v6280_v55, %v3051_v48  ;;  %v2981_v41 = vmax.f32 %v4422_v62, %v4538_v17  ;;  %v2027_v29 = vpop.f32.mrb[103].mxu0  ;;  %v2741_v30 = vpop.f32.mrb[103].mxu1  ;;  %v7118_v7 = vmax.f32 %v7116_v50, %v7117_v6  ;;  %v7119_v62 = vld [vmem:[#allocation27_spill] sm:$0xff]  ;;  %v7120_v17 = vld [vmem:[#allocation28_spill] sm:$0xff] }
 0x1ad   :  { %3272 = vst.msk [vmem:[%s6861_s3 + $0xd0] sm:$0xff] %vm3245_vm4, %v3199_v1  ;;  %v3129_v32 = vadd.f32 %v6280_v55, %v3050_v0  ;;  %v2980_v39 = vmax.f32 %v2027_v29, %v2741_v30  ;;  %v7122_v30 = vld [vmem:[#allocation29_spill] sm:$0xff] }
 0x1ae   :  { %v3202_v2 = vmax.f32 %v3130_v8, 0.0  ;;  %v3053_v46 = vmax.f32 %v7103_v44, %v2981_v41  ;;  %v7121_v8 = vmax.f32 %v7119_v62, %v7120_v17 }
 0x1af   :  { %v3201_v47 = vmax.f32 %v3129_v32, 0.0  ;;  %v3052_v27 = vmax.f32 %v7106_v59, %v2980_v39  ;;  %v4425_v24 = vpop.f32.mrb[104].mxu0  ;;  %v4541_v38 = vpop.f32.mrb[104].mxu1  ;;  %v7123_v32 = vld [vmem:[#allocation30_spill] sm:$0xff] }
 0x1b0   :  { %3275 = vst.msk [vmem:[%s6861_s3 + $0xe8] sm:$0xff] %vm3245_vm4, %v3202_v2  ;;  %v3132_v42 = vadd.f32 %v6280_v55, %v3053_v46  ;;  %v2983_v51 = vmax.f32 %v4425_v24, %v4541_v38  ;;  %v2037_v52 = vpop.f32.mrb[105].mxu0  ;;  %v2751_v60 = vpop.f32.mrb[105].mxu1  ;;  %v7124_v39 = vmax.f32 %v7122_v30, %v7123_v32  ;;  %v7125_v24 = vld [vmem:[#allocation31_spill] sm:$0xff]  ;;  %v7126_v38 = vld [vmem:[#allocation32_spill] sm:$0xff] }
 0x1b1   :  { %3274 = vst.msk [vmem:[%s6861_s3 + $0xe0] sm:$0xff] %vm3245_vm4, %v3201_v47  ;;  %v3131_v61 = vadd.f32 %v6280_v55, %v3052_v27  ;;  %v2982_v45 = vmax.f32 %v2037_v52, %v2751_v60  ;;  %v7128_v60 = vld [vmem:[#allocation33_spill] sm:$0xff] }
 0x1b2   :  { %v3204_v5 = vmax.f32 %v3132_v42, 0.0  ;;  %v3055_v13 = vmax.f32 %v7109_v12, %v2983_v51  ;;  %v7127_v42 = vmax.f32 %v7125_v24, %v7126_v38 }
 0x1b3   :  { %v3203_v14 = vmax.f32 %v3131_v61, 0.0  ;;  %v3054_v15 = vmax.f32 %v7112_v33, %v2982_v45  ;;  %v4428_v16 = vpop.f32.mrb[106].mxu0  ;;  %v4544_v18 = vpop.f32.mrb[106].mxu1  ;;  %v7129_v61 = vld [vmem:[#allocation34_spill] sm:$0xff] }
 0x1b4   :  { %3277 = vst.msk [vmem:[%s6861_s3 + $0xf8] sm:$0xff] %vm3245_vm4, %v3204_v5  ;;  %v3134_v25 = vadd.f32 %v6280_v55, %v3055_v13  ;;  %v2985_v53 = vmax.f32 %v4428_v16, %v4544_v18  ;;  %v2047_v54 = vpop.f32.mrb[107].mxu0  ;;  %v2761_v56 = vpop.f32.mrb[107].mxu1  ;;  %v7130_v45 = vmax.f32 %v7128_v60, %v7129_v61  ;;  %v7131_v16 = vld [vmem:[#allocation35_spill] sm:$0xff]  ;;  %v7132_v18 = vld [vmem:[#allocation36_spill] sm:$0xff] }
 0x1b5   :  { %3276 = vst.msk [vmem:[%s6861_s3 + $0xf0] sm:$0xff] %vm3245_vm4, %v3203_v14  ;;  %v3133_v57 = vadd.f32 %v6280_v55, %v3054_v15  ;;  %v2984_v34 = vmax.f32 %v2047_v54, %v2761_v56  ;;  %v7134_v56 = vld [vmem:[#allocation37_spill] sm:$0xff] }
 0x1b6   :  { %v3206_v11 = vmax.f32 %v3134_v25, 0.0  ;;  %v3057_v23 = vmax.f32 %v7115_v22, %v2985_v53  ;;  %v7133_v25 = vmax.f32 %v7131_v16, %v7132_v18 }
 0x1b7   :  { %v3205_v49 = vmax.f32 %v3133_v57, 0.0  ;;  %v3056_v35 = vmax.f32 %v7118_v7, %v2984_v34  ;;  %v4431_v36 = vpop.f32.mrb[108].mxu0  ;;  %v4547_v37 = vpop.f32.mrb[108].mxu1  ;;  %v7135_v57 = vld [vmem:[#allocation38_spill] sm:$0xff] }
 0x1b8   :  { %3279 = vst.msk [vmem:[%s6861_s3 + $0x108] sm:$0xff] %vm3245_vm4, %v3206_v11  ;;  %v3136_v40 = vadd.f32 %v6280_v55, %v3057_v23  ;;  %v2987_v48 = vmax.f32 %v4431_v36, %v4547_v37  ;;  %v2057_v1 = vpop.f32.mrb[109].mxu0  ;;  %v2771_v26 = vpop.f32.mrb[109].mxu1  ;;  %v7136_v34 = vmax.f32 %v7134_v56, %v7135_v57  ;;  %v7137_v36 = vld [vmem:[#allocation39_spill] sm:$0xff]  ;;  %v7138_v37 = vld [vmem:[#allocation40_spill] sm:$0xff] }
 0x1b9   :  { %3278 = vst.msk [vmem:[%s6861_s3 + $0x100] sm:$0xff] %vm3245_vm4, %v3205_v49  ;;  %v3135_v58 = vadd.f32 %v6280_v55, %v3056_v35  ;;  %v2986_v63 = vmax.f32 %v2057_v1, %v2771_v26  ;;  %v7140_v26 = vld [vmem:[#allocation41_spill] sm:$0xff] }
 0x1ba   :  { %v3208_v0 = vmax.f32 %v3136_v40, 0.0  ;;  %v3059_v41 = vmax.f32 %v7121_v8, %v2987_v48  ;;  %v7139_v40 = vmax.f32 %v7137_v36, %v7138_v37 }
 0x1bb   :  { %v3207_v29 = vmax.f32 %v3135_v58, 0.0  ;;  %v3058_v2 = vmax.f32 %v7124_v39, %v2986_v63  ;;  %v4434_v3 = vpop.f32.mrb[110].mxu0  ;;  %v4550_v43 = vpop.f32.mrb[110].mxu1  ;;  %v7141_v58 = vld [vmem:[#allocation42_spill] sm:$0xff] }
 0x1bc   :  { %3281 = vst.msk [vmem:[%s6861_s3 + $0x118] sm:$0xff] %vm3245_vm4, %v3208_v0  ;;  %v3138_v44 = vadd.f32 %v6280_v55, %v3059_v41  ;;  %v2989_v46 = vmax.f32 %v4434_v3, %v4550_v43  ;;  %v2067_v47 = vpop.f32.mrb[111].mxu0  ;;  %v2781_v21 = vpop.f32.mrb[111].mxu1  ;;  %v7142_v63 = vmax.f32 %v7140_v26, %v7141_v58  ;;  %v7143_v3 = vld [vmem:[#allocation43_spill] sm:$0xff]  ;;  %v7144_v43 = vld [vmem:[#allocation44_spill] sm:$0xff] }
 0x1bd   :  { %3280 = vst.msk [vmem:[%s6861_s3 + $0x110] sm:$0xff] %vm3245_vm4, %v3207_v29  ;;  %v3137_v31 = vadd.f32 %v6280_v55, %v3058_v2  ;;  %v2988_v59 = vmax.f32 %v2067_v47, %v2781_v21  ;;  %v7146_v21 = vld [vmem:[#allocation45_spill] sm:$0xff] }
 0x1be   :  { %v3210_v27 = vmax.f32 %v3138_v44, 0.0  ;;  %v3061_v51 = vmax.f32 %v7127_v42, %v2989_v46  ;;  %v7145_v44 = vmax.f32 %v7143_v3, %v7144_v43 }
 0x1bf   :  { %v3209_v52 = vmax.f32 %v3137_v31, 0.0  ;;  %v3060_v5 = vmax.f32 %v7130_v45, %v2988_v59  ;;  %v4437_v9 = vpop.f32.mrb[112].mxu0  ;;  %v4553_v10 = vpop.f32.mrb[112].mxu1  ;;  %v7147_v31 = vld [vmem:[#allocation46_spill] sm:$0xff] }
 0x1c0   :  { %3283 = vst.msk [vmem:[%s6861_s3 + $0x128] sm:$0xff] %vm3245_vm4, %v3210_v27  ;;  %v3140_v12 = vadd.f32 %v6280_v55, %v3061_v51  ;;  %v2991_v13 = vmax.f32 %v4437_v9, %v4553_v10  ;;  %v2077_v14 = vpop.f32.mrb[113].mxu0  ;;  %v2791_v28 = vpop.f32.mrb[113].mxu1  ;;  %v7148_v59 = vmax.f32 %v7146_v21, %v7147_v31  ;;  %v7149_v9 = vld [vmem:[#allocation47_spill] sm:$0xff]  ;;  %v7150_v10 = vld [vmem:[#allocation48_spill] sm:$0xff] }
 0x1c1   :  { %3282 = vst.msk [vmem:[%s6861_s3 + $0x120] sm:$0xff] %vm3245_vm4, %v3209_v52  ;;  %v3139_v4 = vadd.f32 %v6280_v55, %v3060_v5  ;;  %v2990_v33 = vmax.f32 %v2077_v14, %v2791_v28  ;;  %v7152_v28 = vld [vmem:[#allocation49_spill] sm:$0xff] }
 0x1c2   :  { %v3212_v15 = vmax.f32 %v3140_v12, 0.0  ;;  %v3063_v53 = vmax.f32 %v7133_v25, %v2991_v13  ;;  %v7151_v12 = vmax.f32 %v7149_v9, %v7150_v10 }
 0x1c3   :  { %v3211_v54 = vmax.f32 %v3139_v4, 0.0  ;;  %v3062_v11 = vmax.f32 %v7136_v34, %v2990_v33  ;;  %v4440_v19 = vpop.f32.mrb[114].mxu0  ;;  %v4556_v20 = vpop.f32.mrb[114].mxu1  ;;  %v7153_v4 = vld [vmem:[#allocation50_spill] sm:$0xff] }
 0x1c4   :  { %3285 = vst.msk [vmem:[%s6861_s3 + $0x138] sm:$0xff] %vm3245_vm4, %v3212_v15  ;;  %v3142_v22 = vadd.f32 %v6280_v55, %v3063_v53  ;;  %v2993_v23 = vmax.f32 %v4440_v19, %v4556_v20  ;;  %v2087_v49 = vpop.f32.mrb[115].mxu0  ;;  %v2801_v50 = vpop.f32.mrb[115].mxu1  ;;  %v7154_v33 = vmax.f32 %v7152_v28, %v7153_v4  ;;  %v7155_v19 = vld [vmem:[#allocation51_spill] sm:$0xff]  ;;  %v7156_v20 = vld [vmem:[#allocation52_spill] sm:$0xff] }
 0x1c5   :  { %3284 = vst.msk [vmem:[%s6861_s3 + $0x130] sm:$0xff] %vm3245_vm4, %v3211_v54  ;;  %v3141_v6 = vadd.f32 %v6280_v55, %v3062_v11  ;;  %v2992_v7 = vmax.f32 %v2087_v49, %v2801_v50  ;;  %v7158_v50 = vld [vmem:[#allocation53_spill] sm:$0xff] }
 0x1c6   :  { %v3214_v35 = vmax.f32 %v3142_v22, 0.0  ;;  %v3065_v48 = vmax.f32 %v7139_v40, %v2993_v23  ;;  %v7157_v22 = vmax.f32 %v7155_v19, %v7156_v20 }
 0x1c7   :  { %v3213_v1 = vmax.f32 %v3141_v6, 0.0  ;;  %v3064_v0 = vmax.f32 %v7142_v63, %v2992_v7  ;;  %v4443_v62 = vpop.f32.mrb[116].mxu0  ;;  %v4559_v17 = vpop.f32.mrb[116].mxu1  ;;  %v7159_v6 = vld [vmem:[#allocation54_spill] sm:$0xff] }
 0x1c8   :  { %3287 = vst.msk [vmem:[%s6861_s3 + $0x148] sm:$0xff] %vm3245_vm4, %v3214_v35  ;;  %v3144_v8 = vadd.f32 %v6280_v55, %v3065_v48  ;;  %v2995_v41 = vmax.f32 %v4443_v62, %v4559_v17  ;;  %v2097_v29 = vpop.f32.mrb[117].mxu0  ;;  %v2811_v30 = vpop.f32.mrb[117].mxu1  ;;  %v7160_v7 = vmax.f32 %v7158_v50, %v7159_v6  ;;  %v7161_v62 = vld [vmem:[#allocation55_spill] sm:$0xff]  ;;  %v7162_v17 = vld [vmem:[#allocation56_spill] sm:$0xff] }
 0x1c9   :  { %3286 = vst.msk [vmem:[%s6861_s3 + $0x140] sm:$0xff] %vm3245_vm4, %v3213_v1  ;;  %v3143_v32 = vadd.f32 %v6280_v55, %v3064_v0  ;;  %v2994_v39 = vmax.f32 %v2097_v29, %v2811_v30  ;;  %v7164_v30 = vld [vmem:[#allocation57_spill] sm:$0xff] }
 0x1ca   :  { %v3216_v2 = vmax.f32 %v3144_v8, 0.0  ;;  %v3067_v46 = vmax.f32 %v7145_v44, %v2995_v41  ;;  %v7163_v8 = vmax.f32 %v7161_v62, %v7162_v17 }
 0x1cb   :  { %v3215_v47 = vmax.f32 %v3143_v32, 0.0  ;;  %v3066_v27 = vmax.f32 %v7148_v59, %v2994_v39  ;;  %v4446_v24 = vpop.f32.mrb[118].mxu0  ;;  %v4562_v38 = vpop.f32.mrb[118].mxu1  ;;  %v7165_v32 = vld [vmem:[#allocation58_spill] sm:$0xff] }
 0x1cc   :  { %3289 = vst.msk [vmem:[%s6861_s3 + $0x158] sm:$0xff] %vm3245_vm4, %v3216_v2  ;;  %v3146_v42 = vadd.f32 %v6280_v55, %v3067_v46  ;;  %v2997_v51 = vmax.f32 %v4446_v24, %v4562_v38  ;;  %v2107_v52 = vpop.f32.mrb[119].mxu0  ;;  %v2821_v60 = vpop.f32.mrb[119].mxu1  ;;  %v7166_v39 = vmax.f32 %v7164_v30, %v7165_v32  ;;  %v7167_v24 = vld [vmem:[#allocation59_spill] sm:$0xff]  ;;  %v7168_v38 = vld [vmem:[#allocation60_spill] sm:$0xff] }
 0x1cd   :  { %3288 = vst.msk [vmem:[%s6861_s3 + $0x150] sm:$0xff] %vm3245_vm4, %v3215_v47  ;;  %v3145_v61 = vadd.f32 %v6280_v55, %v3066_v27  ;;  %v2996_v45 = vmax.f32 %v2107_v52, %v2821_v60  ;;  %v7170_v60 = vld [vmem:[#allocation61_spill] sm:$0xff] }
 0x1ce   :  { %v3218_v5 = vmax.f32 %v3146_v42, 0.0  ;;  %v3069_v13 = vmax.f32 %v7151_v12, %v2997_v51  ;;  %v7169_v42 = vmax.f32 %v7167_v24, %v7168_v38 }
 0x1cf   :  { %v3217_v14 = vmax.f32 %v3145_v61, 0.0  ;;  %v3068_v15 = vmax.f32 %v7154_v33, %v2996_v45  ;;  %v4449_v16 = vpop.f32.mrb[120].mxu0  ;;  %v4565_v18 = vpop.f32.mrb[120].mxu1  ;;  %v7171_v61 = vld [vmem:[#allocation62_spill] sm:$0xff] }
 0x1d0   :  { %3291 = vst.msk [vmem:[%s6861_s3 + $0x168] sm:$0xff] %vm3245_vm4, %v3218_v5  ;;  %v3148_v25 = vadd.f32 %v6280_v55, %v3069_v13  ;;  %v2999_v53 = vmax.f32 %v4449_v16, %v4565_v18  ;;  %v2117_v54 = vpop.f32.mrb[121].mxu0  ;;  %v2831_v56 = vpop.f32.mrb[121].mxu1  ;;  %v7172_v45 = vmax.f32 %v7170_v60, %v7171_v61  ;;  %v7173_v16 = vld [vmem:[#allocation63_spill] sm:$0xff]  ;;  %v7174_v18 = vld [vmem:[#allocation64_spill] sm:$0xff] }
 0x1d1   :  { %3290 = vst.msk [vmem:[%s6861_s3 + $0x160] sm:$0xff] %vm3245_vm4, %v3217_v14  ;;  %v3147_v57 = vadd.f32 %v6280_v55, %v3068_v15  ;;  %v2998_v34 = vmax.f32 %v2117_v54, %v2831_v56  ;;  %v7176_v56 = vld [vmem:[#allocation65_spill] sm:$0xff] }
 0x1d2   :  { %v3220_v11 = vmax.f32 %v3148_v25, 0.0  ;;  %v3071_v23 = vmax.f32 %v7157_v22, %v2999_v53  ;;  %v7175_v25 = vmax.f32 %v7173_v16, %v7174_v18 }
 0x1d3   :  { %v3219_v49 = vmax.f32 %v3147_v57, 0.0  ;;  %v3070_v35 = vmax.f32 %v7160_v7, %v2998_v34  ;;  %v4452_v36 = vpop.f32.mrb[122].mxu0  ;;  %v4568_v37 = vpop.f32.mrb[122].mxu1  ;;  %v7177_v57 = vld [vmem:[#allocation66_spill] sm:$0xff] }
 0x1d4   :  { %3293 = vst.msk [vmem:[%s6861_s3 + $0x178] sm:$0xff] %vm3245_vm4, %v3220_v11  ;;  %v3150_v40 = vadd.f32 %v6280_v55, %v3071_v23  ;;  %v3001_v48 = vmax.f32 %v4452_v36, %v4568_v37  ;;  %v2127_v1 = vpop.f32.mrb[123].mxu0  ;;  %v2841_v26 = vpop.f32.mrb[123].mxu1  ;;  %v7178_v34 = vmax.f32 %v7176_v56, %v7177_v57  ;;  %v7179_v36 = vld [vmem:[#allocation67_spill] sm:$0xff]  ;;  %v7180_v37 = vld [vmem:[#allocation68_spill] sm:$0xff] }
 0x1d5   :  { %3292 = vst.msk [vmem:[%s6861_s3 + $0x170] sm:$0xff] %vm3245_vm4, %v3219_v49  ;;  %v3149_v58 = vadd.f32 %v6280_v55, %v3070_v35  ;;  %v3000_v63 = vmax.f32 %v2127_v1, %v2841_v26  ;;  %v7182_v26 = vld [vmem:[#allocation69_spill] sm:$0xff] }
 0x1d6   :  { %v3222_v0 = vmax.f32 %v3150_v40, 0.0  ;;  %v3073_v41 = vmax.f32 %v7163_v8, %v3001_v48  ;;  %v7181_v40 = vmax.f32 %v7179_v36, %v7180_v37 }
 0x1d7   :  { %v3221_v29 = vmax.f32 %v3149_v58, 0.0  ;;  %v3072_v2 = vmax.f32 %v7166_v39, %v3000_v63  ;;  %v4455_v3 = vpop.f32.mrb[124].mxu0  ;;  %v4571_v43 = vpop.f32.mrb[124].mxu1  ;;  %v7183_v58 = vld [vmem:[#allocation70_spill] sm:$0xff] }
 0x1d8   :  { %3295 = vst.msk [vmem:[%s6861_s3 + $0x188] sm:$0xff] %vm3245_vm4, %v3222_v0  ;;  %v3152_v44 = vadd.f32 %v6280_v55, %v3073_v41  ;;  %v3003_v46 = vmax.f32 %v4455_v3, %v4571_v43  ;;  %v2137_v47 = vpop.f32.mrb[125].mxu0  ;;  %v2851_v21 = vpop.f32.mrb[125].mxu1  ;;  %v7184_v63 = vmax.f32 %v7182_v26, %v7183_v58  ;;  %v7185_v3 = vld [vmem:[#allocation71_spill] sm:$0xff]  ;;  %v7186_v43 = vld [vmem:[#allocation72_spill] sm:$0xff] }
 0x1d9   :  { %3294 = vst.msk [vmem:[%s6861_s3 + $0x180] sm:$0xff] %vm3245_vm4, %v3221_v29  ;;  %v3151_v31 = vadd.f32 %v6280_v55, %v3072_v2  ;;  %v3002_v59 = vmax.f32 %v2137_v47, %v2851_v21  ;;  %v7188_v21 = vld [vmem:[#allocation73_spill] sm:$0xff] }
 0x1da   :  { %v3224_v27 = vmax.f32 %v3152_v44, 0.0  ;;  %v3075_v51 = vmax.f32 %v7169_v42, %v3003_v46  ;;  %v7187_v44 = vmax.f32 %v7185_v3, %v7186_v43 }
 0x1db   :  { %v3223_v52 = vmax.f32 %v3151_v31, 0.0  ;;  %v3074_v5 = vmax.f32 %v7172_v45, %v3002_v59  ;;  %v4458_v9 = vpop.f32.mrb[126].mxu0  ;;  %v4574_v10 = vpop.f32.mrb[126].mxu1  ;;  %v7189_v31 = vld [vmem:[#allocation74_spill] sm:$0xff] }
 0x1dc   :  { %3297 = vst.msk [vmem:[%s6861_s3 + $0x198] sm:$0xff] %vm3245_vm4, %v3224_v27  ;;  %v3154_v12 = vadd.f32 %v6280_v55, %v3075_v51  ;;  %v3005_v13 = vmax.f32 %v4458_v9, %v4574_v10  ;;  %v2147_v14 = vpop.f32.mrb[127].mxu0  ;;  %v2861_v28 = vpop.f32.mrb[127].mxu1  ;;  %v7190_v59 = vmax.f32 %v7188_v21, %v7189_v31  ;;  %v7191_v9 = vld [vmem:[#allocation75_spill] sm:$0xff]  ;;  %v7192_v10 = vld [vmem:[#allocation76_spill] sm:$0xff] }
 0x1dd   :  { %3296 = vst.msk [vmem:[%s6861_s3 + $0x190] sm:$0xff] %vm3245_vm4, %v3223_v52  ;;  %v3153_v4 = vadd.f32 %v6280_v55, %v3074_v5  ;;  %v3004_v33 = vmax.f32 %v2147_v14, %v2861_v28  ;;  %v7194_v28 = vld [vmem:[#allocation77_spill] sm:$0xff] }
 0x1de   :  { %v3226_v15 = vmax.f32 %v3154_v12, 0.0  ;;  %v3077_v53 = vmax.f32 %v7175_v25, %v3005_v13  ;;  %v7193_v12 = vmax.f32 %v7191_v9, %v7192_v10 }
 0x1df   :  { %v3225_v54 = vmax.f32 %v3153_v4, 0.0  ;;  %v3076_v11 = vmax.f32 %v7178_v34, %v3004_v33  ;;  %v4461_v19 = vpop.f32.mrb[128].mxu0  ;;  %v4577_v20 = vpop.f32.mrb[128].mxu1  ;;  %v7195_v4 = vld [vmem:[#allocation78_spill] sm:$0xff] }
 0x1e0   :  { %3299 = vst.msk [vmem:[%s6861_s3 + $0x1a8] sm:$0xff] %vm3245_vm4, %v3226_v15  ;;  %v3156_v22 = vadd.f32 %v6280_v55, %v3077_v53  ;;  %v3007_v23 = vmax.f32 %v4461_v19, %v4577_v20  ;;  %v2157_v49 = vpop.f32.mrb[129].mxu0  ;;  %v2871_v50 = vpop.f32.mrb[129].mxu1  ;;  %v7196_v33 = vmax.f32 %v7194_v28, %v7195_v4  ;;  %v7197_v19 = vld [vmem:[#allocation79_spill] sm:$0xff]  ;;  %v7198_v20 = vld [vmem:[#allocation80_spill] sm:$0xff] }
 0x1e1   :  { %3298 = vst.msk [vmem:[%s6861_s3 + $0x1a0] sm:$0xff] %vm3245_vm4, %v3225_v54  ;;  %v3155_v6 = vadd.f32 %v6280_v55, %v3076_v11  ;;  %v3006_v7 = vmax.f32 %v2157_v49, %v2871_v50  ;;  %v7200_v50 = vld [vmem:[#allocation81_spill] sm:$0xff] }
 0x1e2   :  { %v3228_v35 = vmax.f32 %v3156_v22, 0.0  ;;  %v3079_v48 = vmax.f32 %v7181_v40, %v3007_v23  ;;  %v7199_v22 = vmax.f32 %v7197_v19, %v7198_v20 }
 0x1e3   :  { %v3227_v1 = vmax.f32 %v3155_v6, 0.0  ;;  %v3078_v0 = vmax.f32 %v7184_v63, %v3006_v7  ;;  %v4464_v62 = vpop.f32.mrb[130].mxu0  ;;  %v4580_v17 = vpop.f32.mrb[130].mxu1  ;;  %v7201_v6 = vld [vmem:[#allocation82_spill] sm:$0xff] }
 0x1e4   :  { %3301 = vst.msk [vmem:[%s6861_s3 + $0x1b8] sm:$0xff] %vm3245_vm4, %v3228_v35  ;;  %v3158_v8 = vadd.f32 %v6280_v55, %v3079_v48  ;;  %v3009_v41 = vmax.f32 %v4464_v62, %v4580_v17  ;;  %v2167_v29 = vpop.f32.mrb[131].mxu0  ;;  %v2881_v30 = vpop.f32.mrb[131].mxu1  ;;  %v7202_v7 = vmax.f32 %v7200_v50, %v7201_v6  ;;  %v7203_v62 = vld [vmem:[#allocation83_spill] sm:$0xff]  ;;  %v7204_v17 = vld [vmem:[#allocation84_spill] sm:$0xff] }
 0x1e5   :  { %3300 = vst.msk [vmem:[%s6861_s3 + $0x1b0] sm:$0xff] %vm3245_vm4, %v3227_v1  ;;  %v3157_v32 = vadd.f32 %v6280_v55, %v3078_v0  ;;  %v3008_v39 = vmax.f32 %v2167_v29, %v2881_v30  ;;  %v7206_v30 = vld [vmem:[#allocation85_spill] sm:$0xff] }
 0x1e6   :  { %v3230_v2 = vmax.f32 %v3158_v8, 0.0  ;;  %v3081_v46 = vmax.f32 %v7187_v44, %v3009_v41  ;;  %v7205_v8 = vmax.f32 %v7203_v62, %v7204_v17 }
 0x1e7   :  { %v3229_v47 = vmax.f32 %v3157_v32, 0.0  ;;  %v3080_v27 = vmax.f32 %v7190_v59, %v3008_v39  ;;  %v4467_v24 = vpop.f32.mrb[132].mxu0  ;;  %v4583_v38 = vpop.f32.mrb[132].mxu1  ;;  %v7207_v32 = vld [vmem:[#allocation86_spill] sm:$0xff] }
 0x1e8   :  { %3303 = vst.msk [vmem:[%s6861_s3 + $0x1c8] sm:$0xff] %vm3245_vm4, %v3230_v2  ;;  %v3160_v42 = vadd.f32 %v6280_v55, %v3081_v46  ;;  %v3011_v51 = vmax.f32 %v4467_v24, %v4583_v38  ;;  %v2177_v52 = vpop.f32.mrb[133].mxu0  ;;  %v2891_v60 = vpop.f32.mrb[133].mxu1  ;;  %v7208_v39 = vmax.f32 %v7206_v30, %v7207_v32  ;;  %v7209_v24 = vld [vmem:[#allocation87_spill] sm:$0xff]  ;;  %v7210_v38 = vld [vmem:[#allocation88_spill] sm:$0xff] }
 0x1e9   :  { %3302 = vst.msk [vmem:[%s6861_s3 + $0x1c0] sm:$0xff] %vm3245_vm4, %v3229_v47  ;;  %v3159_v61 = vadd.f32 %v6280_v55, %v3080_v27  ;;  %v3010_v45 = vmax.f32 %v2177_v52, %v2891_v60  ;;  %v7212_v60 = vld [vmem:[#allocation89_spill] sm:$0xff] }
 0x1ea   :  { %v3232_v5 = vmax.f32 %v3160_v42, 0.0  ;;  %v3083_v13 = vmax.f32 %v7193_v12, %v3011_v51  ;;  %v7211_v42 = vmax.f32 %v7209_v24, %v7210_v38 }
 0x1eb   :  { %v3231_v14 = vmax.f32 %v3159_v61, 0.0  ;;  %v3082_v15 = vmax.f32 %v7196_v33, %v3010_v45  ;;  %v4470_v16 = vpop.f32.mrb[134].mxu0  ;;  %v4586_v18 = vpop.f32.mrb[134].mxu1  ;;  %v7213_v61 = vld [vmem:[#allocation90_spill] sm:$0xff] }
 0x1ec   :  { %3305 = vst.msk [vmem:[%s6861_s3 + $0x1d8] sm:$0xff] %vm3245_vm4, %v3232_v5  ;;  %v3162_v25 = vadd.f32 %v6280_v55, %v3083_v13  ;;  %v3013_v53 = vmax.f32 %v4470_v16, %v4586_v18  ;;  %v2187_v54 = vpop.f32.mrb[135].mxu0  ;;  %v2901_v56 = vpop.f32.mrb[135].mxu1  ;;  %v7214_v45 = vmax.f32 %v7212_v60, %v7213_v61  ;;  %v7215_v16 = vld [vmem:[#allocation91_spill] sm:$0xff]  ;;  %v7216_v18 = vld [vmem:[#allocation92_spill] sm:$0xff] }
 0x1ed   :  { %3304 = vst.msk [vmem:[%s6861_s3 + $0x1d0] sm:$0xff] %vm3245_vm4, %v3231_v14  ;;  %v3161_v57 = vadd.f32 %v6280_v55, %v3082_v15  ;;  %v3012_v34 = vmax.f32 %v2187_v54, %v2901_v56  ;;  %v7218_v56 = vld [vmem:[#allocation93_spill] sm:$0xff] }
 0x1ee   :  { %v3234_v11 = vmax.f32 %v3162_v25, 0.0  ;;  %v3085_v23 = vmax.f32 %v7199_v22, %v3013_v53  ;;  %v7217_v25 = vmax.f32 %v7215_v16, %v7216_v18 }
 0x1ef   :  { %v3233_v49 = vmax.f32 %v3161_v57, 0.0  ;;  %v3084_v35 = vmax.f32 %v7202_v7, %v3012_v34  ;;  %v4473_v36 = vpop.f32.mrb[136].mxu0  ;;  %v4589_v37 = vpop.f32.mrb[136].mxu1  ;;  %v7219_v57 = vld [vmem:[#allocation94_spill] sm:$0xff] }
 0x1f0   :  { %3307 = vst.msk [vmem:[%s6861_s3 + $0x1e8] sm:$0xff] %vm3245_vm4, %v3234_v11  ;;  %v3164_v40 = vadd.f32 %v6280_v55, %v3085_v23  ;;  %v3015_v48 = vmax.f32 %v4473_v36, %v4589_v37  ;;  %v2197_v1 = vpop.f32.mrb[137].mxu0  ;;  %v2911_v26 = vpop.f32.mrb[137].mxu1  ;;  %v7220_v34 = vmax.f32 %v7218_v56, %v7219_v57  ;;  %v7221_v36 = vld [vmem:[#allocation95_spill] sm:$0xff]  ;;  %v7222_v37 = vld [vmem:[#allocation96_spill] sm:$0xff] }
 0x1f1   :  { %3306 = vst.msk [vmem:[%s6861_s3 + $0x1e0] sm:$0xff] %vm3245_vm4, %v3233_v49  ;;  %v3163_v58 = vadd.f32 %v6280_v55, %v3084_v35  ;;  %v3014_v63 = vmax.f32 %v2197_v1, %v2911_v26  ;;  %v7224_v26 = vld [vmem:[#allocation97_spill] sm:$0xff] }
 0x1f2   :  { %v3236_v0 = vmax.f32 %v3164_v40, 0.0  ;;  %v3087_v41 = vmax.f32 %v7205_v8, %v3015_v48  ;;  %v7223_v40 = vmax.f32 %v7221_v36, %v7222_v37 }
 0x1f3   :  { %v3235_v29 = vmax.f32 %v3163_v58, 0.0  ;;  %v3086_v2 = vmax.f32 %v7208_v39, %v3014_v63  ;;  %v4476_v3 = vpop.f32.mrb[138].mxu0  ;;  %v4592_v43 = vpop.f32.mrb[138].mxu1  ;;  %v7225_v58 = vld [vmem:[#allocation98_spill] sm:$0xff] }
 0x1f4   :  { %3309 = vst.msk [vmem:[%s6861_s3 + $0x1f8] sm:$0xff] %vm3245_vm4, %v3236_v0  ;;  %v3166_v44 = vadd.f32 %v6280_v55, %v3087_v41  ;;  %v3017_v46 = vmax.f32 %v4476_v3, %v4592_v43  ;;  %v2207_v47 = vpop.f32.mrb[139].mxu0  ;;  %v2921_v21 = vpop.f32.mrb[139].mxu1  ;;  %v7226_v63 = vmax.f32 %v7224_v26, %v7225_v58 }
 0x1f5   :  { %3308 = vst.msk [vmem:[%s6861_s3 + $0x1f0] sm:$0xff] %vm3245_vm4, %v3235_v29  ;;  %v3165_v31 = vadd.f32 %v6280_v55, %v3086_v2  ;;  %v3016_v59 = vmax.f32 %v2207_v47, %v2921_v21 }
 0x1f6   :  { %v3238_v27 = vmax.f32 %v3166_v44, 0.0  ;;  %v3089_v51 = vmax.f32 %v7211_v42, %v3017_v46 }
 0x1f7   :  { %v3237_v52 = vmax.f32 %v3165_v31, 0.0  ;;  %v3088_v5 = vmax.f32 %v7214_v45, %v3016_v59  ;;  %v4479_v9 = vpop.f32.mrb[140].mxu0  ;;  %v4595_v10 = vpop.f32.mrb[140].mxu1 }
 0x1f8   :  { %3311 = vst.msk [vmem:[%s6861_s3 + $0x208] sm:$0xff] %vm3245_vm4, %v3238_v27  ;;  %v3168_v12 = vadd.f32 %v6280_v55, %v3089_v51  ;;  %v3019_v13 = vmax.f32 %v4479_v9, %v4595_v10  ;;  %v2217_v14 = vpop.f32.mrb[141].mxu0  ;;  %v2931_v28 = vpop.f32.mrb[141].mxu1 }
 0x1f9   :  { %3310 = vst.msk [vmem:[%s6861_s3 + $0x200] sm:$0xff] %vm3245_vm4, %v3237_v52  ;;  %v3167_v4 = vadd.f32 %v6280_v55, %v3088_v5  ;;  %v3018_v33 = vmax.f32 %v2217_v14, %v2931_v28 }
 0x1fa   :  { %v3240_v15 = vmax.f32 %v3168_v12, 0.0  ;;  %v3091_v53 = vmax.f32 %v7217_v25, %v3019_v13 }
 0x1fb   :  { %v3239_v54 = vmax.f32 %v3167_v4, 0.0  ;;  %v3090_v11 = vmax.f32 %v7220_v34, %v3018_v33  ;;  %v4482_v19 = vpop.f32.mrb[142].mxu0  ;;  %v4598_v20 = vpop.f32.mrb[142].mxu1 }
 0x1fc   :  { %3313 = vst.msk [vmem:[%s6861_s3 + $0x218] sm:$0xff] %vm3245_vm4, %v3240_v15  ;;  %v3170_v22 = vadd.f32 %v6280_v55, %v3091_v53  ;;  %v3021_v23 = vmax.f32 %v4482_v19, %v4598_v20  ;;  %v2227_v49 = vpop.f32.mrb[143].mxu0  ;;  %v2941_v50 = vpop.f32.mrb[143].mxu1 }
 0x1fd   :  { %3312 = vst.msk [vmem:[%s6861_s3 + $0x210] sm:$0xff] %vm3245_vm4, %v3239_v54  ;;  %v3169_v6 = vadd.f32 %v6280_v55, %v3090_v11  ;;  %v3020_v7 = vmax.f32 %v2227_v49, %v2941_v50 }
 0x1fe   :  { %v3242_v35 = vmax.f32 %v3170_v22, 0.0  ;;  %v3093_v48 = vmax.f32 %v7223_v40, %v3021_v23 }
 0x1ff   :  { %v3241_v1 = vmax.f32 %v3169_v6, 0.0  ;;  %v3092_v0 = vmax.f32 %v7226_v63, %v3020_v7 }
 0x200   :  { %3315 = vst.msk [vmem:[%s6861_s3 + $0x228] sm:$0xff] %vm3245_vm4, %v3242_v35  ;;  %v3172_v62 = vadd.f32 %v6280_v55, %v3093_v48 }
 0x201   :  { %3314 = vst.msk [vmem:[%s6861_s3 + $0x220] sm:$0xff] %vm3245_vm4, %v3241_v1  ;;  %v3171_v17 = vadd.f32 %v6280_v55, %v3092_v0 }
 0x202   :  { %v3244_v8 = vmax.f32 %v3172_v62, 0.0 }
 0x203   :  { %v3243_v41 = vmax.f32 %v3171_v17, 0.0 }
 0x204   :  { %3317 = vst.msk [vmem:[%s6861_s3 + $0x238] sm:$0xff] %vm3245_vm4, %v3244_v8 }
 0x205   :  { %3316 = vst.msk [vmem:[%s6861_s3 + $0x230] sm:$0xff] %vm3245_vm4, %v3243_v41 }

// kernel: mnist_sum2_forward.4
= control target key start
LH: loop header
LB: loop body
LE: loop exit
PB: predicated region body
PF: predicated region fallthrough
CT: control target
= control target key end

     0   :  { %v876_v0 = vmov 0.0|0.0   ;;  %vm49_vm0 = vcmask 179200   ;;  %v877_v30 = vmov 0.0   ;;  %vm74_vm1 = vcmask 1045504   ;;  %s1361_s1 = inlined_call_operand.vmem [shape: f32[150,16], index: 1, kind: input, shape index: {}]   ;;  %s1362_s0 = inlined_call_operand.vmem [shape: f32[4,64,150], index: 0, kind: input, shape index: {}]   ;;  %s1363_s2 = inlined_call_operand.vmem [shape: f32[1,16], index: 2, kind: input, shape index: {}]   ;;  %s1364_s3 = inlined_call_operand.vmem [shape: f32[64,16], index: 3, kind: output, shape index: {}]  }
   0x1   :  { %766 = vmatprep.subr.bf16.mxu0 %v876_v0  ;;  %793 = vmatprep.subr.bf16.mxu1 %v876_v0  ;;  %v14_v1 = vld [vmem:[%s1361_s1] sm:$0xff]  ;;  %v15_v2 = vld [vmem:[%s1361_s1 + $0x8] sm:$0xff]  ;;  %v16_v3 = vld [vmem:[%s1361_s1 + $0x10] sm:$0xff]  ;;  %vm668_vm2 = vcmask 130048  }
   0x2   :  { %v909_v4 = vpack.c.bf16 %v15_v2, %v14_v1  ;;  %v17_v5 = vld [vmem:[%s1361_s1 + $0x18] sm:$0xff]  ;;  %v18_v7 = vld [vmem:[%s1361_s1 + $0x20] sm:$0xff]  ;;  %v19_v8 = vld [vmem:[%s1361_s1 + $0x28] sm:$0xff] }
   0x3   :  { %v916_v6 = vpack.c.bf16 %v17_v5, %v16_v3  ;;  %v34_v9 = vld [vmem:[%s1362_s0 + $0x8] sm:$0xff]  ;;  %v934_v11 = vpack.c.bf16 %v19_v8, %v18_v7  ;;  %v20_v12 = vld [vmem:[%s1361_s1 + $0x30] sm:$0xff]  ;;  %v21_v13 = vld [vmem:[%s1361_s1 + $0x38] sm:$0xff] }
   0x4   :  { %768 = vmatpush1.bf16.msra.mxu0 %v909_v4  ;;  %795 = vmatpush1.bf16.msra.mxu1 %v909_v4  ;;  %v691_v10 = vld [vmem:[%s1362_s0 + $0x88] sm:$0xff]  ;;  %v948_v14 = vpack.c.bf16 %v21_v13, %v20_v12  ;;  %v22_v15 = vld [vmem:[%s1361_s1 + $0x40] sm:$0xff]  ;;  %v24_v18 = vld [vmem:[%s1361_s1 + $0x50] sm:$0xff] }
   0x5   :  { %769 = vmatprep.subr.bf16.mxu0 %v876_v0  ;;  %796 = vmatprep.subr.bf16.mxu1 %v876_v0  ;;  %v23_v16 = vld [vmem:[%s1361_s1 + $0x48] sm:$0xff]  ;;  %v25_v19 = vld [vmem:[%s1361_s1 + $0x58] sm:$0xff]  ;;  %v26_v21 = vld [vmem:[%s1361_s1 + $0x60] sm:$0xff] }
   0x6   :  { %682 = vmatprep.mubr.msk.f32.mxu0 %vm49_vm0, %v34_v9  ;;  %707 = vmatprep.mubr.msk.f32.mxu1 %vm49_vm0, %v691_v10  ;;  %v960_v17 = vpack.c.bf16 %v23_v16, %v22_v15  ;;  %v972_v20 = vpack.c.bf16 %v25_v19, %v24_v18  ;;  %v27_v22 = vld [vmem:[%s1361_s1 + $0x68] sm:$0xff]  ;;  %v28_v24 = vld [vmem:[%s1361_s1 + $0x70] sm:$0xff]  ;;  %v29_v25 = vld [vmem:[%s1361_s1 + $0x78] sm:$0xff] }
   0x7   :  { %v984_v23 = vpack.c.bf16 %v27_v22, %v26_v21  ;;  %v996_v26 = vpack.c.bf16 %v29_v25, %v28_v24  ;;  %v30_v27 = vld [vmem:[%s1361_s1 + $0x80] sm:$0xff]  ;;  %v31_v28 = vld [vmem:[%s1361_s1 + $0x88] sm:$0xff]  ;;  %v1019_v31 = vld [vmem:[%s1361_s1 + $0x90] sm:$0x3f] }
   0x8   :  { %771 = vmatpush1.bf16.msra.mxu0 %v916_v6  ;;  %798 = vmatpush1.bf16.msra.mxu1 %v916_v6  ;;  %v1008_v29 = vpack.c.bf16 %v31_v28, %v30_v27  ;;  %v33_v32 = vld [vmem:[%s1362_s0] sm:$0xff]  ;;  %v36_v34 = vld [vmem:[%s1362_s0 + $0x18] sm:$0xff]  ;;  %v35_v36 = vld [vmem:[%s1362_s0 + $0x10] sm:$0xff] }
   0x9   :  { %772 = vmatprep.subr.bf16.mxu0 %v876_v0  ;;  %799 = vmatprep.subr.bf16.mxu1 %v876_v0  ;;  %v690_v33 = vld [vmem:[%s1362_s0 + $0x80] sm:$0xff]  ;;  %v693_v35 = vld [vmem:[%s1362_s0 + $0x98] sm:$0xff]  ;;  %v692_v37 = vld [vmem:[%s1362_s0 + $0x90] sm:$0xff] }
   0xa   :  { %v38_v38 = vld [vmem:[%s1362_s0 + $0x28] sm:$0xff]  ;;  %v37_v40 = vld [vmem:[%s1362_s0 + $0x20] sm:$0xff]  ;;  %v40_v42 = vld [vmem:[%s1362_s0 + $0x38] sm:$0xff] }
   0xb   :  { %v695_v39 = vld [vmem:[%s1362_s0 + $0xa8] sm:$0xff]  ;;  %v694_v41 = vld [vmem:[%s1362_s0 + $0xa0] sm:$0xff]  ;;  %v697_v43 = vld [vmem:[%s1362_s0 + $0xb8] sm:$0xff] }
   0xc   :  { %774 = vmatpush1.bf16.msra.mxu0 %v934_v11  ;;  %801 = vmatpush1.bf16.msra.mxu1 %v934_v11  ;;  %v39_v44 = vld [vmem:[%s1362_s0 + $0x30] sm:$0xff]  ;;  %v42_v46 = vld [vmem:[%s1362_s0 + $0x48] sm:$0xff]  ;;  %v41_v48 = vld [vmem:[%s1362_s0 + $0x40] sm:$0xff] }
   0xd   :  { %775 = vmatprep.subr.bf16.mxu0 %v876_v0  ;;  %802 = vmatprep.subr.bf16.mxu1 %v876_v0  ;;  %v696_v45 = vld [vmem:[%s1362_s0 + $0xb0] sm:$0xff]  ;;  %v699_v47 = vld [vmem:[%s1362_s0 + $0xc8] sm:$0xff]  ;;  %v698_v49 = vld [vmem:[%s1362_s0 + $0xc0] sm:$0xff] }
   0xe   :  { %v44_v50 = vld [vmem:[%s1362_s0 + $0x58] sm:$0xff]  ;;  %v43_v52 = vld [vmem:[%s1362_s0 + $0x50] sm:$0xff]  ;;  %v46_v54 = vld [vmem:[%s1362_s0 + $0x68] sm:$0xff] }
   0xf   :  { %v701_v51 = vld [vmem:[%s1362_s0 + $0xd8] sm:$0xff]  ;;  %v700_v53 = vld [vmem:[%s1362_s0 + $0xd0] sm:$0xff]  ;;  %v703_v55 = vld [vmem:[%s1362_s0 + $0xe8] sm:$0xff] }
  0x10   :  { %777 = vmatpush1.bf16.msra.mxu0 %v948_v14  ;;  %804 = vmatpush1.bf16.msra.mxu1 %v948_v14  ;;  %v45_v56 = vld [vmem:[%s1362_s0 + $0x60] sm:$0xff]  ;;  %v48_v58 = vld [vmem:[%s1362_s0 + $0x78] sm:$0xff]  ;;  %v47_v60 = vld [vmem:[%s1362_s0 + $0x70] sm:$0xff] }
  0x11   :  { %778 = vmatprep.subr.bf16.mxu0 %v876_v0  ;;  %805 = vmatprep.subr.bf16.mxu1 %v876_v0  ;;  %v702_v57 = vld [vmem:[%s1362_s0 + $0xe0] sm:$0xff]  ;;  %v705_v59 = vld [vmem:[%s1362_s0 + $0xf8] sm:$0xff]  ;;  %v704_v61 = vld [vmem:[%s1362_s0 + $0xf0] sm:$0xff] }
  0x12   :  { %v716_v62 = vld [vmem:[%s1362_s0 + $0x108] sm:$0xff]  ;;  %v715_v1 = vld [vmem:[%s1362_s0 + $0x100] sm:$0xff]  ;;  %v718_v2 = vld [vmem:[%s1362_s0 + $0x118] sm:$0xff] }
  0x13   :  { %v741_v63 = vld [vmem:[%s1362_s0 + $0x188] sm:$0xff]  ;;  %v743_v3 = vld [vmem:[%s1362_s0 + $0x198] sm:$0xff]  ;;  %v742_v5 = vld [vmem:[%s1362_s0 + $0x190] sm:$0xff] }
  0x14   :  { %780 = vmatpush1.bf16.msra.mxu0 %v960_v17  ;;  %807 = vmatpush1.bf16.msra.mxu1 %v960_v17  ;;  %v745_v7 = vld [vmem:[%s1362_s0 + $0x1a8] sm:$0xff]  ;;  %v719_v8 = vld [vmem:[%s1362_s0 + $0x120] sm:$0xff]  ;;  %v722_v10 = vld [vmem:[%s1362_s0 + $0x138] sm:$0xff] }
  0x15   :  { %781 = vmatprep.subr.bf16.mxu0 %v876_v0  ;;  %808 = vmatprep.subr.bf16.mxu1 %v876_v0  ;;  %v744_v9 = vld [vmem:[%s1362_s0 + $0x1a0] sm:$0xff]  ;;  %v721_v12 = vld [vmem:[%s1362_s0 + $0x130] sm:$0xff]  ;;  %v749_v15 = vld [vmem:[%s1362_s0 + $0x1c8] sm:$0xff] }
  0x16   :  { %v746_v13 = vld [vmem:[%s1362_s0 + $0x1b0] sm:$0xff]  ;;  %v723_v16 = vld [vmem:[%s1362_s0 + $0x140] sm:$0xff]  ;;  %v726_v18 = vld [vmem:[%s1362_s0 + $0x158] sm:$0xff] }
  0x17   :  { %v751_v19 = vld [vmem:[%s1362_s0 + $0x1d8] sm:$0xff]  ;;  %v750_v21 = vld [vmem:[%s1362_s0 + $0x1d0] sm:$0xff]  ;;  %v728_v22 = vld [vmem:[%s1362_s0 + $0x168] sm:$0xff] }
  0x18   :  { %783 = vmatpush1.bf16.msra.mxu0 %v972_v20  ;;  %810 = vmatpush1.bf16.msra.mxu1 %v972_v20  ;;  %v727_v24 = vld [vmem:[%s1362_s0 + $0x160] sm:$0xff]  ;;  %v755_v27 = vld [vmem:[%s1362_s0 + $0x1f8] sm:$0xff]  ;;  %v729_v28 = vld [vmem:[%s1362_s0 + $0x170] sm:$0xff] }
  0x19   :  { %784 = vmatprep.subr.bf16.mxu0 %v876_v0  ;;  %811 = vmatprep.subr.bf16.mxu1 %v876_v0  ;;  %v752_v25 = vld [vmem:[%s1362_s0 + $0x1e0] sm:$0xff] }
  0x1c   :  { %786 = vmatpush1.bf16.msra.mxu0 %v984_v23  ;;  %813 = vmatpush1.bf16.msra.mxu1 %v984_v23 }
  0x1d   :  { %787 = vmatprep.subr.bf16.mxu0 %v876_v0  ;;  %814 = vmatprep.subr.bf16.mxu1 %v876_v0 }
  0x20   :  { %789 = vmatpush1.bf16.msra.mxu0 %v996_v26  ;;  %816 = vmatpush1.bf16.msra.mxu1 %v996_v26 }
  0x21   :  { %790 = vmatprep.subr.bf16.mxu0 %v876_v0  ;;  %817 = vmatprep.subr.bf16.mxu1 %v876_v0 }
  0x24   :  { %792 = vmatpush1.bf16.msra.mxu0 %v1008_v29  ;;  %819 = vmatpush1.bf16.msra.mxu1 %v1008_v29 }
  0x25   :  { %114 = vmatprep.subr.mxu0 %v877_v30  ;;  %260 = vmatprep.subr.mxu1 %v877_v30 }
  0x28   :  { %681 = vmatpush1.msk.msra.mxu0 %vm74_vm1, %v1019_v31  ;;  %706 = vmatpush1.msk.msra.mxu1 %vm74_vm1, %v1019_v31 }
  0x29   :  { %143 = vmatmul.mubr.f32.vlgmr.msra.gmra.mrb[0].mxu0 %v33_v32  ;;  %289 = vmatmul.mubr.f32.vlgmr.msra.gmra.mrb[0].mxu1 %v690_v33 }
  0x2a   :  { %820 = vmatprep.subr.bf16.mxu0 %v876_v0  ;;  %847 = vmatprep.subr.bf16.mxu1 %v876_v0 }
  0x2b   :  { %822 = vmatpush1.bf16.msra.mxu0 %v909_v4  ;;  %849 = vmatpush1.bf16.msra.mxu1 %v909_v4  ;;  %v717_v4 = vld [vmem:[%s1362_s0 + $0x110] sm:$0xff] }
  0x2c   :  { %823 = vmatprep.subr.bf16.mxu0 %v876_v0  ;;  %850 = vmatprep.subr.bf16.mxu1 %v876_v0 }
  0x2d   :  { %683 = vmatprep.mubr.msk.f32.mxu0 %vm49_vm0, %v36_v34  ;;  %708 = vmatprep.mubr.msk.f32.mxu1 %vm49_vm0, %v693_v35 }
  0x2e   :  { %148 = vmatmul.mubr.f32.gmra.mrb[2].mxu0 %v35_v36  ;;  %294 = vmatmul.mubr.f32.gmra.mrb[2].mxu1 %v692_v37 }
  0x2f   :  { %825 = vmatpush1.bf16.msra.mxu0 %v916_v6  ;;  %852 = vmatpush1.bf16.msra.mxu1 %v916_v6  ;;  %v720_v6 = vld [vmem:[%s1362_s0 + $0x128] sm:$0xff] }
  0x30   :  { %826 = vmatprep.subr.bf16.mxu0 %v876_v0  ;;  %853 = vmatprep.subr.bf16.mxu1 %v876_v0 }
  0x31   :  { %684 = vmatprep.mubr.msk.f32.mxu0 %vm49_vm0, %v38_v38  ;;  %709 = vmatprep.mubr.msk.f32.mxu1 %vm49_vm0, %v695_v39 }
  0x32   :  { %153 = vmatmul.mubr.f32.gmra.mrb[4].mxu0 %v37_v40  ;;  %299 = vmatmul.mubr.f32.gmra.mrb[4].mxu1 %v694_v41 }
  0x33   :  { %828 = vmatpush1.bf16.msra.mxu0 %v934_v11  ;;  %855 = vmatpush1.bf16.msra.mxu1 %v934_v11  ;;  %v747_v11 = vld [vmem:[%s1362_s0 + $0x1b8] sm:$0xff] }
  0x34   :  { %829 = vmatprep.subr.bf16.mxu0 %v876_v0  ;;  %856 = vmatprep.subr.bf16.mxu1 %v876_v0 }
  0x35   :  { %685 = vmatprep.mubr.msk.f32.mxu0 %vm49_vm0, %v40_v42  ;;  %710 = vmatprep.mubr.msk.f32.mxu1 %vm49_vm0, %v697_v43 }
  0x36   :  { %158 = vmatmul.mubr.f32.gmra.mrb[6].mxu0 %v39_v44  ;;  %304 = vmatmul.mubr.f32.gmra.mrb[6].mxu1 %v696_v45 }
  0x37   :  { %831 = vmatpush1.bf16.msra.mxu0 %v948_v14  ;;  %858 = vmatpush1.bf16.msra.mxu1 %v948_v14  ;;  %v724_v14 = vld [vmem:[%s1362_s0 + $0x148] sm:$0xff] }
  0x38   :  { %832 = vmatprep.subr.bf16.mxu0 %v876_v0  ;;  %859 = vmatprep.subr.bf16.mxu1 %v876_v0 }
  0x39   :  { %686 = vmatprep.mubr.msk.f32.mxu0 %vm49_vm0, %v42_v46  ;;  %711 = vmatprep.mubr.msk.f32.mxu1 %vm49_vm0, %v699_v47 }
  0x3a   :  { %163 = vmatmul.mubr.f32.gmra.mrb[8].mxu0 %v41_v48  ;;  %309 = vmatmul.mubr.f32.gmra.mrb[8].mxu1 %v698_v49 }
  0x3b   :  { %834 = vmatpush1.bf16.msra.mxu0 %v960_v17  ;;  %861 = vmatpush1.bf16.msra.mxu1 %v960_v17  ;;  %v748_v17 = vld [vmem:[%s1362_s0 + $0x1c0] sm:$0xff] }
  0x3c   :  { %835 = vmatprep.subr.bf16.mxu0 %v876_v0  ;;  %862 = vmatprep.subr.bf16.mxu1 %v876_v0 }
  0x3d   :  { %687 = vmatprep.mubr.msk.f32.mxu0 %vm49_vm0, %v44_v50  ;;  %712 = vmatprep.mubr.msk.f32.mxu1 %vm49_vm0, %v701_v51 }
  0x3e   :  { %168 = vmatmul.mubr.f32.gmra.mrb[10].mxu0 %v43_v52  ;;  %314 = vmatmul.mubr.f32.gmra.mrb[10].mxu1 %v700_v53 }
  0x3f   :  { %837 = vmatpush1.bf16.msra.mxu0 %v972_v20  ;;  %864 = vmatpush1.bf16.msra.mxu1 %v972_v20  ;;  %v725_v20 = vld [vmem:[%s1362_s0 + $0x150] sm:$0xff] }
  0x40   :  { %838 = vmatprep.subr.bf16.mxu0 %v876_v0  ;;  %865 = vmatprep.subr.bf16.mxu1 %v876_v0 }
  0x41   :  { %688 = vmatprep.mubr.msk.f32.mxu0 %vm49_vm0, %v46_v54  ;;  %713 = vmatprep.mubr.msk.f32.mxu1 %vm49_vm0, %v703_v55 }
  0x42   :  { %173 = vmatmul.mubr.f32.gmra.mrb[12].mxu0 %v45_v56  ;;  %319 = vmatmul.mubr.f32.gmra.mrb[12].mxu1 %v702_v57 }
  0x43   :  { %840 = vmatpush1.bf16.msra.mxu0 %v984_v23  ;;  %867 = vmatpush1.bf16.msra.mxu1 %v984_v23  ;;  %v753_v23 = vld [vmem:[%s1362_s0 + $0x1e8] sm:$0xff] }
  0x44   :  { %841 = vmatprep.subr.bf16.mxu0 %v876_v0  ;;  %868 = vmatprep.subr.bf16.mxu1 %v876_v0 }
  0x45   :  { %689 = vmatprep.mubr.msk.f32.mxu0 %vm49_vm0, %v48_v58  ;;  %714 = vmatprep.mubr.msk.f32.mxu1 %vm49_vm0, %v705_v59 }
  0x46   :  { %178 = vmatmul.mubr.f32.gmra.mrb[14].mxu0 %v47_v60  ;;  %324 = vmatmul.mubr.f32.gmra.mrb[14].mxu1 %v704_v61 }
  0x47   :  { %843 = vmatpush1.bf16.msra.mxu0 %v996_v26  ;;  %870 = vmatpush1.bf16.msra.mxu1 %v996_v26  ;;  %v730_v26 = vld [vmem:[%s1362_s0 + $0x178] sm:$0xff] }
  0x48   :  { %844 = vmatprep.subr.bf16.mxu0 %v876_v0  ;;  %871 = vmatprep.subr.bf16.mxu1 %v876_v0  ;;  %v740_v0 = vld [vmem:[%s1362_s0 + $0x180] sm:$0xff] }
  0x49   :  { %732 = vmatprep.mubr.msk.f32.mxu0 %vm49_vm0, %v716_v62  ;;  %757 = vmatprep.mubr.msk.f32.mxu1 %vm49_vm0, %v741_v63 }
  0x4b   :  { %846 = vmatpush1.bf16.msra.mxu0 %v1008_v29  ;;  %873 = vmatpush1.bf16.msra.mxu1 %v1008_v29  ;;  %v754_v29 = vld [vmem:[%s1362_s0 + $0x1f0] sm:$0xff] }
  0x4c   :  { %414 = vmatprep.subr.mxu0 %v877_v30  ;;  %560 = vmatprep.subr.mxu1 %v877_v30 }
  0x4f   :  { %731 = vmatpush1.msk.msra.mxu0 %vm74_vm1, %v1019_v31  ;;  %756 = vmatpush1.msk.msra.mxu1 %vm74_vm1, %v1019_v31 }
  0x50   :  { %443 = vmatmul.mubr.f32.vlgmr.msra.gmra.mrb[16].mxu0 %v715_v1  ;;  %589 = vmatmul.mubr.f32.vlgmr.msra.gmra.mrb[16].mxu1 %v740_v0 }
  0x51   :  { %733 = vmatprep.mubr.msk.f32.mxu0 %vm49_vm0, %v718_v2  ;;  %758 = vmatprep.mubr.msk.f32.mxu1 %vm49_vm0, %v743_v3 }
  0x54   :  { %448 = vmatmul.mubr.f32.gmra.mrb[18].mxu0 %v717_v4  ;;  %594 = vmatmul.mubr.f32.gmra.mrb[18].mxu1 %v742_v5 }
  0x55   :  { %734 = vmatprep.mubr.msk.f32.mxu0 %vm49_vm0, %v720_v6  ;;  %759 = vmatprep.mubr.msk.f32.mxu1 %vm49_vm0, %v745_v7 }
  0x58   :  { %453 = vmatmul.mubr.f32.gmra.mrb[20].mxu0 %v719_v8  ;;  %599 = vmatmul.mubr.f32.gmra.mrb[20].mxu1 %v744_v9 }
  0x59   :  { %735 = vmatprep.mubr.msk.f32.mxu0 %vm49_vm0, %v722_v10  ;;  %760 = vmatprep.mubr.msk.f32.mxu1 %vm49_vm0, %v747_v11  ;;  %v1310_v11 = vld [vmem:[%s1363_s2] ss:$0 sm:$0xff] }
  0x5c   :  { %458 = vmatmul.mubr.f32.gmra.mrb[22].mxu0 %v721_v12  ;;  %604 = vmatmul.mubr.f32.gmra.mrb[22].mxu1 %v746_v13 }
  0x5d   :  { %736 = vmatprep.mubr.msk.f32.mxu0 %vm49_vm0, %v724_v14  ;;  %761 = vmatprep.mubr.msk.f32.mxu1 %vm49_vm0, %v749_v15 }
  0x60   :  { %463 = vmatmul.mubr.f32.gmra.mrb[24].mxu0 %v723_v16  ;;  %609 = vmatmul.mubr.f32.gmra.mrb[24].mxu1 %v748_v17 }
  0x61   :  { %737 = vmatprep.mubr.msk.f32.mxu0 %vm49_vm0, %v726_v18  ;;  %762 = vmatprep.mubr.msk.f32.mxu1 %vm49_vm0, %v751_v19 }
  0x64   :  { %468 = vmatmul.mubr.f32.gmra.mrb[26].mxu0 %v725_v20  ;;  %614 = vmatmul.mubr.f32.gmra.mrb[26].mxu1 %v750_v21 }
  0x65   :  { %738 = vmatprep.mubr.msk.f32.mxu0 %vm49_vm0, %v728_v22  ;;  %763 = vmatprep.mubr.msk.f32.mxu1 %vm49_vm0, %v753_v23 }
  0x68   :  { %473 = vmatmul.mubr.f32.gmra.mrb[28].mxu0 %v727_v24  ;;  %619 = vmatmul.mubr.f32.gmra.mrb[28].mxu1 %v752_v25 }
  0x69   :  { %739 = vmatprep.mubr.msk.f32.mxu0 %vm49_vm0, %v730_v26  ;;  %764 = vmatprep.mubr.msk.f32.mxu1 %vm49_vm0, %v755_v27 }
  0x6c   :  { %478 = vmatmul.mubr.f32.gmra.mrb[30].mxu0 %v729_v28  ;;  %624 = vmatmul.mubr.f32.gmra.mrb[30].mxu1 %v754_v29 }
  0xfc   :  { %v144_v30 = vpop.f32.mrb[0].mxu0  ;;  %v290_v31 = vpop.f32.mrb[0].mxu1 }
  0xfd   :  { %v329_v32 = vmax.f32 %v144_v30, %v290_v31  ;;  %v146_v33 = vpop.f32.mrb[1].mxu0  ;;  %v292_v34 = vpop.f32.mrb[1].mxu1 }
 0x101   :  { %v149_v35 = vpop.f32.mrb[2].mxu0  ;;  %v295_v36 = vpop.f32.mrb[2].mxu1 }
 0x102   :  { %v330_v37 = vmax.f32 %v149_v35, %v295_v36  ;;  %v151_v38 = vpop.f32.mrb[3].mxu0  ;;  %v297_v39 = vpop.f32.mrb[3].mxu1 }
 0x105   :  { %v154_v40 = vpop.f32.mrb[4].mxu0  ;;  %v300_v41 = vpop.f32.mrb[4].mxu1 }
 0x106   :  { %v331_v42 = vmax.f32 %v154_v40, %v300_v41  ;;  %v156_v43 = vpop.f32.mrb[5].mxu0  ;;  %v302_v44 = vpop.f32.mrb[5].mxu1 }
 0x109   :  { %v159_v45 = vpop.f32.mrb[6].mxu0  ;;  %v305_v46 = vpop.f32.mrb[6].mxu1 }
 0x10a   :  { %v332_v47 = vmax.f32 %v159_v45, %v305_v46  ;;  %v161_v48 = vpop.f32.mrb[7].mxu0  ;;  %v307_v49 = vpop.f32.mrb[7].mxu1 }
 0x10d   :  { %v1283_v50 = vpop.f32.mrb[8].mxu0  ;;  %v1285_v51 = vpop.f32.mrb[8].mxu1 }
 0x10e   :  { %v333_v52 = vmax.f32 %v1283_v50, %v1285_v51  ;;  %v166_v53 = vpop.f32.mrb[9].mxu0  ;;  %v312_v54 = vpop.f32.mrb[9].mxu1 }
 0x111   :  { %v1289_v55 = vpop.f32.mrb[10].mxu0  ;;  %v1291_v56 = vpop.f32.mrb[10].mxu1 }
 0x112   :  { %v334_v57 = vmax.f32 %v1289_v55, %v1291_v56  ;;  %v171_v58 = vpop.f32.mrb[11].mxu0  ;;  %v317_v59 = vpop.f32.mrb[11].mxu1 }
 0x115   :  { %v1295_v60 = vpop.f32.mrb[12].mxu0  ;;  %v1297_v61 = vpop.f32.mrb[12].mxu1 }
 0x116   :  { %v335_v62 = vmax.f32 %v1295_v60, %v1297_v61  ;;  %v176_v63 = vpop.f32.mrb[13].mxu0  ;;  %v322_v1 = vpop.f32.mrb[13].mxu1 }
 0x119   :  { %v1301_v0 = vpop.f32.mrb[14].mxu0  ;;  %v1303_v2 = vpop.f32.mrb[14].mxu1 }
 0x11a   :  { %v336_v3 = vmax.f32 %v1301_v0, %v1303_v2  ;;  %v181_v4 = vpop.f32.mrb[15].mxu0  ;;  %v327_v5 = vpop.f32.mrb[15].mxu1 }
 0x123   :  { %v444_v6 = vpop.f32.mrb[16].mxu0  ;;  %v590_v7 = vpop.f32.mrb[16].mxu1 }
 0x124   :  { %v629_v8 = vmax.f32 %v444_v6, %v590_v7  ;;  %v446_v9 = vpop.f32.mrb[17].mxu0  ;;  %v592_v10 = vpop.f32.mrb[17].mxu1 }
 0x126   :  { %v637_v12 = vmax.f32 %v329_v32, %v629_v8 }
 0x127   :  { %v449_v13 = vpop.f32.mrb[18].mxu0  ;;  %v595_v14 = vpop.f32.mrb[18].mxu1 }
 0x128   :  { %v652_v15 = vadd.f32 %v1310_v11, %v637_v12  ;;  %v630_v16 = vmax.f32 %v449_v13, %v595_v14  ;;  %v451_v17 = vpop.f32.mrb[19].mxu0  ;;  %v597_v18 = vpop.f32.mrb[19].mxu1 }
 0x12a   :  { %v660_v19 = vmax.f32 %v652_v15, 0.0  ;;  %v638_v20 = vmax.f32 %v330_v37, %v630_v16 }
 0x12b   :  { %v454_v21 = vpop.f32.mrb[20].mxu0  ;;  %v600_v22 = vpop.f32.mrb[20].mxu1 }
 0x12c   :  { %669 = vst.msk [vmem:[%s1364_s3] sm:$0xff] %vm668_vm2, %v660_v19  ;;  %v653_v23 = vadd.f32 %v1310_v11, %v638_v20  ;;  %v631_v24 = vmax.f32 %v454_v21, %v600_v22  ;;  %v456_v25 = vpop.f32.mrb[21].mxu0  ;;  %v602_v26 = vpop.f32.mrb[21].mxu1 }
 0x12e   :  { %v661_v27 = vmax.f32 %v653_v23, 0.0  ;;  %v639_v28 = vmax.f32 %v331_v42, %v631_v24 }
 0x12f   :  { %v459_v29 = vpop.f32.mrb[22].mxu0  ;;  %v605_v30 = vpop.f32.mrb[22].mxu1 }
 0x130   :  { %670 = vst.msk [vmem:[%s1364_s3 + $0x8] sm:$0xff] %vm668_vm2, %v661_v27  ;;  %v654_v31 = vadd.f32 %v1310_v11, %v639_v28  ;;  %v632_v32 = vmax.f32 %v459_v29, %v605_v30  ;;  %v461_v33 = vpop.f32.mrb[23].mxu0  ;;  %v607_v34 = vpop.f32.mrb[23].mxu1 }
 0x132   :  { %v662_v35 = vmax.f32 %v654_v31, 0.0  ;;  %v640_v36 = vmax.f32 %v332_v47, %v632_v32 }
 0x133   :  { %v464_v37 = vpop.f32.mrb[24].mxu0  ;;  %v610_v38 = vpop.f32.mrb[24].mxu1 }
 0x134   :  { %671 = vst.msk [vmem:[%s1364_s3 + $0x10] sm:$0xff] %vm668_vm2, %v662_v35  ;;  %v655_v39 = vadd.f32 %v1310_v11, %v640_v36  ;;  %v633_v40 = vmax.f32 %v464_v37, %v610_v38  ;;  %v466_v41 = vpop.f32.mrb[25].mxu0  ;;  %v612_v42 = vpop.f32.mrb[25].mxu1 }
 0x136   :  { %v663_v43 = vmax.f32 %v655_v39, 0.0  ;;  %v641_v44 = vmax.f32 %v333_v52, %v633_v40 }
 0x137   :  { %v469_v45 = vpop.f32.mrb[26].mxu0  ;;  %v615_v46 = vpop.f32.mrb[26].mxu1 }
 0x138   :  { %672 = vst.msk [vmem:[%s1364_s3 + $0x18] sm:$0xff] %vm668_vm2, %v663_v43  ;;  %v656_v47 = vadd.f32 %v1310_v11, %v641_v44  ;;  %v634_v48 = vmax.f32 %v469_v45, %v615_v46  ;;  %v471_v49 = vpop.f32.mrb[27].mxu0  ;;  %v617_v50 = vpop.f32.mrb[27].mxu1 }
 0x13a   :  { %v664_v51 = vmax.f32 %v656_v47, 0.0  ;;  %v642_v53 = vmax.f32 %v334_v57, %v634_v48 }
 0x13b   :  { %v474_v54 = vpop.f32.mrb[28].mxu0  ;;  %v620_v58 = vpop.f32.mrb[28].mxu1 }
 0x13c   :  { %673 = vst.msk [vmem:[%s1364_s3 + $0x20] sm:$0xff] %vm668_vm2, %v664_v51  ;;  %v657_v52 = vadd.f32 %v1310_v11, %v642_v53  ;;  %v635_v59 = vmax.f32 %v474_v54, %v620_v58  ;;  %v476_v63 = vpop.f32.mrb[29].mxu0  ;;  %v622_v1 = vpop.f32.mrb[29].mxu1 }
 0x13e   :  { %v665_v4 = vmax.f32 %v657_v52, 0.0  ;;  %v643_v5 = vmax.f32 %v335_v62, %v635_v59 }
 0x13f   :  { %v479_v6 = vpop.f32.mrb[30].mxu0  ;;  %v625_v55 = vpop.f32.mrb[30].mxu1 }
 0x140   :  { %674 = vst.msk [vmem:[%s1364_s3 + $0x28] sm:$0xff] %vm668_vm2, %v665_v4  ;;  %v658_v56 = vadd.f32 %v1310_v11, %v643_v5  ;;  %v636_v57 = vmax.f32 %v479_v6, %v625_v55  ;;  %v481_v7 = vpop.f32.mrb[31].mxu0  ;;  %v627_v8 = vpop.f32.mrb[31].mxu1 }
 0x142   :  { %v666_v9 = vmax.f32 %v658_v56, 0.0  ;;  %v644_v10 = vmax.f32 %v336_v3, %v636_v57 }
 0x144   :  { %675 = vst.msk [vmem:[%s1364_s3 + $0x30] sm:$0xff] %vm668_vm2, %v666_v9  ;;  %v659_v60 = vadd.f32 %v1310_v11, %v644_v10 }
 0x146   :  { %v667_v61 = vmax.f32 %v659_v60, 0.0 }
 0x148   :  { %676 = vst.msk [vmem:[%s1364_s3 + $0x38] sm:$0xff] %vm668_vm2, %v667_v61 }

// kernel: mnist_sum2_forward.5
= control target key start
LH: loop header
LB: loop body
LE: loop exit
PB: predicated region body
PF: predicated region fallthrough
CT: control target
= control target key end

     0   :  { %v1334_v3 = vmov 0.0|0.0   ;;  %vm1336_vm0 = vmmov 0   ;;  %vm172_vm1 = vcmask 982016   ;;  %vm269_vm2 = vcmask 1043456   ;;  %s1787_s2 = inlined_call_operand.vmem [shape: f32[256,120], index: 2, kind: input, shape index: {}]   ;;  %s1788_s0 = inlined_call_operand.vmem [shape: f32[8,256], index: 0, kind: input, shape index: {}]   ;;  %s1789_s4 = inlined_call_operand.vmem [shape: f32[120,84], index: 4, kind: input, shape index: {}]   ;;  %s1790_s1 = inlined_call_operand.vmem [shape: f32[8,256], index: 1, kind: input, shape index: {}]   ;;  %s1791_s6 = inlined_call_operand.vmem [shape: f32[84,10], index: 6, kind: input, shape index: {}]   ;;  %s1792_s3 = inlined_call_operand.vmem [shape: f32[1,120], index: 3, kind: input, shape index: {}]   ;;  %s1793_s5 = inlined_call_operand.vmem [shape: f32[1,84], index: 5, kind: input, shape index: {}]   ;;  %s1794_s7 = inlined_call_operand.vmem [shape: f32[1,10], index: 7, kind: input, shape index: {}]   ;;  %s1795_s8 = inlined_call_operand.vmem [shape: f32[10,100], index: 8, kind: input, shape index: {}]   ;;  %s1796_s9 = inlined_call_operand.vmem [shape: f32[10,100], index: 9, kind: input, shape index: {}]   ;;  %s1797_s10 = inlined_call_operand.vmem [shape: f32[100,19], index: 10, kind: input, shape index: {}]   ;;  %s1798_s11 = inlined_call_operand.vmem [shape: f32[8,19], index: 11, kind: output, shape index: {}]  }
   0x1   :  { %v56_v0 = vld [vmem:[%s1787_s2 + $0x80] sm:$0xff]  ;;  %v57_v1 = vld [vmem:[%s1787_s2 + $0x88] sm:$0xff]  ;;  %1192 = vmatprep.subr.bf16.mxu1 %v1334_v3  ;;  %v58_v6 = vld [vmem:[%s1787_s2 + $0x90] sm:$0xff]  ;;  %vm265_vm3 = vcmask 687104   ;;  %vm343_vm4 = vcmask 80896   ;;  %vm591_vm5 = vcmask 1041408  }
   0x2   :  { %v40_v2 = vld [vmem:[%s1787_s2] sm:$0xff]  ;;  %v1408_v4 = vpack.c.bf16 %v57_v1, %v56_v0  ;;  %v41_v5 = vld [vmem:[%s1787_s2 + $0x8] sm:$0xff]  ;;  %v59_v7 = vld [vmem:[%s1787_s2 + $0x98] sm:$0xff]  ;;  %vm1337_vm6 = vmmov 1   ;;  %vm757_vm8 = vcmask 818176   ;;  %vm834_vm9 = vcmask 154624  }
   0x3   :  { %v1419_v8 = vpack.c.bf16 %v41_v5, %v40_v2  ;;  %v1421_v9 = vpack.c.bf16 %v59_v7, %v58_v6  ;;  %v42_v10 = vld [vmem:[%s1787_s2 + $0x10] sm:$0xff]  ;;  %v43_v11 = vld [vmem:[%s1787_s2 + $0x18] sm:$0xff]  ;;  %v60_v12 = vld [vmem:[%s1787_s2 + $0xa0] sm:$0xff] }
   0x4   :  { %1161 = vmatprep.subr.bf16.mxu0 %v1408_v4  ;;  %v61_v13 = vld [vmem:[%s1787_s2 + $0xa8] sm:$0xff]  ;;  %v1437_v14 = vpack.c.bf16 %v43_v11, %v42_v10  ;;  %v44_v16 = vld [vmem:[%s1787_s2 + $0x20] sm:$0xff]  ;;  %v62_v18 = vld [vmem:[%s1787_s2 + $0xb0] sm:$0xff] }
   0x5   :  { %1163 = vmatpush3.bf16.msra.mxu0 %v1419_v8  ;;  %v1440_v15 = vpack.c.bf16 %v61_v13, %v60_v12  ;;  %v45_v17 = vld [vmem:[%s1787_s2 + $0x28] sm:$0xff]  ;;  %v63_v19 = vld [vmem:[%s1787_s2 + $0xb8] sm:$0xff]  ;;  %v46_v22 = vld [vmem:[%s1787_s2 + $0x30] sm:$0xff] }
   0x6   :  { %1165 = vmatprep.subr.bf16.mxu0 %v1421_v9  ;;  %v1455_v20 = vpack.c.bf16 %v45_v17, %v44_v16  ;;  %v1458_v21 = vpack.c.bf16 %v63_v19, %v62_v18  ;;  %v47_v23 = vld [vmem:[%s1787_s2 + $0x38] sm:$0xff]  ;;  %v64_v24 = vld [vmem:[%s1787_s2 + $0xc0] sm:$0xff]  ;;  %v65_v25 = vld [vmem:[%s1787_s2 + $0xc8] sm:$0xff] }
   0x7   :  { %v39_v26 = vld [vmem:[%s1788_s0 + $0x8] sm:$0xff]  ;;  %v150_v27 = vld [vmem:[%s1789_s4] sm:$0xff]  ;;  %v1482_v29 = vpack.c.bf16 %v47_v23, %v46_v22  ;;  %v152_v31 = vld [vmem:[%s1789_s4 + $0x10] sm:$0xff]  ;;  %v1493_v33 = vpack.c.bf16 %v65_v25, %v64_v24 }
   0x8   :  { %143 = vmatprep.mubr.f32.mxu0 %v39_v26  ;;  %v151_v28 = vld [vmem:[%s1789_s4 + $0x8] sm:$0xff]  ;;  %v153_v32 = vld [vmem:[%s1789_s4 + $0x18] sm:$0xff]  ;;  %v48_v34 = vld [vmem:[%s1787_s2 + $0x40] sm:$0xff] }
   0x9   :  { %1167 = vmatpush3.bf16.msra.mxu0 %v1437_v14  ;;  %v1484_v30 = vpack.c.bf16 %v151_v28, %v150_v27  ;;  %v49_v35 = vld [vmem:[%s1787_s2 + $0x48] sm:$0xff]  ;;  %v66_v36 = vld [vmem:[%s1787_s2 + $0xd0] sm:$0xff]  ;;  %v67_v37 = vld [vmem:[%s1787_s2 + $0xd8] sm:$0xff]  ;;  %v1508_v38 = vpack.c.bf16 %v153_v32, %v152_v31 }
   0xa   :  { %1169 = vmatprep.subr.bf16.mxu0 %v1440_v15  ;;  %v154_v39 = vld [vmem:[%s1789_s4 + $0x20] sm:$0xff]  ;;  %v155_v40 = vld [vmem:[%s1789_s4 + $0x28] sm:$0xff]  ;;  %v1178_v41 = vpack.c.bf16 %v49_v35, %v48_v34  ;;  %v1180_v42 = vpack.c.bf16 %v67_v37, %v66_v36  ;;  %v50_v43 = vld [vmem:[%s1787_s2 + $0x50] sm:$0xff] }
   0xb   :  { %1194 = vmatpush3.bf16.msra.mxu1 %v1484_v30  ;;  %v51_v44 = vld [vmem:[%s1787_s2 + $0x58] sm:$0xff]  ;;  %v68_v45 = vld [vmem:[%s1787_s2 + $0xe0] sm:$0xff]  ;;  %v69_v46 = vld [vmem:[%s1787_s2 + $0xe8] sm:$0xff]  ;;  %v1532_v47 = vpack.c.bf16 %v155_v40, %v154_v39 }
   0xc   :  { %1195 = vmatprep.subr.bf16.mxu1 %v1334_v3  ;;  %v156_v48 = vld [vmem:[%s1789_s4 + $0x30] sm:$0xff]  ;;  %v157_v49 = vld [vmem:[%s1789_s4 + $0x38] sm:$0xff]  ;;  %v1182_v50 = vpack.c.bf16 %v51_v44, %v50_v43  ;;  %v1184_v51 = vpack.c.bf16 %v69_v46, %v68_v45  ;;  %v52_v52 = vld [vmem:[%s1787_s2 + $0x60] sm:$0xff] }
   0xd   :  { %1171 = vmatpush3.bf16.msra.mxu0 %v1455_v20  ;;  %v53_v53 = vld [vmem:[%s1787_s2 + $0x68] sm:$0xff]  ;;  %v70_v54 = vld [vmem:[%s1787_s2 + $0xf0] sm:$0xff]  ;;  %v71_v55 = vld [vmem:[%s1787_s2 + $0xf8] sm:$0xff]  ;;  %v1554_v56 = vpack.c.bf16 %v157_v49, %v156_v48 }
   0xe   :  { %1173 = vmatprep.subr.bf16.mxu0 %v1458_v21  ;;  %v158_v57 = vld [vmem:[%s1789_s4 + $0x40] sm:$0xff]  ;;  %v159_v58 = vld [vmem:[%s1789_s4 + $0x48] sm:$0xff]  ;;  %v1186_v59 = vpack.c.bf16 %v53_v53, %v52_v52  ;;  %v1188_v60 = vpack.c.bf16 %v71_v55, %v70_v54  ;;  %v54_v61 = vld [vmem:[%s1787_s2 + $0x70] sm:$0xff] }
   0xf   :  { %1197 = vmatpush3.bf16.msra.mxu1 %v1508_v38  ;;  %v55_v62 = vld [vmem:[%s1787_s2 + $0x78] sm:$0xff]  ;;  %v1570_v63 = vpack.c.bf16 %v159_v58, %v158_v57  ;;  %v160_v0 = vld [vmem:[%s1789_s4 + $0x50] sm:$0xff]  ;;  %v38_v6 = vld [vmem:[%s1788_s0] sm:$0xff] }
  0x10   :  { %1198 = vmatprep.subr.bf16.mxu1 %v1334_v3  ;;  %v161_v1 = vld [vmem:[%s1789_s4 + $0x58] sm:$0xff]  ;;  %v1190_v2 = vpack.c.bf16 %v55_v62, %v54_v61  ;;  %v163_v7 = vld [vmem:[%s1789_s4 + $0x68] sm:$0xff]  ;;  %v1611_v10 = vld [vmem:[%s1789_s4 + $0x70] sm:$0xff] }
  0x11   :  { %1175 = vmatpush3.bf16.msra.mxu0 %v1482_v29  ;;  %v1580_v5 = vpack.c.bf16 %v161_v1, %v160_v0  ;;  %v356_v11 = vld [vmem:[%s1790_s1 + $0x8] sm:$0xff]  ;;  %v355_v12 = vld [vmem:[%s1790_s1] sm:$0xff]  ;;  %v249_v16 = vld [vmem:[%s1791_s6 + $0x10] sm:$0xff] }
  0x12   :  { %1177 = vmatprep.subr.bf16.mxu0 %v1493_v33  ;;  %v247_v13 = vld [vmem:[%s1791_s6] sm:$0xff]  ;;  %v250_v17 = vld [vmem:[%s1791_s6 + $0x18] sm:$0xff]  ;;  %v253_v22 = vld [vmem:[%s1791_s6 + $0x30] sm:$0xff] }
  0x13   :  { %1200 = vmatpush3.bf16.msra.mxu1 %v1532_v47  ;;  %v1217_v18 = vpack.c.bf16 %v250_v17, %v249_v16  ;;  %v251_v19 = vld [vmem:[%s1791_s6 + $0x20] sm:$0xff]  ;;  %v254_v23 = vld [vmem:[%s1791_s6 + $0x38] sm:$0xff]  ;;  %v256_v26 = vld [vmem:[%s1791_s6 + $0x48] sm:$0xff] }
  0x14   :  { %1201 = vmatprep.subr.bf16.mxu1 %v1334_v3  ;;  %v1223_v24 = vpack.c.bf16 %v254_v23, %v253_v22  ;;  %v255_v25 = vld [vmem:[%s1791_s6 + $0x40] sm:$0xff]  ;;  %v257_v35 = vld [vmem:[%s1791_s6 + $0x50] sm:$0xf]  ;;  %vm1717_vm7 = vmpackc.low %vm591_vm5, %vm1337_vm6 }
  0x15   :  { %1179 = vmatpush3.bf16.msra.mxu0 %v1178_v41  ;;  %v1226_v27 = vpack.c.bf16 %v256_v26, %v255_v25  ;;  %v841_v40 = vld [vmem:[%s1793_s5] ss:$0 sm:$0xff]  ;;  %v745_v17 = vld [vmem:[%s1797_s10 + $0x8] sm:$0xff]  ;;  %v750_v25 = vld [vmem:[%s1797_s10 + $0x30] sm:$0xff] }
  0x16   :  { %1181 = vmatprep.subr.bf16.mxu0 %v1180_v42  ;;  %v843_v45 = vld [vmem:[%s1794_s7] ss:$0 sm:$0xff]  ;;  %v749_v23 = vld [vmem:[%s1797_s10 + $0x28] sm:$0xff]  ;;  %v751_v26 = vld [vmem:[%s1797_s10 + $0x38] sm:$0xff] }
  0x17   :  { %1203 = vmatpush3.bf16.msra.mxu1 %v1554_v56  ;;  %v744_v16 = vld [vmem:[%s1797_s10] sm:$0xff] }
  0x18   :  { %1204 = vmatprep.subr.bf16.mxu1 %v1334_v3  ;;  %v748_v22 = vld [vmem:[%s1797_s10 + $0x20] sm:$0xff] }
  0x19   :  { %1183 = vmatpush3.bf16.msra.mxu0 %v1182_v50 }
  0x1a   :  { %1185 = vmatprep.subr.bf16.mxu0 %v1184_v51 }
  0x1b   :  { %1206 = vmatpush3.bf16.msra.mxu1 %v1570_v63 }
  0x1c   :  { %1207 = vmatprep.subr.bf16.mxu1 %v1334_v3 }
  0x1d   :  { %1187 = vmatpush3.bf16.msra.mxu0 %v1186_v59 }
  0x1e   :  { %1189 = vmatprep.subr.bf16.mxu0 %v1188_v60 }
  0x1f   :  { %1209 = vmatpush3.bf16.msra.mxu1 %v1580_v5 }
  0x20   :  { %1210 = vmatprep.subr.bf16.mxu1 %v1334_v3 }
  0x21   :  { %1191 = vmatpush3.bf16.msra.mxu0 %v1190_v2 }
  0x22   :  { %1229 = vmatprep.subr.bf16.mxu0 %v1408_v4  ;;  %v162_v4 = vld [vmem:[%s1789_s4 + $0x60] sm:$0xff] }
  0x24   :  { %144 = vmatmul.mubr.f32.vlgmr.msra.gmra.mrb[0].mxu0 %v38_v6 }
  0x25   :  { %1231 = vmatpush3.bf16.msra.mxu0 %v1419_v8  ;;  %v1604_v8 = vpack.c.bf16 %v163_v7, %v162_v4  ;;  %421 = vmatprep.mubr.f32.mxu0 %v356_v11 }
  0x26   :  { %1233 = vmatprep.subr.bf16.mxu0 %v1421_v9  ;;  %v1335_v9 = vmov 0.0  }
  0x27   :  { %1212 = vmatpush3.bf16.msra.mxu1 %v1604_v8  ;;  %1031 = vmatprep.mubr.msk.f32.mxu1 %vm1336_vm0, %v1335_v9 }
  0x28   :  { %1029 = vmatprep.subr.mxu1 %v1335_v9 }
  0x29   :  { %1235 = vmatpush3.bf16.msra.mxu0 %v1437_v14  ;;  %v248_v14 = vld [vmem:[%s1791_s6 + $0x8] sm:$0xff] }
  0x2a   :  { %1237 = vmatprep.subr.bf16.mxu0 %v1440_v15  ;;  %v1214_v15 = vpack.c.bf16 %v248_v14, %v247_v13  ;;  %v665_v13 = vld [vmem:[%s1796_s9] sm:$0xff]  ;;  %v666_v14 = vld [vmem:[%s1796_s9 + $0x8] sm:$0x3] }
  0x2b   :  { %1030 = vmatpush3.msra.mxu1 %v1611_v10 }
  0x2c   :  { %1213 = vmatprep.subr.bf16.mxu1 %v1334_v3 }
  0x2d   :  { %1239 = vmatpush3.bf16.msra.mxu0 %v1455_v20  ;;  %v252_v20 = vld [vmem:[%s1791_s6 + $0x28] sm:$0xff] }
  0x2e   :  { %1241 = vmatprep.subr.bf16.mxu0 %v1458_v21  ;;  %v1220_v21 = vpack.c.bf16 %v252_v20, %v251_v19  ;;  %v1305_v19 = vpack.c.bf16 %v745_v17, %v744_v16  ;;  %v747_v20 = vld [vmem:[%s1797_s10 + $0x18] sm:$0xff] }
  0x31   :  { %1243 = vmatpush3.bf16.msra.mxu0 %v1482_v29  ;;  %v840_v29 = vld [vmem:[%s1792_s3] ss:$0 sm:$0xff] }
  0x32   :  { %1245 = vmatprep.subr.bf16.mxu0 %v1493_v33 }
  0x35   :  { %1247 = vmatpush3.bf16.msra.mxu0 %v1178_v41 }
  0x36   :  { %1249 = vmatprep.subr.bf16.mxu0 %v1180_v42 }
  0x39   :  { %1251 = vmatpush3.bf16.msra.mxu0 %v1182_v50 }
  0x3a   :  { %1253 = vmatprep.subr.bf16.mxu0 %v1184_v51 }
  0x3d   :  { %1255 = vmatpush3.bf16.msra.mxu0 %v1186_v59  ;;  %v586_v59 = vld [vmem:[%s1795_s8] sm:$0xff] }
  0x3e   :  { %1257 = vmatprep.subr.bf16.mxu0 %v1188_v60  ;;  %v587_v60 = vld [vmem:[%s1795_s8 + $0x8] sm:$0x3] }
  0x3f   :  { %v1297_v61 = vpack.c.bf16 %v587_v60, %v586_v59 }
  0x41   :  { %1259 = vmatpush3.bf16.msra.mxu0 %v1190_v2 }
  0x42   :  { %1281 = vmatprep.subr.bf16.mxu0 %v1334_v3 }
  0x44   :  { %422 = vmatmul.mubr.f32.vlgmr.msra.gmra.mrb[2].mxu0 %v355_v12 }
  0x45   :  { %1114 = vmatprep.mubr.msk.f32.mxu0 %vm1336_vm0, %v1335_v9  ;;  %1283 = vmatpush3.bf16.msra.mxu0 %v1214_v15 }
  0x46   :  { %1284 = vmatprep.subr.bf16.mxu0 %v1334_v3 }
  0x49   :  { %1286 = vmatpush3.bf16.msra.mxu0 %v1217_v18 }
  0x4a   :  { %1287 = vmatprep.subr.bf16.mxu0 %v1334_v3 }
  0x4d   :  { %1289 = vmatpush3.bf16.msra.mxu0 %v1220_v21 }
  0x4e   :  { %1290 = vmatprep.subr.bf16.mxu0 %v1334_v3 }
  0x51   :  { %1292 = vmatpush3.bf16.msra.mxu0 %v1223_v24 }
  0x52   :  { %1293 = vmatprep.subr.bf16.mxu0 %v1334_v3 }
  0x55   :  { %1295 = vmatpush3.bf16.msra.mxu0 %v1226_v27 }
  0x56   :  { %1112 = vmatprep.subr.mxu0 %v1335_v9 }
  0x59   :  { %1113 = vmatpush3.msk.msra.mxu0 %vm269_vm2, %v257_v35 }
  0x5a   :  { %1296 = vmatprep.subr.bf16.mxu0 %v1334_v3 }
  0xf7   :  { %v887_v28 = vpop.f32.mrb[0].mxu0 }
  0xf8   :  { %v888_v31 = vpop.f32.mrb[1].mxu0 }
  0xf9   :  { %v889_v32 = vadd.f32 %v888_v31, %v887_v28  ;;  %v752_v28 = vld [vmem:[%s1797_s10 + $0x40] sm:$0xff] }
  0xfb   :  { %v146_v33 = vadd.f32 %v889_v32, %v840_v29  ;;  %v754_v32 = vld [vmem:[%s1797_s10 + $0x50] sm:$0xff] }
  0xfd   :  { %v149_v34 = vmax.f32 %v146_v33, 0.0  ;;  %v755_v33 = vld [vmem:[%s1797_s10 + $0x58] sm:$0xff] }
  0xff   :  { %1032 = vmatmul.mubr.msk.f32.vlgmr.msra.gmra.mrb[0].mxu1 %vm172_vm1, %v149_v34  ;;  %v1320_v34 = vpack.c.bf16 %v755_v33, %v754_v32 }
 0x100   :  { %1215 = vmatpush3.bf16.msra.mxu1 %v1214_v15  ;;  %1056 = vmatprep.mubr.msk.f32.mxu1 %vm1336_vm0, %v1335_v9  ;;  %v1301_v15 = vpack.c.bf16 %v666_v14, %v665_v13 }
 0x101   :  { %1216 = vmatprep.subr.bf16.mxu1 %v1334_v3 }
 0x104   :  { %1218 = vmatpush3.bf16.msra.mxu1 %v1217_v18  ;;  %v746_v18 = vld [vmem:[%s1797_s10 + $0x10] sm:$0xff] }
 0x105   :  { %1219 = vmatprep.subr.bf16.mxu1 %v1334_v3 }
 0x108   :  { %1221 = vmatpush3.bf16.msra.mxu1 %v1220_v21  ;;  %v1308_v21 = vpack.c.bf16 %v747_v20, %v746_v18 }
 0x109   :  { %1222 = vmatprep.subr.bf16.mxu1 %v1334_v3 }
 0x10c   :  { %1224 = vmatpush3.bf16.msra.mxu1 %v1223_v24  ;;  %v1311_v24 = vpack.c.bf16 %v749_v23, %v748_v22 }
 0x10d   :  { %1225 = vmatprep.subr.bf16.mxu1 %v1334_v3 }
 0x110   :  { %1227 = vmatpush3.bf16.msra.mxu1 %v1226_v27  ;;  %v1314_v27 = vpack.c.bf16 %v751_v26, %v750_v25 }
 0x111   :  { %1054 = vmatprep.subr.mxu1 %v1335_v9 }
 0x114   :  { %1055 = vmatpush3.msk.msra.mxu1 %vm269_vm2, %v257_v35 }
 0x115   :  { %1260 = vmatprep.subr.bf16.mxu1 %v1334_v3 }
 0x117   :  { %v950_v36 = vpop.f32.mrb[2].mxu0 }
 0x118   :  { %v951_v37 = vpop.f32.mrb[3].mxu0 }
 0x119   :  { %v952_v39 = vadd.f32 %v951_v37, %v950_v36 }
 0x1d2   :  { %v242_v41 = vpop.f32.mrb[0].mxu1 }
 0x1d3   :  { %v243_v42 = vadd.f32 %v841_v40, %v242_v41  ;;  %v1033_v43 = vpop.f32.mrb[1].mxu1  ;;  %v756_v41 = vld [vmem:[%s1797_s10 + $0x60] sm:$0xf] }
 0x1d5   :  { %v246_v44 = vmax.f32 %v243_v42, 0.0 }
 0x1d7   :  { %1057 = vmatmul.mubr.msk.f32.vlgmr.msra.gmra.mrb[2].mxu1 %vm265_vm3, %v246_v44 }
 0x1d8   :  { %1262 = vmatpush3.bf16.msra.mxu1 %v1484_v30  ;;  %1089 = vmatprep.mubr.msk.f32.mxu1 %vm1336_vm0, %v1335_v9  ;;  %v424_v30 = vadd.f32 %v952_v39, %v840_v29  ;;  %v753_v29 = vld [vmem:[%s1797_s10 + $0x48] sm:$0xff] }
 0x1d9   :  { %1263 = vmatprep.subr.bf16.mxu1 %v1334_v3  ;;  %v1317_v31 = vpack.c.bf16 %v753_v29, %v752_v28 }
 0x1dc   :  { %1265 = vmatpush3.bf16.msra.mxu1 %v1508_v38  ;;  %v427_v38 = vmax.f32 %v424_v30, 0.0 }
 0x1dd   :  { %1266 = vmatprep.subr.bf16.mxu1 %v1334_v3 }
 0x1e0   :  { %1268 = vmatpush3.bf16.msra.mxu1 %v1532_v47 }
 0x1e1   :  { %1269 = vmatprep.subr.bf16.mxu1 %v1334_v3 }
 0x1e4   :  { %1271 = vmatpush3.bf16.msra.mxu1 %v1554_v56 }
 0x1e5   :  { %1272 = vmatprep.subr.bf16.mxu1 %v1334_v3 }
 0x1e8   :  { %1274 = vmatpush3.bf16.msra.mxu1 %v1570_v63 }
 0x1e9   :  { %1275 = vmatprep.subr.bf16.mxu1 %v1334_v3 }
 0x1ec   :  { %1277 = vmatpush3.bf16.msra.mxu1 %v1580_v5 }
 0x1ed   :  { %1278 = vmatprep.subr.bf16.mxu1 %v1334_v3 }
 0x1f0   :  { %1280 = vmatpush3.bf16.msra.mxu1 %v1604_v8 }
 0x1f1   :  { %1087 = vmatprep.subr.mxu1 %v1335_v9 }
 0x1f4   :  { %1088 = vmatpush3.msra.mxu1 %v1611_v10 }
 0x1f5   :  { %1090 = vmatmul.mubr.msk.f32.vlgmr.msra.gmra.mrb[4].mxu1 %vm172_vm1, %v427_v38  ;;  %1304 = vmatprep.subr.bf16.mxu1 %v1334_v3 }
 0x1f6   :  { %1157 = vmatprep.mubr.msk.f32.mxu1 %vm1336_vm0, %v1335_v9  ;;  %1306 = vmatpush3.bf16.msra.mxu1 %v1305_v19 }
 0x1f7   :  { %1307 = vmatprep.subr.bf16.mxu1 %v1334_v3 }
 0x1fa   :  { %1309 = vmatpush3.bf16.msra.mxu1 %v1308_v21 }
 0x1fb   :  { %1310 = vmatprep.subr.bf16.mxu1 %v1334_v3 }
 0x1fe   :  { %1312 = vmatpush3.bf16.msra.mxu1 %v1311_v24 }
 0x1ff   :  { %1313 = vmatprep.subr.bf16.mxu1 %v1334_v3 }
 0x202   :  { %1315 = vmatpush3.bf16.msra.mxu1 %v1314_v27 }
 0x203   :  { %1316 = vmatprep.subr.bf16.mxu1 %v1334_v3 }
 0x206   :  { %1318 = vmatpush3.bf16.msra.mxu1 %v1317_v31 }
 0x207   :  { %1319 = vmatprep.subr.bf16.mxu1 %v1334_v3 }
 0x20a   :  { %1321 = vmatpush3.bf16.msra.mxu1 %v1320_v34 }
 0x20b   :  { %1155 = vmatprep.subr.mxu1 %v1335_v9 }
 0x20e   :  { %1156 = vmatpush3.msk.msra.mxu1 %vm269_vm2, %v756_v41 }
 0x2aa   :  { %v339_v46 = vpop.f32.mrb[2].mxu1 }
 0x2ab   :  { %v340_v47 = vadd.f32 %v843_v45, %v339_v46  ;;  %v1058_v48 = vpop.f32.mrb[3].mxu1 }
 0x2ad   :  { %v344_v49 = vsel %vm343_vm4, %v340_v47, -inf }
 0x2ae   :  { %345 = vmax.xlane.f32.xlu0 %v344_v49 }
 0x2c8   :  { %v497_v50 = vpop.f32.mrb[4].mxu1 }
 0x2c9   :  { %v498_v51 = vadd.f32 %v841_v40, %v497_v50  ;;  %v1091_v52 = vpop.f32.mrb[5].mxu1 }
 0x2cb   :  { %v501_v53 = vmax.f32 %v498_v51, 0.0 }
 0x2cd   :  { %1115 = vmatmul.mubr.msk.f32.vlgmr.msra.gmra.mrb[4].mxu0 %vm265_vm3, %v501_v53 }
 0x2ce   :  { %1121 = vmatprep.mubr.msk.f32.mxu0 %vm1336_vm0, %v1335_v9  ;;  %1299 = vmatpush3.bf16.msk.msra.mxu0 %vm1717_vm7, %v1297_v61 }
 0x2cf   :  { %1300 = vmatprep.subr.bf16.mxu0 %v1334_v3 }
 0x33b   :  { %v346_v54 = vpop.xlane.xlu0 %345 }
 0x33c   :  { %v347_v55 = vsub.f32 %v340_v47, %v346_v54 }
 0x33e   :  { %v348_v56 = vmul.f32 1.442695, %v347_v55 }
 0x340   :  { %1326 = vpow2.f32 %v348_v56 }
 0x34a   :  { %v1327_v57 = vpop.eup %1326 }
 0x34b   :  { %v350_v58 = vsel %vm343_vm4, %v1327_v57, 0.0 }
 0x34c   :  { %351 = vadd.xlane.f32.xlu1 %v350_v58 }
 0x3a0   :  { %v571_v63 = vpop.f32.mrb[4].mxu0 }
 0x3a1   :  { %v572_v0 = vadd.f32 %v843_v45, %v571_v63  ;;  %v1116_v1 = vpop.f32.mrb[5].mxu0 }
 0x3a3   :  { %v575_v2 = vsel %vm343_vm4, %v572_v0, -inf }
 0x3a4   :  { %576 = vmax.xlane.f32.xlu0 %v575_v2 }
 0x3d9   :  { %v352_v5 = vpop.xlane.xlu1 %351 }
 0x3da   :  { %1328 = vrcp.f32 %v352_v5 }
 0x3e4   :  { %v1329_v6 = vpop.eup %1328 }
 0x3e5   :  { %v354_v4 = vmul.f32 %v1329_v6, %v1327_v57 }
 0x3e7   :  { %1122 = vmatmul.mubr.msk.f32.vlgmr.msra.gmra.mrb[6].mxu0 %vm343_vm4, %v354_v4 }
 0x3e8   :  { %1128 = vmatprep.mubr.msk.f32.mxu0 %vm1336_vm0, %v1335_v9  ;;  %1303 = vmatpush3.bf16.msk.msra.mxu0 %vm1717_vm7, %v1301_v15 }
 0x431   :  { %v577_v7 = vpop.xlane.xlu0 %576 }
 0x432   :  { %v578_v8 = vsub.f32 %v572_v0, %v577_v7 }
 0x434   :  { %v579_v10 = vmul.f32 1.442695, %v578_v8 }
 0x436   :  { %1330 = vpow2.f32 %v579_v10 }
 0x440   :  { %v1331_v11 = vpop.eup %1330 }
 0x441   :  { %v581_v12 = vsel %vm343_vm4, %v1331_v11, 0.0 }
 0x442   :  { %582 = vadd.xlane.f32.xlu1 %v581_v12 }
 0x4ba   :  { %v661_v35 = vpop.f32.mrb[6].mxu0 }
 0x4bb   :  { %v1123_v36 = vpop.f32.mrb[7].mxu0 }
 0x4cf   :  { %v583_v37 = vpop.xlane.xlu1 %582 }
 0x4d0   :  { %1332 = vrcp.f32 %v583_v37 }
 0x4da   :  { %v1333_v39 = vpop.eup %1332 }
 0x4db   :  { %v585_v40 = vmul.f32 %v1333_v39, %v1331_v11 }
 0x4dd   :  { %1129 = vmatmul.mubr.msk.f32.vlgmr.msra.gmra.mrb[8].mxu0 %vm343_vm4, %v585_v40 }
 0x5b0   :  { %v739_v42 = vpop.f32.mrb[8].mxu0 }
 0x5b1   :  { %v743_v3 = vmul.f32 %v739_v42, %v661_v35  ;;  %v1130_v43 = vpop.f32.mrb[9].mxu0 }
 0x5b3   :  { %1158 = vmatmul.mubr.msk.f32.vlgmr.msra.gmra.mrb[6].mxu1 %vm757_vm8, %v743_v3 }
 0x686   :  { %v830_v9 = vpop.f32.mrb[6].mxu1 }
 0x687   :  { %835 = vst.msk [vmem:[%s1798_s11] sm:$0xff] %vm834_vm9, %v830_v9  ;;  %v1159_v44 = vpop.f32.mrb[7].mxu1 }

</bundles_post_ra>
